<compile_context>
chip_gen: v7x
topology: tpu7x:2x2x1
jax: 0.10.0
libtpu: 0.0.40
codegen_flags: <defaults>
</compile_context>

<pallas_src>
import functools

import jax
import jax.numpy as jnp
import numpy as np
from jax.experimental import pallas as pl
from jax.experimental.pallas import tpu as pltpu

KSIZE = 5
PAD = 2
BN_EPS = 1e-5
LANE = 128


def _round_up(x, m):
    return ((x + m - 1) // m) * m


# ----------------------------------------------------------------------------- fused kernel
def _fused_forward_kernel(xs_ref, wm1_ref, b1_ref, wm2_ref, b2_ref, wm3_ref, b3_ref,
                          g1_ref, be1_ref, g2_ref, be2_ref, eb_ref, bsel_ref,
                          o_ref, stage_ref, col_ref, *,
                          wp, n_valid, read_base, store_off):
    # xs_ref   : (C, L)      zero-padded flat-frame input (channel-major, lanes = b*Hp*Wp+hp*Wp+wp+OFF)
    # wm*_ref  : (C, 25*C)   conv weights in matmul form     b*_ref / g*_ref / be*_ref : (C, 1)
    # eb_ref   : (C, B)      per-sample context bias (Linear(context)), already computed once
    # bsel_ref : (B, NOUT)   1.0 at batch-b's real (non-halo) output columns
    # o_ref    : (C, NOUT)   conv3 output in the flat frame (wrapper drops halo columns)
    # stage_ref: (C, L)      VMEM staging buffer = next layer's padded input
    # col_ref  : (25*C,NOUT) VMEM im2col matrix
    C = wm1_ref.shape[0]
    nout = col_ref.shape[1]

    bsel = bsel_ref[...]                                     # (B, NOUT)
    mask = jnp.sum(bsel, axis=0, keepdims=True)              # (1, NOUT): 1.0 at valid output cols
    inv_n = 1.0 / float(n_valid)

    def conv(src_ref, wm_ref, b_ref):
        # im2col: col[(kh*5+kw)*C + cin, q] = src[cin, q + read_base + kh*wp + kw]
        for kh in range(KSIZE):
            for kw in range(KSIZE):
                tap = kh * KSIZE + kw
                lo = read_base + kh * wp + kw
                col_ref[tap * C:(tap + 1) * C, :] = src_ref[:, lo:lo + nout]
        # one fat MXU matmul per conv layer (K = 25*C), f32 accumulation
        y = jnp.dot(wm_ref[...], col_ref[...], preferred_element_type=jnp.float32)
        return y + b_ref[...]                                # bias (C,1) broadcast over lanes

    def bn_relu(y, g_ref, be_ref):
        # training-mode BatchNorm2d over the n_valid real output positions (centred two-pass)
        mean = jnp.sum(y * mask, axis=1, keepdims=True) * inv_n
        diff = (y - mean) * mask
        var = jnp.sum(diff * diff, axis=1, keepdims=True) * inv_n       # biased variance
        scale = g_ref[...] * jax.lax.rsqrt(var + BN_EPS)
        shift = be_ref[...] - mean * scale
        return jnp.maximum(y * scale + shift, 0.0) * mask    # *mask re-zeroes halo/garbage columns

    # ---------- layer 1: conv + per-sample context bias + BN + ReLU ----------
    y1 = conv(xs_ref, wm1_ref, b1_ref)
    eb = eb_ref[...]                                         # (C, B)
    for b in range(eb.shape[1]):                             # broadcast each sample's bias to its cols
        y1 = y1 + eb[:, b:b + 1] * bsel[b:b + 1, :]
    a1 = bn_relu(y1, g1_ref, be1_ref)

    # stage a1 as the zero-padded flat-frame input of layer 2 (in-kernel padding: halo cols are 0)
    stage_ref[...] = jnp.zeros_like(stage_ref)
    stage_ref[:, store_off:store_off + nout] = a1

    # ---------- layer 2: conv + BN + ReLU ----------
    a2 = bn_relu(conv(stage_ref, wm2_ref, b2_ref), g2_ref, be2_ref)
    stage_ref[:, store_off:store_off + nout] = a2            # margins outside the store stay zero

    # ---------- layer 3: output conv ----------
    o_ref[...] = conv(stage_ref, wm3_ref, b3_ref)


# ----------------------------------------------------------------------------- wrapper
def conv_synthesizer_forward(params, trigger_nchw, context):
    """trigger: (B, C, H, W) NCHW (PyTorch convention); context: (B, context_dim) or None."""
    x = trigger_nchw.astype(jnp.float32)
    B, C, H, W = x.shape
    HP, WP = H + 2 * PAD, W + 2 * PAD
    PLANE = HP * WP
    DATA = B * PLANE
    HALO = PAD * WP + PAD                      # flat-frame offset of the top-left conv tap
    OFF = max(LANE, _round_up(HALO, LANE))     # 128-aligned start of the padded planes
    NOUT = _round_up(DATA, LANE)               # conv-output columns computed per layer
    L = _round_up(OFF + NOUT + HALO, LANE)     # staging-frame width (all tap reads in bounds)
    READ_BASE = OFF - HALO
    N_VALID = B * H * W

    # one-time boundary glue (~16 KB): NCHW -> channel-major zero-padded flat frame
    xt = jnp.transpose(x, (1, 0, 2, 3))                                   # (C, B, H, W)
    xp = jnp.pad(xt, ((0, 0), (0, 0), (PAD, PAD), (PAD, PAD)))            # (C, B, HP, WP)
    xs = jnp.pad(xp.reshape(C, DATA), ((0, 0), (OFF, L - OFF - DATA)))    # (C, L)

    # conv weights -> (Cout, 25*Cin) matmul form; biases / BN params -> (C, 1) columns
    def wmat(w_hwio):                                                      # (5,5,Cin,Cout)
        return w_hwio.reshape(KSIZE * KSIZE * C, C).T                      # (Cout, 25*Cin)

    def ccol(v):
        return v.reshape(C, 1)

    # context Linear computed once; exact zeros when context is None
    if context is not None:
        eb = (context.astype(jnp.float32) @ params["wc"] + params["bc"]).T  # (C, B)
    else:
        eb = jnp.zeros((C, B), jnp.float32)

    # static per-batch valid-column selector (built on host; constant under jit)
    bsel_np = np.zeros((B, NOUT), np.float32)
    for b in range(B):
        for i in range(H):
            q0 = b * PLANE + (i + PAD) * WP + PAD
            bsel_np[b, q0:q0 + W] = 1.0
    bsel = jnp.asarray(bsel_np)

    kernel = functools.partial(_fused_forward_kernel, wp=WP, n_valid=N_VALID,
                               read_base=READ_BASE, store_off=OFF)

    def full(shape):
        return pl.BlockSpec(shape, lambda i: (0,) * len(shape))

    args = (xs,
            wmat(params["w1"]), ccol(params["b1"]),
            wmat(params["w2"]), ccol(params["b2"]),
            wmat(params["w3"]), ccol(params["b3"]),
            ccol(params["bn1_gamma"]), ccol(params["bn1_beta"]),
            ccol(params["bn2_gamma"]), ccol(params["bn2_beta"]),
            eb, bsel)

    out_flat = pl.pallas_call(
        kernel,
        out_shape=jax.ShapeDtypeStruct((C, NOUT), jnp.float32),
        grid=(1,),
        in_specs=[full(a.shape) for a in args],
        out_specs=full((C, NOUT)),
        scratch_shapes=[pltpu.VMEM((C, L), jnp.float32),                      # staging (padded input)
                        pltpu.VMEM((KSIZE * KSIZE * C, NOUT), jnp.float32)],  # im2col matrix
        compiler_params=pltpu.CompilerParams(dimension_semantics=("arbitrary",)),
    )(*args)

    # boundary glue back: flat frame -> NCHW, dropping halo / rounding columns
    y = out_flat[:, :DATA].reshape(C, B, HP, WP)[:, :, PAD:PAD + H, PAD:PAD + W]
    return jnp.transpose(y, (1, 0, 2, 3))
    # TODO(synk): BatchNorm running_mean/running_var buffer updates (training-mode side
    # effect of the PyTorch module, not part of its forward output) are not reproduced.


# ----------------------------------------------------------------------------- reference
def reference_forward(params, trigger_nchw, context):
    x = trigger_nchw.astype(jnp.float32)

    def conv(x, w_hwio, b):
        w_oihw = jnp.transpose(w_hwio, (3, 2, 0, 1))
        y = jax.lax.conv_general_dilated(x, w_oihw, (1, 1), [(PAD, PAD), (PAD, PAD)],
                                         dimension_numbers=("NCHW", "OIHW", "NCHW"))
        return y + b.reshape(1, -1, 1, 1)

    def bn_relu_ref(y, gamma, beta):
        mean = jnp.mean(y, axis=(0, 2, 3), keepdims=True)
        var = jnp.mean((y - mean) ** 2, axis=(0, 2, 3), keepdims=True)
        yn = (y - mean) / jnp.sqrt(var + BN_EPS)
        return jnp.maximum(yn * gamma.reshape(1, -1, 1, 1) + beta.reshape(1, -1, 1, 1), 0.0)

    y = conv(x, params["w1"], params["b1"])
    if context is not None:
        eb = context.astype(jnp.float32) @ params["wc"] + params["bc"]
        y = y + eb[:, :, None, None]
    y = bn_relu_ref(y, params["bn1_gamma"], params["bn1_beta"])
    y = conv(y, params["w2"], params["b2"])
    y = bn_relu_ref(y, params["bn2_gamma"], params["bn2_beta"])
    y = conv(y, params["w3"], params["b3"])
    return y


# ----------------------------------------------------------------------------- main
if __name__ == "__main__":
    B, C, H, W = 2, 8, 16, 16        # batch, n_channels, spatial
    CONTEXT_DIM = 10                 # len(CLASSES)

    key = jax.random.PRNGKey(0)
    keys = jax.random.split(key, 10)
    limc = 1.0 / np.sqrt(C * KSIZE * KSIZE)
    liml = 1.0 / np.sqrt(CONTEXT_DIM)

    params = {
        "w1": jax.random.uniform(keys[0], (KSIZE, KSIZE, C, C), jnp.float32, -limc, limc),
        "b1": jax.random.uniform(keys[1], (1, C), jnp.float32, -limc, limc),
        "wc": jax.random.uniform(keys[2], (CONTEXT_DIM, C), jnp.float32, -liml, liml),
        "bc": jax.random.uniform(keys[3], (1, C), jnp.float32, -liml, liml),
        "w2": jax.random.uniform(keys[4], (KSIZE, KSIZE, C, C), jnp.float32, -limc, limc),
        "b2": jax.random.uniform(keys[5], (1, C), jnp.float32, -limc, limc),
        "w3": jnp.zeros((KSIZE, KSIZE, C, C), jnp.float32),   # torch.nn.init.constant_(output.weight, 0)
        "b3": jax.random.uniform(keys[6], (1, C), jnp.float32, -limc, limc),
        "bn1_gamma": jnp.ones((1, C), jnp.float32),
        "bn1_beta": jnp.zeros((1, C), jnp.float32),
        "bn2_gamma": jnp.ones((1, C), jnp.float32),
        "bn2_beta": jnp.zeros((1, C), jnp.float32),
    }

    trigger = jax.random.normal(keys[7], (B, C, H, W), jnp.float32)
    labels = jax.random.randint(keys[8], (B,), 0, CONTEXT_DIM)
    context = jax.nn.one_hot(labels, CONTEXT_DIM, dtype=jnp.float32)

    fwd = jax.jit(conv_synthesizer_forward)

    # Correctness check against a pure-JAX reference (non-zero output weight so every
    # layer actually affects the result).
    params_val = dict(params)
    params_val["w3"] = jax.random.uniform(keys[9], (KSIZE, KSIZE, C, C), jnp.float32, -limc, limc)
    out_val = jax.block_until_ready(fwd(params_val, trigger, context))
    ref_val = jax.block_until_ready(reference_forward(params_val, trigger, context))
    np.testing.assert_allclose(np.asarray(out_val), np.asarray(ref_val), atol=1e-3, rtol=1e-3)

    # Module-faithful run (output conv weight == 0, as in __init__).
    out = jax.block_until_ready(fwd(params, trigger, context))
    assert out.shape == (B, C, H, W) and bool(jnp.all(jnp.isfinite(out)))

    print("KERNEL_OK")
</pallas_src>

<mosaic_0001>
module attributes {stable_mosaic.version = 11 : i64} {
  func.func @_fused_forward_kernel(%arg0: i32, %arg1: memref<8x1152xf32, #tpu.memory_space<vmem>>, %arg2: memref<8x200xf32, #tpu.memory_space<vmem>>, %arg3: memref<8x1xf32, #tpu.memory_space<vmem>>, %arg4: memref<8x200xf32, #tpu.memory_space<vmem>>, %arg5: memref<8x1xf32, #tpu.memory_space<vmem>>, %arg6: memref<8x200xf32, #tpu.memory_space<vmem>>, %arg7: memref<8x1xf32, #tpu.memory_space<vmem>>, %arg8: memref<8x1xf32, #tpu.memory_space<vmem>>, %arg9: memref<8x1xf32, #tpu.memory_space<vmem>>, %arg10: memref<8x1xf32, #tpu.memory_space<vmem>>, %arg11: memref<8x1xf32, #tpu.memory_space<vmem>>, %arg12: memref<8x2xf32, #tpu.memory_space<vmem>>, %arg13: memref<2x896xf32, #tpu.memory_space<vmem>>, %arg14: memref<8x896xf32, #tpu.memory_space<vmem>>, %arg15: memref<8x1152xf32, #tpu.memory_space<vmem>>, %arg16: memref<200x896xf32, #tpu.memory_space<vmem>>) attributes {dimension_semantics = [#tpu.dimension_semantics<arbitrary>], iteration_bounds = array<i64: 1>, scalar_prefetch = 0 : i64, scratch_operands = 2 : i64, tpu.core_type = #tpu.core_type<tc>, window_params = [{pipeline_mode = #tpu.pipeline_mode<synchronous>, transform_indices = @transform_0, window_bounds = array<i64: 8, 1152>}, {pipeline_mode = #tpu.pipeline_mode<synchronous>, transform_indices = @transform_1, window_bounds = array<i64: 8, 200>}, {pipeline_mode = #tpu.pipeline_mode<synchronous>, transform_indices = @transform_2, window_bounds = array<i64: 8, 1>}, {pipeline_mode = #tpu.pipeline_mode<synchronous>, transform_indices = @transform_3, window_bounds = array<i64: 8, 200>}, {pipeline_mode = #tpu.pipeline_mode<synchronous>, transform_indices = @transform_4, window_bounds = array<i64: 8, 1>}, {pipeline_mode = #tpu.pipeline_mode<synchronous>, transform_indices = @transform_5, window_bounds = array<i64: 8, 200>}, {pipeline_mode = #tpu.pipeline_mode<synchronous>, transform_indices = @transform_6, window_bounds = array<i64: 8, 1>}, {pipeline_mode = #tpu.pipeline_mode<synchronous>, transform_indices = @transform_7, window_bounds = array<i64: 8, 1>}, {pipeline_mode = #tpu.pipeline_mode<synchronous>, transform_indices = @transform_8, window_bounds = array<i64: 8, 1>}, {pipeline_mode = #tpu.pipeline_mode<synchronous>, transform_indices = @transform_9, window_bounds = array<i64: 8, 1>}, {pipeline_mode = #tpu.pipeline_mode<synchronous>, transform_indices = @transform_10, window_bounds = array<i64: 8, 1>}, {pipeline_mode = #tpu.pipeline_mode<synchronous>, transform_indices = @transform_11, window_bounds = array<i64: 8, 2>}, {pipeline_mode = #tpu.pipeline_mode<synchronous>, transform_indices = @transform_12, window_bounds = array<i64: 2, 896>}, {pipeline_mode = #tpu.pipeline_mode<synchronous>, transform_indices = @transform_13, window_bounds = array<i64: 8, 896>}]} {
    %c0 = arith.constant 0 : index
    %c0_0 = arith.constant 0 : index
    %0 = vector.load %arg13[%c0, %c0_0] : memref<2x896xf32, #tpu.memory_space<vmem>>, vector<2x896xf32>
    %cst = arith.constant dense<0.000000e+00> : vector<896xf32>
    %1 = vector.multi_reduction <add>, %0, %cst [0] : vector<2x896xf32> to vector<896xf32>
    %2 = vector.shape_cast %1 : vector<896xf32> to vector<1x896xf32>
    %c0_1 = arith.constant 0 : index
    %c86 = arith.constant 86 : index
    %3 = vector.load %arg1[%c0_1, %c86] : memref<8x1152xf32, #tpu.memory_space<vmem>>, vector<8x896xf32>
    %c0_2 = arith.constant 0 : index
    %c0_3 = arith.constant 0 : index
    %4 = vector.load %arg16[%c0_2, %c0_3] : memref<200x896xf32, #tpu.memory_space<vmem>>, vector<8x896xf32>
    tpu.vector_store %arg16[%c0_2, %c0_3], %3 {strides = array<i32>} : memref<200x896xf32, #tpu.memory_space<vmem>>, vector<8x896xf32>,
    %c0_4 = arith.constant 0 : index
    %c87 = arith.constant 87 : index
    %5 = vector.load %arg1[%c0_4, %c87] : memref<8x1152xf32, #tpu.memory_space<vmem>>, vector<8x896xf32>
    %c8 = arith.constant 8 : index
    %c0_5 = arith.constant 0 : index
    %6 = vector.load %arg16[%c8, %c0_5] : memref<200x896xf32, #tpu.memory_space<vmem>>, vector<8x896xf32>
    tpu.vector_store %arg16[%c8, %c0_5], %5 {strides = array<i32>} : memref<200x896xf32, #tpu.memory_space<vmem>>, vector<8x896xf32>,
    %c0_6 = arith.constant 0 : index
    %c88 = arith.constant 88 : index
    %7 = vector.load %arg1[%c0_6, %c88] : memref<8x1152xf32, #tpu.memory_space<vmem>>, vector<8x896xf32>
    %c16 = arith.constant 16 : index
    %c0_7 = arith.constant 0 : index
    %8 = vector.load %arg16[%c16, %c0_7] : memref<200x896xf32, #tpu.memory_space<vmem>>, vector<8x896xf32>
    tpu.vector_store %arg16[%c16, %c0_7], %7 {strides = array<i32>} : memref<200x896xf32, #tpu.memory_space<vmem>>, vector<8x896xf32>,
    %c0_8 = arith.constant 0 : index
    %c89 = arith.constant 89 : index
    %9 = vector.load %arg1[%c0_8, %c89] : memref<8x1152xf32, #tpu.memory_space<vmem>>, vector<8x896xf32>
    %c24 = arith.constant 24 : index
    %c0_9 = arith.constant 0 : index
    %10 = vector.load %arg16[%c24, %c0_9] : memref<200x896xf32, #tpu.memory_space<vmem>>, vector<8x896xf32>
    tpu.vector_store %arg16[%c24, %c0_9], %9 {strides = array<i32>} : memref<200x896xf32, #tpu.memory_space<vmem>>, vector<8x896xf32>,
    %c0_10 = arith.constant 0 : index
    %c90 = arith.constant 90 : index
    %11 = vector.load %arg1[%c0_10, %c90] : memref<8x1152xf32, #tpu.memory_space<vmem>>, vector<8x896xf32>
    %c32 = arith.constant 32 : index
    %c0_11 = arith.constant 0 : index
    %12 = vector.load %arg16[%c32, %c0_11] : memref<200x896xf32, #tpu.memory_space<vmem>>, vector<8x896xf32>
    tpu.vector_store %arg16[%c32, %c0_11], %11 {strides = array<i32>} : memref<200x896xf32, #tpu.memory_space<vmem>>, vector<8x896xf32>,
    %c0_12 = arith.constant 0 : index
    %c106 = arith.constant 106 : index
    %13 = vector.load %arg1[%c0_12, %c106] : memref<8x1152xf32, #tpu.memory_space<vmem>>, vector<8x896xf32>
    %c40 = arith.constant 40 : index
    %c0_13 = arith.constant 0 : index
    %14 = vector.load %arg16[%c40, %c0_13] : memref<200x896xf32, #tpu.memory_space<vmem>>, vector<8x896xf32>
    tpu.vector_store %arg16[%c40, %c0_13], %13 {strides = array<i32>} : memref<200x896xf32, #tpu.memory_space<vmem>>, vector<8x896xf32>,
    %c0_14 = arith.constant 0 : index
    %c107 = arith.constant 107 : index
    %15 = vector.load %arg1[%c0_14, %c107] : memref<8x1152xf32, #tpu.memory_space<vmem>>, vector<8x896xf32>
    %c48 = arith.constant 48 : index
    %c0_15 = arith.constant 0 : index
    %16 = vector.load %arg16[%c48, %c0_15] : memref<200x896xf32, #tpu.memory_space<vmem>>, vector<8x896xf32>
    tpu.vector_store %arg16[%c48, %c0_15], %15 {strides = array<i32>} : memref<200x896xf32, #tpu.memory_space<vmem>>, vector<8x896xf32>,
    %c0_16 = arith.constant 0 : index
    %c108 = arith.constant 108 : index
    %17 = vector.load %arg1[%c0_16, %c108] : memref<8x1152xf32, #tpu.memory_space<vmem>>, vector<8x896xf32>
    %c56 = arith.constant 56 : index
    %c0_17 = arith.constant 0 : index
    %18 = vector.load %arg16[%c56, %c0_17] : memref<200x896xf32, #tpu.memory_space<vmem>>, vector<8x896xf32>
    tpu.vector_store %arg16[%c56, %c0_17], %17 {strides = array<i32>} : memref<200x896xf32, #tpu.memory_space<vmem>>, vector<8x896xf32>,
    %c0_18 = arith.constant 0 : index
    %c109 = arith.constant 109 : index
    %19 = vector.load %arg1[%c0_18, %c109] : memref<8x1152xf32, #tpu.memory_space<vmem>>, vector<8x896xf32>
    %c64 = arith.constant 64 : index
    %c0_19 = arith.constant 0 : index
    %20 = vector.load %arg16[%c64, %c0_19] : memref<200x896xf32, #tpu.memory_space<vmem>>, vector<8x896xf32>
    tpu.vector_store %arg16[%c64, %c0_19], %19 {strides = array<i32>} : memref<200x896xf32, #tpu.memory_space<vmem>>, vector<8x896xf32>,
    %c0_20 = arith.constant 0 : index
    %c110 = arith.constant 110 : index
    %21 = vector.load %arg1[%c0_20, %c110] : memref<8x1152xf32, #tpu.memory_space<vmem>>, vector<8x896xf32>
    %c72 = arith.constant 72 : index
    %c0_21 = arith.constant 0 : index
    %22 = vector.load %arg16[%c72, %c0_21] : memref<200x896xf32, #tpu.memory_space<vmem>>, vector<8x896xf32>
    tpu.vector_store %arg16[%c72, %c0_21], %21 {strides = array<i32>} : memref<200x896xf32, #tpu.memory_space<vmem>>, vector<8x896xf32>,
    %c0_22 = arith.constant 0 : index
    %c126 = arith.constant 126 : index
    %23 = vector.load %arg1[%c0_22, %c126] : memref<8x1152xf32, #tpu.memory_space<vmem>>, vector<8x896xf32>
    %c80 = arith.constant 80 : index
    %c0_23 = arith.constant 0 : index
    %24 = vector.load %arg16[%c80, %c0_23] : memref<200x896xf32, #tpu.memory_space<vmem>>, vector<8x896xf32>
    tpu.vector_store %arg16[%c80, %c0_23], %23 {strides = array<i32>} : memref<200x896xf32, #tpu.memory_space<vmem>>, vector<8x896xf32>,
    %c0_24 = arith.constant 0 : index
    %c127 = arith.constant 127 : index
    %25 = vector.load %arg1[%c0_24, %c127] : memref<8x1152xf32, #tpu.memory_space<vmem>>, vector<8x896xf32>
    %c88_25 = arith.constant 88 : index
    %c0_26 = arith.constant 0 : index
    %26 = vector.load %arg16[%c88_25, %c0_26] : memref<200x896xf32, #tpu.memory_space<vmem>>, vector<8x896xf32>
    tpu.vector_store %arg16[%c88_25, %c0_26], %25 {strides = array<i32>} : memref<200x896xf32, #tpu.memory_space<vmem>>, vector<8x896xf32>,
    %c0_27 = arith.constant 0 : index
    %c128 = arith.constant 128 : index
    %27 = vector.load %arg1[%c0_27, %c128] : memref<8x1152xf32, #tpu.memory_space<vmem>>, vector<8x896xf32>
    %c96 = arith.constant 96 : index
    %c0_28 = arith.constant 0 : index
    %28 = vector.load %arg16[%c96, %c0_28] : memref<200x896xf32, #tpu.memory_space<vmem>>, vector<8x896xf32>
    tpu.vector_store %arg16[%c96, %c0_28], %27 {strides = array<i32>} : memref<200x896xf32, #tpu.memory_space<vmem>>, vector<8x896xf32>,
    %c0_29 = arith.constant 0 : index
    %c129 = arith.constant 129 : index
    %29 = vector.load %arg1[%c0_29, %c129] : memref<8x1152xf32, #tpu.memory_space<vmem>>, vector<8x896xf32>
    %c104 = arith.constant 104 : index
    %c0_30 = arith.constant 0 : index
    %30 = vector.load %arg16[%c104, %c0_30] : memref<200x896xf32, #tpu.memory_space<vmem>>, vector<8x896xf32>
    tpu.vector_store %arg16[%c104, %c0_30], %29 {strides = array<i32>} : memref<200x896xf32, #tpu.memory_space<vmem>>, vector<8x896xf32>,
    %c0_31 = arith.constant 0 : index
    %c130 = arith.constant 130 : index
    %31 = vector.load %arg1[%c0_31, %c130] : memref<8x1152xf32, #tpu.memory_space<vmem>>, vector<8x896xf32>
    %c112 = arith.constant 112 : index
    %c0_32 = arith.constant 0 : index
    %32 = vector.load %arg16[%c112, %c0_32] : memref<200x896xf32, #tpu.memory_space<vmem>>, vector<8x896xf32>
    tpu.vector_store %arg16[%c112, %c0_32], %31 {strides = array<i32>} : memref<200x896xf32, #tpu.memory_space<vmem>>, vector<8x896xf32>,
    %c0_33 = arith.constant 0 : index
    %c146 = arith.constant 146 : index
    %33 = vector.load %arg1[%c0_33, %c146] : memref<8x1152xf32, #tpu.memory_space<vmem>>, vector<8x896xf32>
    %c120 = arith.constant 120 : index
    %c0_34 = arith.constant 0 : index
    %34 = vector.load %arg16[%c120, %c0_34] : memref<200x896xf32, #tpu.memory_space<vmem>>, vector<8x896xf32>
    tpu.vector_store %arg16[%c120, %c0_34], %33 {strides = array<i32>} : memref<200x896xf32, #tpu.memory_space<vmem>>, vector<8x896xf32>,
    %c0_35 = arith.constant 0 : index
    %c147 = arith.constant 147 : index
    %35 = vector.load %arg1[%c0_35, %c147] : memref<8x1152xf32, #tpu.memory_space<vmem>>, vector<8x896xf32>
    %c128_36 = arith.constant 128 : index
    %c0_37 = arith.constant 0 : index
    %36 = vector.load %arg16[%c128_36, %c0_37] : memref<200x896xf32, #tpu.memory_space<vmem>>, vector<8x896xf32>
    tpu.vector_store %arg16[%c128_36, %c0_37], %35 {strides = array<i32>} : memref<200x896xf32, #tpu.memory_space<vmem>>, vector<8x896xf32>,
    %c0_38 = arith.constant 0 : index
    %c148 = arith.constant 148 : index
    %37 = vector.load %arg1[%c0_38, %c148] : memref<8x1152xf32, #tpu.memory_space<vmem>>, vector<8x896xf32>
    %c136 = arith.constant 136 : index
    %c0_39 = arith.constant 0 : index
    %38 = vector.load %arg16[%c136, %c0_39] : memref<200x896xf32, #tpu.memory_space<vmem>>, vector<8x896xf32>
    tpu.vector_store %arg16[%c136, %c0_39], %37 {strides = array<i32>} : memref<200x896xf32, #tpu.memory_space<vmem>>, vector<8x896xf32>,
    %c0_40 = arith.constant 0 : index
    %c149 = arith.constant 149 : index
    %39 = vector.load %arg1[%c0_40, %c149] : memref<8x1152xf32, #tpu.memory_space<vmem>>, vector<8x896xf32>
    %c144 = arith.constant 144 : index
    %c0_41 = arith.constant 0 : index
    %40 = vector.load %arg16[%c144, %c0_41] : memref<200x896xf32, #tpu.memory_space<vmem>>, vector<8x896xf32>
    tpu.vector_store %arg16[%c144, %c0_41], %39 {strides = array<i32>} : memref<200x896xf32, #tpu.memory_space<vmem>>, vector<8x896xf32>,
    %c0_42 = arith.constant 0 : index
    %c150 = arith.constant 150 : index
    %41 = vector.load %arg1[%c0_42, %c150] : memref<8x1152xf32, #tpu.memory_space<vmem>>, vector<8x896xf32>
    %c152 = arith.constant 152 : index
    %c0_43 = arith.constant 0 : index
    %42 = vector.load %arg16[%c152, %c0_43] : memref<200x896xf32, #tpu.memory_space<vmem>>, vector<8x896xf32>
    tpu.vector_store %arg16[%c152, %c0_43], %41 {strides = array<i32>} : memref<200x896xf32, #tpu.memory_space<vmem>>, vector<8x896xf32>,
    %c0_44 = arith.constant 0 : index
    %c166 = arith.constant 166 : index
    %43 = vector.load %arg1[%c0_44, %c166] : memref<8x1152xf32, #tpu.memory_space<vmem>>, vector<8x896xf32>
    %c160 = arith.constant 160 : index
    %c0_45 = arith.constant 0 : index
    %44 = vector.load %arg16[%c160, %c0_45] : memref<200x896xf32, #tpu.memory_space<vmem>>, vector<8x896xf32>
    tpu.vector_store %arg16[%c160, %c0_45], %43 {strides = array<i32>} : memref<200x896xf32, #tpu.memory_space<vmem>>, vector<8x896xf32>,
    %c0_46 = arith.constant 0 : index
    %c167 = arith.constant 167 : index
    %45 = vector.load %arg1[%c0_46, %c167] : memref<8x1152xf32, #tpu.memory_space<vmem>>, vector<8x896xf32>
    %c168 = arith.constant 168 : index
    %c0_47 = arith.constant 0 : index
    %46 = vector.load %arg16[%c168, %c0_47] : memref<200x896xf32, #tpu.memory_space<vmem>>, vector<8x896xf32>
    tpu.vector_store %arg16[%c168, %c0_47], %45 {strides = array<i32>} : memref<200x896xf32, #tpu.memory_space<vmem>>, vector<8x896xf32>,
    %c0_48 = arith.constant 0 : index
    %c168_49 = arith.constant 168 : index
    %47 = vector.load %arg1[%c0_48, %c168_49] : memref<8x1152xf32, #tpu.memory_space<vmem>>, vector<8x896xf32>
    %c176 = arith.constant 176 : index
    %c0_50 = arith.constant 0 : index
    %48 = vector.load %arg16[%c176, %c0_50] : memref<200x896xf32, #tpu.memory_space<vmem>>, vector<8x896xf32>
    tpu.vector_store %arg16[%c176, %c0_50], %47 {strides = array<i32>} : memref<200x896xf32, #tpu.memory_space<vmem>>, vector<8x896xf32>,
    %c0_51 = arith.constant 0 : index
    %c169 = arith.constant 169 : index
    %49 = vector.load %arg1[%c0_51, %c169] : memref<8x1152xf32, #tpu.memory_space<vmem>>, vector<8x896xf32>
    %c184 = arith.constant 184 : index
    %c0_52 = arith.constant 0 : index
    %50 = vector.load %arg16[%c184, %c0_52] : memref<200x896xf32, #tpu.memory_space<vmem>>, vector<8x896xf32>
    tpu.vector_store %arg16[%c184, %c0_52], %49 {strides = array<i32>} : memref<200x896xf32, #tpu.memory_space<vmem>>, vector<8x896xf32>,
    %c0_53 = arith.constant 0 : index
    %c170 = arith.constant 170 : index
    %51 = vector.load %arg1[%c0_53, %c170] : memref<8x1152xf32, #tpu.memory_space<vmem>>, vector<8x896xf32>
    %c192 = arith.constant 192 : index
    %c0_54 = arith.constant 0 : index
    %52 = vector.load %arg16[%c192, %c0_54] : memref<200x896xf32, #tpu.memory_space<vmem>>, vector<8x896xf32>
    tpu.vector_store %arg16[%c192, %c0_54], %51 {strides = array<i32>} : memref<200x896xf32, #tpu.memory_space<vmem>>, vector<8x896xf32>,
    %c0_55 = arith.constant 0 : index
    %c0_56 = arith.constant 0 : index
    %53 = vector.load %arg2[%c0_55, %c0_56] : memref<8x200xf32, #tpu.memory_space<vmem>>, vector<8x200xf32>
    %c0_57 = arith.constant 0 : index
    %c0_58 = arith.constant 0 : index
    %54 = vector.load %arg16[%c0_57, %c0_58] : memref<200x896xf32, #tpu.memory_space<vmem>>, vector<200x896xf32>
    %cst_59 = arith.constant dense<0.000000e+00> : vector<8x896xf32>
    %55 = tpu.matmul %53, %54, %cst_59 {dimension_numbers = #tpu.dot_dimension_numbers<[1], [0], [0], [1], [0, 0, 1, 1], [], []>} : vector<8x200xf32>, vector<200x896xf32>, vector<8x896xf32> -> vector<8x896xf32>
    %c0_60 = arith.constant 0 : index
    %c0_61 = arith.constant 0 : index
    %56 = vector.load %arg3[%c0_60, %c0_61] : memref<8x1xf32, #tpu.memory_space<vmem>>, vector<8x1xf32>
    %57 = vector.broadcast %56 : vector<8x1xf32> to vector<8x896xf32>
    %58 = arith.addf %55, %57 : vector<8x896xf32>
    %c0_62 = arith.constant 0 : index
    %c0_63 = arith.constant 0 : index
    %59 = vector.load %arg12[%c0_62, %c0_63] : memref<8x2xf32, #tpu.memory_space<vmem>>, vector<8x2xf32>
    %60 = vector.extract_strided_slice %59 {offsets = [0, 0], sizes = [8, 1], strides = [1, 1]} : vector<8x2xf32> to vector<8x1xf32>
    %61 = vector.extract_strided_slice %0 {offsets = [0, 0], sizes = [1, 896], strides = [1, 1]} : vector<2x896xf32> to vector<1x896xf32>
    %62 = vector.broadcast %60 : vector<8x1xf32> to vector<8x896xf32>
    %63 = vector.broadcast %61 : vector<1x896xf32> to vector<8x896xf32>
    %64 = arith.mulf %62, %63 : vector<8x896xf32>
    %65 = arith.addf %58, %64 : vector<8x896xf32>
    %66 = vector.extract_strided_slice %59 {offsets = [0, 1], sizes = [8, 1], strides = [1, 1]} : vector<8x2xf32> to vector<8x1xf32>
    %67 = vector.extract_strided_slice %0 {offsets = [1, 0], sizes = [1, 896], strides = [1, 1]} : vector<2x896xf32> to vector<1x896xf32>
    %68 = vector.broadcast %66 : vector<8x1xf32> to vector<8x896xf32>
    %69 = vector.broadcast %67 : vector<1x896xf32> to vector<8x896xf32>
    %70 = arith.mulf %68, %69 : vector<8x896xf32>
    %71 = arith.addf %65, %70 : vector<8x896xf32>
    %72 = vector.broadcast %2 : vector<1x896xf32> to vector<8x896xf32>
    %73 = arith.mulf %71, %72 : vector<8x896xf32>
    %cst_64 = arith.constant dense<0.000000e+00> : vector<8xf32>
    %74 = vector.multi_reduction <add>, %73, %cst_64 [1] : vector<8x896xf32> to vector<8xf32>
    %75 = vector.shape_cast %74 : vector<8xf32> to vector<8x1xf32>
    %cst_65 = arith.constant 0.001953125 : f32
    %76 = vector.broadcast %cst_65 : f32 to vector<8x1xf32>
    %77 = arith.mulf %75, %76 : vector<8x1xf32>
    %78 = vector.broadcast %77 : vector<8x1xf32> to vector<8x896xf32>
    %79 = arith.subf %71, %78 : vector<8x896xf32>
    %80 = vector.broadcast %2 : vector<1x896xf32> to vector<8x896xf32>
    %81 = arith.mulf %79, %80 : vector<8x896xf32>
    %82 = arith.mulf %81, %81 : vector<8x896xf32>
    %cst_66 = arith.constant dense<0.000000e+00> : vector<8xf32>
    %83 = vector.multi_reduction <add>, %82, %cst_66 [1] : vector<8x896xf32> to vector<8xf32>
    %84 = vector.shape_cast %83 : vector<8xf32> to vector<8x1xf32>
    %cst_67 = arith.constant 0.001953125 : f32
    %85 = vector.broadcast %cst_67 : f32 to vector<8x1xf32>
    %86 = arith.mulf %84, %85 : vector<8x1xf32>
    %c0_68 = arith.constant 0 : index
    %c0_69 = arith.constant 0 : index
    %87 = vector.load %arg8[%c0_68, %c0_69] : memref<8x1xf32, #tpu.memory_space<vmem>>, vector<8x1xf32>
    %cst_70 = arith.constant 9.99999974E-6 : f32
    %88 = vector.broadcast %cst_70 : f32 to vector<8x1xf32>
    %89 = arith.addf %86, %88 : vector<8x1xf32>
    %90 = math.rsqrt %89 : vector<8x1xf32>
    %91 = arith.mulf %87, %90 : vector<8x1xf32>
    %c0_71 = arith.constant 0 : index
    %c0_72 = arith.constant 0 : index
    %92 = vector.load %arg9[%c0_71, %c0_72] : memref<8x1xf32, #tpu.memory_space<vmem>>, vector<8x1xf32>
    %93 = arith.mulf %77, %91 : vector<8x1xf32>
    %94 = arith.subf %92, %93 : vector<8x1xf32>
    %95 = vector.broadcast %91 : vector<8x1xf32> to vector<8x896xf32>
    %96 = arith.mulf %71, %95 : vector<8x896xf32>
    %97 = vector.broadcast %94 : vector<8x1xf32> to vector<8x896xf32>
    %98 = arith.addf %96, %97 : vector<8x896xf32>
    %cst_73 = arith.constant 0.000000e+00 : f32
    %99 = vector.broadcast %cst_73 : f32 to vector<8x896xf32>
    %100 = arith.maximumf %98, %99 : vector<8x896xf32>
    %101 = vector.broadcast %2 : vector<1x896xf32> to vector<8x896xf32>
    %102 = arith.mulf %100, %101 : vector<8x896xf32>
    %cst_74 = arith.constant 0.000000e+00 : f32
    %103 = vector.broadcast %cst_74 : f32 to vector<8x1152xf32>
    %c0_75 = arith.constant 0 : index
    %c0_76 = arith.constant 0 : index
    %104 = vector.load %arg15[%c0_75, %c0_76] : memref<8x1152xf32, #tpu.memory_space<vmem>>, vector<8x1152xf32>
    tpu.vector_store %arg15[%c0_75, %c0_76], %103 {strides = array<i32>} : memref<8x1152xf32, #tpu.memory_space<vmem>>, vector<8x1152xf32>,
    %c0_77 = arith.constant 0 : index
    %c128_78 = arith.constant 128 : index
    %105 = vector.load %arg15[%c0_77, %c128_78] : memref<8x1152xf32, #tpu.memory_space<vmem>>, vector<8x896xf32>
    tpu.vector_store %arg15[%c0_77, %c128_78], %102 {strides = array<i32>} : memref<8x1152xf32, #tpu.memory_space<vmem>>, vector<8x896xf32>,
    %c0_79 = arith.constant 0 : index
    %c86_80 = arith.constant 86 : index
    %106 = vector.load %arg15[%c0_79, %c86_80] : memref<8x1152xf32, #tpu.memory_space<vmem>>, vector<8x896xf32>
    %c0_81 = arith.constant 0 : index
    %c0_82 = arith.constant 0 : index
    %107 = vector.load %arg16[%c0_81, %c0_82] : memref<200x896xf32, #tpu.memory_space<vmem>>, vector<8x896xf32>
    tpu.vector_store %arg16[%c0_81, %c0_82], %106 {strides = array<i32>} : memref<200x896xf32, #tpu.memory_space<vmem>>, vector<8x896xf32>,
    %c0_83 = arith.constant 0 : index
    %c87_84 = arith.constant 87 : index
    %108 = vector.load %arg15[%c0_83, %c87_84] : memref<8x1152xf32, #tpu.memory_space<vmem>>, vector<8x896xf32>
    %c8_85 = arith.constant 8 : index
    %c0_86 = arith.constant 0 : index
    %109 = vector.load %arg16[%c8_85, %c0_86] : memref<200x896xf32, #tpu.memory_space<vmem>>, vector<8x896xf32>
    tpu.vector_store %arg16[%c8_85, %c0_86], %108 {strides = array<i32>} : memref<200x896xf32, #tpu.memory_space<vmem>>, vector<8x896xf32>,
    %c0_87 = arith.constant 0 : index
    %c88_88 = arith.constant 88 : index
    %110 = vector.load %arg15[%c0_87, %c88_88] : memref<8x1152xf32, #tpu.memory_space<vmem>>, vector<8x896xf32>
    %c16_89 = arith.constant 16 : index
    %c0_90 = arith.constant 0 : index
    %111 = vector.load %arg16[%c16_89, %c0_90] : memref<200x896xf32, #tpu.memory_space<vmem>>, vector<8x896xf32>
    tpu.vector_store %arg16[%c16_89, %c0_90], %110 {strides = array<i32>} : memref<200x896xf32, #tpu.memory_space<vmem>>, vector<8x896xf32>,
    %c0_91 = arith.constant 0 : index
    %c89_92 = arith.constant 89 : index
    %112 = vector.load %arg15[%c0_91, %c89_92] : memref<8x1152xf32, #tpu.memory_space<vmem>>, vector<8x896xf32>
    %c24_93 = arith.constant 24 : index
    %c0_94 = arith.constant 0 : index
    %113 = vector.load %arg16[%c24_93, %c0_94] : memref<200x896xf32, #tpu.memory_space<vmem>>, vector<8x896xf32>
    tpu.vector_store %arg16[%c24_93, %c0_94], %112 {strides = array<i32>} : memref<200x896xf32, #tpu.memory_space<vmem>>, vector<8x896xf32>,
    %c0_95 = arith.constant 0 : index
    %c90_96 = arith.constant 90 : index
    %114 = vector.load %arg15[%c0_95, %c90_96] : memref<8x1152xf32, #tpu.memory_space<vmem>>, vector<8x896xf32>
    %c32_97 = arith.constant 32 : index
    %c0_98 = arith.constant 0 : index
    %115 = vector.load %arg16[%c32_97, %c0_98] : memref<200x896xf32, #tpu.memory_space<vmem>>, vector<8x896xf32>
    tpu.vector_store %arg16[%c32_97, %c0_98], %114 {strides = array<i32>} : memref<200x896xf32, #tpu.memory_space<vmem>>, vector<8x896xf32>,
    %c0_99 = arith.constant 0 : index
    %c106_100 = arith.constant 106 : index
    %116 = vector.load %arg15[%c0_99, %c106_100] : memref<8x1152xf32, #tpu.memory_space<vmem>>, vector<8x896xf32>
    %c40_101 = arith.constant 40 : index
    %c0_102 = arith.constant 0 : index
    %117 = vector.load %arg16[%c40_101, %c0_102] : memref<200x896xf32, #tpu.memory_space<vmem>>, vector<8x896xf32>
    tpu.vector_store %arg16[%c40_101, %c0_102], %116 {strides = array<i32>} : memref<200x896xf32, #tpu.memory_space<vmem>>, vector<8x896xf32>,
    %c0_103 = arith.constant 0 : index
    %c107_104 = arith.constant 107 : index
    %118 = vector.load %arg15[%c0_103, %c107_104] : memref<8x1152xf32, #tpu.memory_space<vmem>>, vector<8x896xf32>
    %c48_105 = arith.constant 48 : index
    %c0_106 = arith.constant 0 : index
    %119 = vector.load %arg16[%c48_105, %c0_106] : memref<200x896xf32, #tpu.memory_space<vmem>>, vector<8x896xf32>
    tpu.vector_store %arg16[%c48_105, %c0_106], %118 {strides = array<i32>} : memref<200x896xf32, #tpu.memory_space<vmem>>, vector<8x896xf32>,
    %c0_107 = arith.constant 0 : index
    %c108_108 = arith.constant 108 : index
    %120 = vector.load %arg15[%c0_107, %c108_108] : memref<8x1152xf32, #tpu.memory_space<vmem>>, vector<8x896xf32>
    %c56_109 = arith.constant 56 : index
    %c0_110 = arith.constant 0 : index
    %121 = vector.load %arg16[%c56_109, %c0_110] : memref<200x896xf32, #tpu.memory_space<vmem>>, vector<8x896xf32>
    tpu.vector_store %arg16[%c56_109, %c0_110], %120 {strides = array<i32>} : memref<200x896xf32, #tpu.memory_space<vmem>>, vector<8x896xf32>,
    %c0_111 = arith.constant 0 : index
    %c109_112 = arith.constant 109 : index
    %122 = vector.load %arg15[%c0_111, %c109_112] : memref<8x1152xf32, #tpu.memory_space<vmem>>, vector<8x896xf32>
    %c64_113 = arith.constant 64 : index
    %c0_114 = arith.constant 0 : index
    %123 = vector.load %arg16[%c64_113, %c0_114] : memref<200x896xf32, #tpu.memory_space<vmem>>, vector<8x896xf32>
    tpu.vector_store %arg16[%c64_113, %c0_114], %122 {strides = array<i32>} : memref<200x896xf32, #tpu.memory_space<vmem>>, vector<8x896xf32>,
    %c0_115 = arith.constant 0 : index
    %c110_116 = arith.constant 110 : index
    %124 = vector.load %arg15[%c0_115, %c110_116] : memref<8x1152xf32, #tpu.memory_space<vmem>>, vector<8x896xf32>
    %c72_117 = arith.constant 72 : index
    %c0_118 = arith.constant 0 : index
    %125 = vector.load %arg16[%c72_117, %c0_118] : memref<200x896xf32, #tpu.memory_space<vmem>>, vector<8x896xf32>
    tpu.vector_store %arg16[%c72_117, %c0_118], %124 {strides = array<i32>} : memref<200x896xf32, #tpu.memory_space<vmem>>, vector<8x896xf32>,
    %c0_119 = arith.constant 0 : index
    %c126_120 = arith.constant 126 : index
    %126 = vector.load %arg15[%c0_119, %c126_120] : memref<8x1152xf32, #tpu.memory_space<vmem>>, vector<8x896xf32>
    %c80_121 = arith.constant 80 : index
    %c0_122 = arith.constant 0 : index
    %127 = vector.load %arg16[%c80_121, %c0_122] : memref<200x896xf32, #tpu.memory_space<vmem>>, vector<8x896xf32>
    tpu.vector_store %arg16[%c80_121, %c0_122], %126 {strides = array<i32>} : memref<200x896xf32, #tpu.memory_space<vmem>>, vector<8x896xf32>,
    %c0_123 = arith.constant 0 : index
    %c127_124 = arith.constant 127 : index
    %128 = vector.load %arg15[%c0_123, %c127_124] : memref<8x1152xf32, #tpu.memory_space<vmem>>, vector<8x896xf32>
    %c88_125 = arith.constant 88 : index
    %c0_126 = arith.constant 0 : index
    %129 = vector.load %arg16[%c88_125, %c0_126] : memref<200x896xf32, #tpu.memory_space<vmem>>, vector<8x896xf32>
    tpu.vector_store %arg16[%c88_125, %c0_126], %128 {strides = array<i32>} : memref<200x896xf32, #tpu.memory_space<vmem>>, vector<8x896xf32>,
    %c0_127 = arith.constant 0 : index
    %c128_128 = arith.constant 128 : index
    %130 = vector.load %arg15[%c0_127, %c128_128] : memref<8x1152xf32, #tpu.memory_space<vmem>>, vector<8x896xf32>
    %c96_129 = arith.constant 96 : index
    %c0_130 = arith.constant 0 : index
    %131 = vector.load %arg16[%c96_129, %c0_130] : memref<200x896xf32, #tpu.memory_space<vmem>>, vector<8x896xf32>
    tpu.vector_store %arg16[%c96_129, %c0_130], %130 {strides = array<i32>} : memref<200x896xf32, #tpu.memory_space<vmem>>, vector<8x896xf32>,
    %c0_131 = arith.constant 0 : index
    %c129_132 = arith.constant 129 : index
    %132 = vector.load %arg15[%c0_131, %c129_132] : memref<8x1152xf32, #tpu.memory_space<vmem>>, vector<8x896xf32>
    %c104_133 = arith.constant 104 : index
    %c0_134 = arith.constant 0 : index
    %133 = vector.load %arg16[%c104_133, %c0_134] : memref<200x896xf32, #tpu.memory_space<vmem>>, vector<8x896xf32>
    tpu.vector_store %arg16[%c104_133, %c0_134], %132 {strides = array<i32>} : memref<200x896xf32, #tpu.memory_space<vmem>>, vector<8x896xf32>,
    %c0_135 = arith.constant 0 : index
    %c130_136 = arith.constant 130 : index
    %134 = vector.load %arg15[%c0_135, %c130_136] : memref<8x1152xf32, #tpu.memory_space<vmem>>, vector<8x896xf32>
    %c112_137 = arith.constant 112 : index
    %c0_138 = arith.constant 0 : index
    %135 = vector.load %arg16[%c112_137, %c0_138] : memref<200x896xf32, #tpu.memory_space<vmem>>, vector<8x896xf32>
    tpu.vector_store %arg16[%c112_137, %c0_138], %134 {strides = array<i32>} : memref<200x896xf32, #tpu.memory_space<vmem>>, vector<8x896xf32>,
    %c0_139 = arith.constant 0 : index
    %c146_140 = arith.constant 146 : index
    %136 = vector.load %arg15[%c0_139, %c146_140] : memref<8x1152xf32, #tpu.memory_space<vmem>>, vector<8x896xf32>
    %c120_141 = arith.constant 120 : index
    %c0_142 = arith.constant 0 : index
    %137 = vector.load %arg16[%c120_141, %c0_142] : memref<200x896xf32, #tpu.memory_space<vmem>>, vector<8x896xf32>
    tpu.vector_store %arg16[%c120_141, %c0_142], %136 {strides = array<i32>} : memref<200x896xf32, #tpu.memory_space<vmem>>, vector<8x896xf32>,
    %c0_143 = arith.constant 0 : index
    %c147_144 = arith.constant 147 : index
    %138 = vector.load %arg15[%c0_143, %c147_144] : memref<8x1152xf32, #tpu.memory_space<vmem>>, vector<8x896xf32>
    %c128_145 = arith.constant 128 : index
    %c0_146 = arith.constant 0 : index
    %139 = vector.load %arg16[%c128_145, %c0_146] : memref<200x896xf32, #tpu.memory_space<vmem>>, vector<8x896xf32>
    tpu.vector_store %arg16[%c128_145, %c0_146], %138 {strides = array<i32>} : memref<200x896xf32, #tpu.memory_space<vmem>>, vector<8x896xf32>,
    %c0_147 = arith.constant 0 : index
    %c148_148 = arith.constant 148 : index
    %140 = vector.load %arg15[%c0_147, %c148_148] : memref<8x1152xf32, #tpu.memory_space<vmem>>, vector<8x896xf32>
    %c136_149 = arith.constant 136 : index
    %c0_150 = arith.constant 0 : index
    %141 = vector.load %arg16[%c136_149, %c0_150] : memref<200x896xf32, #tpu.memory_space<vmem>>, vector<8x896xf32>
    tpu.vector_store %arg16[%c136_149, %c0_150], %140 {strides = array<i32>} : memref<200x896xf32, #tpu.memory_space<vmem>>, vector<8x896xf32>,
    %c0_151 = arith.constant 0 : index
    %c149_152 = arith.constant 149 : index
    %142 = vector.load %arg15[%c0_151, %c149_152] : memref<8x1152xf32, #tpu.memory_space<vmem>>, vector<8x896xf32>
    %c144_153 = arith.constant 144 : index
    %c0_154 = arith.constant 0 : index
    %143 = vector.load %arg16[%c144_153, %c0_154] : memref<200x896xf32, #tpu.memory_space<vmem>>, vector<8x896xf32>
    tpu.vector_store %arg16[%c144_153, %c0_154], %142 {strides = array<i32>} : memref<200x896xf32, #tpu.memory_space<vmem>>, vector<8x896xf32>,
    %c0_155 = arith.constant 0 : index
    %c150_156 = arith.constant 150 : index
    %144 = vector.load %arg15[%c0_155, %c150_156] : memref<8x1152xf32, #tpu.memory_space<vmem>>, vector<8x896xf32>
    %c152_157 = arith.constant 152 : index
    %c0_158 = arith.constant 0 : index
    %145 = vector.load %arg16[%c152_157, %c0_158] : memref<200x896xf32, #tpu.memory_space<vmem>>, vector<8x896xf32>
    tpu.vector_store %arg16[%c152_157, %c0_158], %144 {strides = array<i32>} : memref<200x896xf32, #tpu.memory_space<vmem>>, vector<8x896xf32>,
    %c0_159 = arith.constant 0 : index
    %c166_160 = arith.constant 166 : index
    %146 = vector.load %arg15[%c0_159, %c166_160] : memref<8x1152xf32, #tpu.memory_space<vmem>>, vector<8x896xf32>
    %c160_161 = arith.constant 160 : index
    %c0_162 = arith.constant 0 : index
    %147 = vector.load %arg16[%c160_161, %c0_162] : memref<200x896xf32, #tpu.memory_space<vmem>>, vector<8x896xf32>
    tpu.vector_store %arg16[%c160_161, %c0_162], %146 {strides = array<i32>} : memref<200x896xf32, #tpu.memory_space<vmem>>, vector<8x896xf32>,
    %c0_163 = arith.constant 0 : index
    %c167_164 = arith.constant 167 : index
    %148 = vector.load %arg15[%c0_163, %c167_164] : memref<8x1152xf32, #tpu.memory_space<vmem>>, vector<8x896xf32>
    %c168_165 = arith.constant 168 : index
    %c0_166 = arith.constant 0 : index
    %149 = vector.load %arg16[%c168_165, %c0_166] : memref<200x896xf32, #tpu.memory_space<vmem>>, vector<8x896xf32>
    tpu.vector_store %arg16[%c168_165, %c0_166], %148 {strides = array<i32>} : memref<200x896xf32, #tpu.memory_space<vmem>>, vector<8x896xf32>,
    %c0_167 = arith.constant 0 : index
    %c168_168 = arith.constant 168 : index
    %150 = vector.load %arg15[%c0_167, %c168_168] : memref<8x1152xf32, #tpu.memory_space<vmem>>, vector<8x896xf32>
    %c176_169 = arith.constant 176 : index
    %c0_170 = arith.constant 0 : index
    %151 = vector.load %arg16[%c176_169, %c0_170] : memref<200x896xf32, #tpu.memory_space<vmem>>, vector<8x896xf32>
    tpu.vector_store %arg16[%c176_169, %c0_170], %150 {strides = array<i32>} : memref<200x896xf32, #tpu.memory_space<vmem>>, vector<8x896xf32>,
    %c0_171 = arith.constant 0 : index
    %c169_172 = arith.constant 169 : index
    %152 = vector.load %arg15[%c0_171, %c169_172] : memref<8x1152xf32, #tpu.memory_space<vmem>>, vector<8x896xf32>
    %c184_173 = arith.constant 184 : index
    %c0_174 = arith.constant 0 : index
    %153 = vector.load %arg16[%c184_173, %c0_174] : memref<200x896xf32, #tpu.memory_space<vmem>>, vector<8x896xf32>
    tpu.vector_store %arg16[%c184_173, %c0_174], %152 {strides = array<i32>} : memref<200x896xf32, #tpu.memory_space<vmem>>, vector<8x896xf32>,
    %c0_175 = arith.constant 0 : index
    %c170_176 = arith.constant 170 : index
    %154 = vector.load %arg15[%c0_175, %c170_176] : memref<8x1152xf32, #tpu.memory_space<vmem>>, vector<8x896xf32>
    %c192_177 = arith.constant 192 : index
    %c0_178 = arith.constant 0 : index
    %155 = vector.load %arg16[%c192_177, %c0_178] : memref<200x896xf32, #tpu.memory_space<vmem>>, vector<8x896xf32>
    tpu.vector_store %arg16[%c192_177, %c0_178], %154 {strides = array<i32>} : memref<200x896xf32, #tpu.memory_space<vmem>>, vector<8x896xf32>,
    %c0_179 = arith.constant 0 : index
    %c0_180 = arith.constant 0 : index
    %156 = vector.load %arg4[%c0_179, %c0_180] : memref<8x200xf32, #tpu.memory_space<vmem>>, vector<8x200xf32>
    %c0_181 = arith.constant 0 : index
    %c0_182 = arith.constant 0 : index
    %157 = vector.load %arg16[%c0_181, %c0_182] : memref<200x896xf32, #tpu.memory_space<vmem>>, vector<200x896xf32>
    %cst_183 = arith.constant dense<0.000000e+00> : vector<8x896xf32>
    %158 = tpu.matmul %156, %157, %cst_183 {dimension_numbers = #tpu.dot_dimension_numbers<[1], [0], [0], [1], [0, 0, 1, 1], [], []>} : vector<8x200xf32>, vector<200x896xf32>, vector<8x896xf32> -> vector<8x896xf32>
    %c0_184 = arith.constant 0 : index
    %c0_185 = arith.constant 0 : index
    %159 = vector.load %arg5[%c0_184, %c0_185] : memref<8x1xf32, #tpu.memory_space<vmem>>, vector<8x1xf32>
    %160 = vector.broadcast %159 : vector<8x1xf32> to vector<8x896xf32>
    %161 = arith.addf %158, %160 : vector<8x896xf32>
    %162 = vector.broadcast %2 : vector<1x896xf32> to vector<8x896xf32>
    %163 = arith.mulf %161, %162 : vector<8x896xf32>
    %cst_186 = arith.constant dense<0.000000e+00> : vector<8xf32>
    %164 = vector.multi_reduction <add>, %163, %cst_186 [1] : vector<8x896xf32> to vector<8xf32>
    %165 = vector.shape_cast %164 : vector<8xf32> to vector<8x1xf32>
    %cst_187 = arith.constant 0.001953125 : f32
    %166 = vector.broadcast %cst_187 : f32 to vector<8x1xf32>
    %167 = arith.mulf %165, %166 : vector<8x1xf32>
    %168 = vector.broadcast %167 : vector<8x1xf32> to vector<8x896xf32>
    %169 = arith.subf %161, %168 : vector<8x896xf32>
    %170 = vector.broadcast %2 : vector<1x896xf32> to vector<8x896xf32>
    %171 = arith.mulf %169, %170 : vector<8x896xf32>
    %172 = arith.mulf %171, %171 : vector<8x896xf32>
    %cst_188 = arith.constant dense<0.000000e+00> : vector<8xf32>
    %173 = vector.multi_reduction <add>, %172, %cst_188 [1] : vector<8x896xf32> to vector<8xf32>
    %174 = vector.shape_cast %173 : vector<8xf32> to vector<8x1xf32>
    %cst_189 = arith.constant 0.001953125 : f32
    %175 = vector.broadcast %cst_189 : f32 to vector<8x1xf32>
    %176 = arith.mulf %174, %175 : vector<8x1xf32>
    %c0_190 = arith.constant 0 : index
    %c0_191 = arith.constant 0 : index
    %177 = vector.load %arg10[%c0_190, %c0_191] : memref<8x1xf32, #tpu.memory_space<vmem>>, vector<8x1xf32>
    %cst_192 = arith.constant 9.99999974E-6 : f32
    %178 = vector.broadcast %cst_192 : f32 to vector<8x1xf32>
    %179 = arith.addf %176, %178 : vector<8x1xf32>
    %180 = math.rsqrt %179 : vector<8x1xf32>
    %181 = arith.mulf %177, %180 : vector<8x1xf32>
    %c0_193 = arith.constant 0 : index
    %c0_194 = arith.constant 0 : index
    %182 = vector.load %arg11[%c0_193, %c0_194] : memref<8x1xf32, #tpu.memory_space<vmem>>, vector<8x1xf32>
    %183 = arith.mulf %167, %181 : vector<8x1xf32>
    %184 = arith.subf %182, %183 : vector<8x1xf32>
    %185 = vector.broadcast %181 : vector<8x1xf32> to vector<8x896xf32>
    %186 = arith.mulf %161, %185 : vector<8x896xf32>
    %187 = vector.broadcast %184 : vector<8x1xf32> to vector<8x896xf32>
    %188 = arith.addf %186, %187 : vector<8x896xf32>
    %cst_195 = arith.constant 0.000000e+00 : f32
    %189 = vector.broadcast %cst_195 : f32 to vector<8x896xf32>
    %190 = arith.maximumf %188, %189 : vector<8x896xf32>
    %191 = vector.broadcast %2 : vector<1x896xf32> to vector<8x896xf32>
    %192 = arith.mulf %190, %191 : vector<8x896xf32>
    %c0_196 = arith.constant 0 : index
    %c128_197 = arith.constant 128 : index
    %193 = vector.load %arg15[%c0_196, %c128_197] : memref<8x1152xf32, #tpu.memory_space<vmem>>, vector<8x896xf32>
    tpu.vector_store %arg15[%c0_196, %c128_197], %192 {strides = array<i32>} : memref<8x1152xf32, #tpu.memory_space<vmem>>, vector<8x896xf32>,
    %c0_198 = arith.constant 0 : index
    %c86_199 = arith.constant 86 : index
    %194 = vector.load %arg15[%c0_198, %c86_199] : memref<8x1152xf32, #tpu.memory_space<vmem>>, vector<8x896xf32>
    %c0_200 = arith.constant 0 : index
    %c0_201 = arith.constant 0 : index
    %195 = vector.load %arg16[%c0_200, %c0_201] : memref<200x896xf32, #tpu.memory_space<vmem>>, vector<8x896xf32>
    tpu.vector_store %arg16[%c0_200, %c0_201], %194 {strides = array<i32>} : memref<200x896xf32, #tpu.memory_space<vmem>>, vector<8x896xf32>,
    %c0_202 = arith.constant 0 : index
    %c87_203 = arith.constant 87 : index
    %196 = vector.load %arg15[%c0_202, %c87_203] : memref<8x1152xf32, #tpu.memory_space<vmem>>, vector<8x896xf32>
    %c8_204 = arith.constant 8 : index
    %c0_205 = arith.constant 0 : index
    %197 = vector.load %arg16[%c8_204, %c0_205] : memref<200x896xf32, #tpu.memory_space<vmem>>, vector<8x896xf32>
    tpu.vector_store %arg16[%c8_204, %c0_205], %196 {strides = array<i32>} : memref<200x896xf32, #tpu.memory_space<vmem>>, vector<8x896xf32>,
    %c0_206 = arith.constant 0 : index
    %c88_207 = arith.constant 88 : index
    %198 = vector.load %arg15[%c0_206, %c88_207] : memref<8x1152xf32, #tpu.memory_space<vmem>>, vector<8x896xf32>
    %c16_208 = arith.constant 16 : index
    %c0_209 = arith.constant 0 : index
    %199 = vector.load %arg16[%c16_208, %c0_209] : memref<200x896xf32, #tpu.memory_space<vmem>>, vector<8x896xf32>
    tpu.vector_store %arg16[%c16_208, %c0_209], %198 {strides = array<i32>} : memref<200x896xf32, #tpu.memory_space<vmem>>, vector<8x896xf32>,
    %c0_210 = arith.constant 0 : index
    %c89_211 = arith.constant 89 : index
    %200 = vector.load %arg15[%c0_210, %c89_211] : memref<8x1152xf32, #tpu.memory_space<vmem>>, vector<8x896xf32>
    %c24_212 = arith.constant 24 : index
    %c0_213 = arith.constant 0 : index
    %201 = vector.load %arg16[%c24_212, %c0_213] : memref<200x896xf32, #tpu.memory_space<vmem>>, vector<8x896xf32>
    tpu.vector_store %arg16[%c24_212, %c0_213], %200 {strides = array<i32>} : memref<200x896xf32, #tpu.memory_space<vmem>>, vector<8x896xf32>,
    %c0_214 = arith.constant 0 : index
    %c90_215 = arith.constant 90 : index
    %202 = vector.load %arg15[%c0_214, %c90_215] : memref<8x1152xf32, #tpu.memory_space<vmem>>, vector<8x896xf32>
    %c32_216 = arith.constant 32 : index
    %c0_217 = arith.constant 0 : index
    %203 = vector.load %arg16[%c32_216, %c0_217] : memref<200x896xf32, #tpu.memory_space<vmem>>, vector<8x896xf32>
    tpu.vector_store %arg16[%c32_216, %c0_217], %202 {strides = array<i32>} : memref<200x896xf32, #tpu.memory_space<vmem>>, vector<8x896xf32>,
    %c0_218 = arith.constant 0 : index
    %c106_219 = arith.constant 106 : index
    %204 = vector.load %arg15[%c0_218, %c106_219] : memref<8x1152xf32, #tpu.memory_space<vmem>>, vector<8x896xf32>
    %c40_220 = arith.constant 40 : index
    %c0_221 = arith.constant 0 : index
    %205 = vector.load %arg16[%c40_220, %c0_221] : memref<200x896xf32, #tpu.memory_space<vmem>>, vector<8x896xf32>
    tpu.vector_store %arg16[%c40_220, %c0_221], %204 {strides = array<i32>} : memref<200x896xf32, #tpu.memory_space<vmem>>, vector<8x896xf32>,
    %c0_222 = arith.constant 0 : index
    %c107_223 = arith.constant 107 : index
    %206 = vector.load %arg15[%c0_222, %c107_223] : memref<8x1152xf32, #tpu.memory_space<vmem>>, vector<8x896xf32>
    %c48_224 = arith.constant 48 : index
    %c0_225 = arith.constant 0 : index
    %207 = vector.load %arg16[%c48_224, %c0_225] : memref<200x896xf32, #tpu.memory_space<vmem>>, vector<8x896xf32>
    tpu.vector_store %arg16[%c48_224, %c0_225], %206 {strides = array<i32>} : memref<200x896xf32, #tpu.memory_space<vmem>>, vector<8x896xf32>,
    %c0_226 = arith.constant 0 : index
    %c108_227 = arith.constant 108 : index
    %208 = vector.load %arg15[%c0_226, %c108_227] : memref<8x1152xf32, #tpu.memory_space<vmem>>, vector<8x896xf32>
    %c56_228 = arith.constant 56 : index
    %c0_229 = arith.constant 0 : index
    %209 = vector.load %arg16[%c56_228, %c0_229] : memref<200x896xf32, #tpu.memory_space<vmem>>, vector<8x896xf32>
    tpu.vector_store %arg16[%c56_228, %c0_229], %208 {strides = array<i32>} : memref<200x896xf32, #tpu.memory_space<vmem>>, vector<8x896xf32>,
    %c0_230 = arith.constant 0 : index
    %c109_231 = arith.constant 109 : index
    %210 = vector.load %arg15[%c0_230, %c109_231] : memref<8x1152xf32, #tpu.memory_space<vmem>>, vector<8x896xf32>
    %c64_232 = arith.constant 64 : index
    %c0_233 = arith.constant 0 : index
    %211 = vector.load %arg16[%c64_232, %c0_233] : memref<200x896xf32, #tpu.memory_space<vmem>>, vector<8x896xf32>
    tpu.vector_store %arg16[%c64_232, %c0_233], %210 {strides = array<i32>} : memref<200x896xf32, #tpu.memory_space<vmem>>, vector<8x896xf32>,
    %c0_234 = arith.constant 0 : index
    %c110_235 = arith.constant 110 : index
    %212 = vector.load %arg15[%c0_234, %c110_235] : memref<8x1152xf32, #tpu.memory_space<vmem>>, vector<8x896xf32>
    %c72_236 = arith.constant 72 : index
    %c0_237 = arith.constant 0 : index
    %213 = vector.load %arg16[%c72_236, %c0_237] : memref<200x896xf32, #tpu.memory_space<vmem>>, vector<8x896xf32>
    tpu.vector_store %arg16[%c72_236, %c0_237], %212 {strides = array<i32>} : memref<200x896xf32, #tpu.memory_space<vmem>>, vector<8x896xf32>,
    %c0_238 = arith.constant 0 : index
    %c126_239 = arith.constant 126 : index
    %214 = vector.load %arg15[%c0_238, %c126_239] : memref<8x1152xf32, #tpu.memory_space<vmem>>, vector<8x896xf32>
    %c80_240 = arith.constant 80 : index
    %c0_241 = arith.constant 0 : index
    %215 = vector.load %arg16[%c80_240, %c0_241] : memref<200x896xf32, #tpu.memory_space<vmem>>, vector<8x896xf32>
    tpu.vector_store %arg16[%c80_240, %c0_241], %214 {strides = array<i32>} : memref<200x896xf32, #tpu.memory_space<vmem>>, vector<8x896xf32>,
    %c0_242 = arith.constant 0 : index
    %c127_243 = arith.constant 127 : index
    %216 = vector.load %arg15[%c0_242, %c127_243] : memref<8x1152xf32, #tpu.memory_space<vmem>>, vector<8x896xf32>
    %c88_244 = arith.constant 88 : index
    %c0_245 = arith.constant 0 : index
    %217 = vector.load %arg16[%c88_244, %c0_245] : memref<200x896xf32, #tpu.memory_space<vmem>>, vector<8x896xf32>
    tpu.vector_store %arg16[%c88_244, %c0_245], %216 {strides = array<i32>} : memref<200x896xf32, #tpu.memory_space<vmem>>, vector<8x896xf32>,
    %c0_246 = arith.constant 0 : index
    %c128_247 = arith.constant 128 : index
    %218 = vector.load %arg15[%c0_246, %c128_247] : memref<8x1152xf32, #tpu.memory_space<vmem>>, vector<8x896xf32>
    %c96_248 = arith.constant 96 : index
    %c0_249 = arith.constant 0 : index
    %219 = vector.load %arg16[%c96_248, %c0_249] : memref<200x896xf32, #tpu.memory_space<vmem>>, vector<8x896xf32>
    tpu.vector_store %arg16[%c96_248, %c0_249], %218 {strides = array<i32>} : memref<200x896xf32, #tpu.memory_space<vmem>>, vector<8x896xf32>,
    %c0_250 = arith.constant 0 : index
    %c129_251 = arith.constant 129 : index
    %220 = vector.load %arg15[%c0_250, %c129_251] : memref<8x1152xf32, #tpu.memory_space<vmem>>, vector<8x896xf32>
    %c104_252 = arith.constant 104 : index
    %c0_253 = arith.constant 0 : index
    %221 = vector.load %arg16[%c104_252, %c0_253] : memref<200x896xf32, #tpu.memory_space<vmem>>, vector<8x896xf32>
    tpu.vector_store %arg16[%c104_252, %c0_253], %220 {strides = array<i32>} : memref<200x896xf32, #tpu.memory_space<vmem>>, vector<8x896xf32>,
    %c0_254 = arith.constant 0 : index
    %c130_255 = arith.constant 130 : index
    %222 = vector.load %arg15[%c0_254, %c130_255] : memref<8x1152xf32, #tpu.memory_space<vmem>>, vector<8x896xf32>
    %c112_256 = arith.constant 112 : index
    %c0_257 = arith.constant 0 : index
    %223 = vector.load %arg16[%c112_256, %c0_257] : memref<200x896xf32, #tpu.memory_space<vmem>>, vector<8x896xf32>
    tpu.vector_store %arg16[%c112_256, %c0_257], %222 {strides = array<i32>} : memref<200x896xf32, #tpu.memory_space<vmem>>, vector<8x896xf32>,
    %c0_258 = arith.constant 0 : index
    %c146_259 = arith.constant 146 : index
    %224 = vector.load %arg15[%c0_258, %c146_259] : memref<8x1152xf32, #tpu.memory_space<vmem>>, vector<8x896xf32>
    %c120_260 = arith.constant 120 : index
    %c0_261 = arith.constant 0 : index
    %225 = vector.load %arg16[%c120_260, %c0_261] : memref<200x896xf32, #tpu.memory_space<vmem>>, vector<8x896xf32>
    tpu.vector_store %arg16[%c120_260, %c0_261], %224 {strides = array<i32>} : memref<200x896xf32, #tpu.memory_space<vmem>>, vector<8x896xf32>,
    %c0_262 = arith.constant 0 : index
    %c147_263 = arith.constant 147 : index
    %226 = vector.load %arg15[%c0_262, %c147_263] : memref<8x1152xf32, #tpu.memory_space<vmem>>, vector<8x896xf32>
    %c128_264 = arith.constant 128 : index
    %c0_265 = arith.constant 0 : index
    %227 = vector.load %arg16[%c128_264, %c0_265] : memref<200x896xf32, #tpu.memory_space<vmem>>, vector<8x896xf32>
    tpu.vector_store %arg16[%c128_264, %c0_265], %226 {strides = array<i32>} : memref<200x896xf32, #tpu.memory_space<vmem>>, vector<8x896xf32>,
    %c0_266 = arith.constant 0 : index
    %c148_267 = arith.constant 148 : index
    %228 = vector.load %arg15[%c0_266, %c148_267] : memref<8x1152xf32, #tpu.memory_space<vmem>>, vector<8x896xf32>
    %c136_268 = arith.constant 136 : index
    %c0_269 = arith.constant 0 : index
    %229 = vector.load %arg16[%c136_268, %c0_269] : memref<200x896xf32, #tpu.memory_space<vmem>>, vector<8x896xf32>
    tpu.vector_store %arg16[%c136_268, %c0_269], %228 {strides = array<i32>} : memref<200x896xf32, #tpu.memory_space<vmem>>, vector<8x896xf32>,
    %c0_270 = arith.constant 0 : index
    %c149_271 = arith.constant 149 : index
    %230 = vector.load %arg15[%c0_270, %c149_271] : memref<8x1152xf32, #tpu.memory_space<vmem>>, vector<8x896xf32>
    %c144_272 = arith.constant 144 : index
    %c0_273 = arith.constant 0 : index
    %231 = vector.load %arg16[%c144_272, %c0_273] : memref<200x896xf32, #tpu.memory_space<vmem>>, vector<8x896xf32>
    tpu.vector_store %arg16[%c144_272, %c0_273], %230 {strides = array<i32>} : memref<200x896xf32, #tpu.memory_space<vmem>>, vector<8x896xf32>,
    %c0_274 = arith.constant 0 : index
    %c150_275 = arith.constant 150 : index
    %232 = vector.load %arg15[%c0_274, %c150_275] : memref<8x1152xf32, #tpu.memory_space<vmem>>, vector<8x896xf32>
    %c152_276 = arith.constant 152 : index
    %c0_277 = arith.constant 0 : index
    %233 = vector.load %arg16[%c152_276, %c0_277] : memref<200x896xf32, #tpu.memory_space<vmem>>, vector<8x896xf32>
    tpu.vector_store %arg16[%c152_276, %c0_277], %232 {strides = array<i32>} : memref<200x896xf32, #tpu.memory_space<vmem>>, vector<8x896xf32>,
    %c0_278 = arith.constant 0 : index
    %c166_279 = arith.constant 166 : index
    %234 = vector.load %arg15[%c0_278, %c166_279] : memref<8x1152xf32, #tpu.memory_space<vmem>>, vector<8x896xf32>
    %c160_280 = arith.constant 160 : index
    %c0_281 = arith.constant 0 : index
    %235 = vector.load %arg16[%c160_280, %c0_281] : memref<200x896xf32, #tpu.memory_space<vmem>>, vector<8x896xf32>
    tpu.vector_store %arg16[%c160_280, %c0_281], %234 {strides = array<i32>} : memref<200x896xf32, #tpu.memory_space<vmem>>, vector<8x896xf32>,
    %c0_282 = arith.constant 0 : index
    %c167_283 = arith.constant 167 : index
    %236 = vector.load %arg15[%c0_282, %c167_283] : memref<8x1152xf32, #tpu.memory_space<vmem>>, vector<8x896xf32>
    %c168_284 = arith.constant 168 : index
    %c0_285 = arith.constant 0 : index
    %237 = vector.load %arg16[%c168_284, %c0_285] : memref<200x896xf32, #tpu.memory_space<vmem>>, vector<8x896xf32>
    tpu.vector_store %arg16[%c168_284, %c0_285], %236 {strides = array<i32>} : memref<200x896xf32, #tpu.memory_space<vmem>>, vector<8x896xf32>,
    %c0_286 = arith.constant 0 : index
    %c168_287 = arith.constant 168 : index
    %238 = vector.load %arg15[%c0_286, %c168_287] : memref<8x1152xf32, #tpu.memory_space<vmem>>, vector<8x896xf32>
    %c176_288 = arith.constant 176 : index
    %c0_289 = arith.constant 0 : index
    %239 = vector.load %arg16[%c176_288, %c0_289] : memref<200x896xf32, #tpu.memory_space<vmem>>, vector<8x896xf32>
    tpu.vector_store %arg16[%c176_288, %c0_289], %238 {strides = array<i32>} : memref<200x896xf32, #tpu.memory_space<vmem>>, vector<8x896xf32>,
    %c0_290 = arith.constant 0 : index
    %c169_291 = arith.constant 169 : index
    %240 = vector.load %arg15[%c0_290, %c169_291] : memref<8x1152xf32, #tpu.memory_space<vmem>>, vector<8x896xf32>
    %c184_292 = arith.constant 184 : index
    %c0_293 = arith.constant 0 : index
    %241 = vector.load %arg16[%c184_292, %c0_293] : memref<200x896xf32, #tpu.memory_space<vmem>>, vector<8x896xf32>
    tpu.vector_store %arg16[%c184_292, %c0_293], %240 {strides = array<i32>} : memref<200x896xf32, #tpu.memory_space<vmem>>, vector<8x896xf32>,
    %c0_294 = arith.constant 0 : index
    %c170_295 = arith.constant 170 : index
    %242 = vector.load %arg15[%c0_294, %c170_295] : memref<8x1152xf32, #tpu.memory_space<vmem>>, vector<8x896xf32>
    %c192_296 = arith.constant 192 : index
    %c0_297 = arith.constant 0 : index
    %243 = vector.load %arg16[%c192_296, %c0_297] : memref<200x896xf32, #tpu.memory_space<vmem>>, vector<8x896xf32>
    tpu.vector_store %arg16[%c192_296, %c0_297], %242 {strides = array<i32>} : memref<200x896xf32, #tpu.memory_space<vmem>>, vector<8x896xf32>,
    %c0_298 = arith.constant 0 : index
    %c0_299 = arith.constant 0 : index
    %244 = vector.load %arg6[%c0_298, %c0_299] : memref<8x200xf32, #tpu.memory_space<vmem>>, vector<8x200xf32>
    %c0_300 = arith.constant 0 : index
    %c0_301 = arith.constant 0 : index
    %245 = vector.load %arg16[%c0_300, %c0_301] : memref<200x896xf32, #tpu.memory_space<vmem>>, vector<200x896xf32>
    %cst_302 = arith.constant dense<0.000000e+00> : vector<8x896xf32>
    %246 = tpu.matmul %244, %245, %cst_302 {dimension_numbers = #tpu.dot_dimension_numbers<[1], [0], [0], [1], [0, 0, 1, 1], [], []>} : vector<8x200xf32>, vector<200x896xf32>, vector<8x896xf32> -> vector<8x896xf32>
    %c0_303 = arith.constant 0 : index
    %c0_304 = arith.constant 0 : index
    %247 = vector.load %arg7[%c0_303, %c0_304] : memref<8x1xf32, #tpu.memory_space<vmem>>, vector<8x1xf32>
    %248 = vector.broadcast %247 : vector<8x1xf32> to vector<8x896xf32>
    %249 = arith.addf %246, %248 : vector<8x896xf32>
    %c0_305 = arith.constant 0 : index
    %c0_306 = arith.constant 0 : index
    %250 = vector.load %arg14[%c0_305, %c0_306] : memref<8x896xf32, #tpu.memory_space<vmem>>, vector<8x896xf32>
    tpu.vector_store %arg14[%c0_305, %c0_306], %249 {strides = array<i32>} : memref<8x896xf32, #tpu.memory_space<vmem>>, vector<8x896xf32>,
    return
  }
  func.func @transform_0(%arg0: i32) -> (i32, i32) {
    %c0_i32 = arith.constant 0 : i32
    %c0_i32_0 = arith.constant 0 : i32
    %c0_i32_1 = arith.constant 0 : i32
    return %c0_i32, %c0_i32_0 : i32, i32
  }
  func.func @transform_1(%arg0: i32) -> (i32, i32) {
    %c0_i32 = arith.constant 0 : i32
    %c0_i32_0 = arith.constant 0 : i32
    %c0_i32_1 = arith.constant 0 : i32
    return %c0_i32, %c0_i32_0 : i32, i32
  }
  func.func @transform_2(%arg0: i32) -> (i32, i32) {
    %c0_i32 = arith.constant 0 : i32
    %c0_i32_0 = arith.constant 0 : i32
    %c0_i32_1 = arith.constant 0 : i32
    return %c0_i32, %c0_i32_0 : i32, i32
  }
  func.func @transform_3(%arg0: i32) -> (i32, i32) {
    %c0_i32 = arith.constant 0 : i32
    %c0_i32_0 = arith.constant 0 : i32
    %c0_i32_1 = arith.constant 0 : i32
    return %c0_i32, %c0_i32_0 : i32, i32
  }
  func.func @transform_4(%arg0: i32) -> (i32, i32) {
    %c0_i32 = arith.constant 0 : i32
    %c0_i32_0 = arith.constant 0 : i32
    %c0_i32_1 = arith.constant 0 : i32
    return %c0_i32, %c0_i32_0 : i32, i32
  }
  func.func @transform_5(%arg0: i32) -> (i32, i32) {
    %c0_i32 = arith.constant 0 : i32
    %c0_i32_0 = arith.constant 0 : i32
    %c0_i32_1 = arith.constant 0 : i32
    return %c0_i32, %c0_i32_0 : i32, i32
  }
  func.func @transform_6(%arg0: i32) -> (i32, i32) {
    %c0_i32 = arith.constant 0 : i32
    %c0_i32_0 = arith.constant 0 : i32
    %c0_i32_1 = arith.constant 0 : i32
    return %c0_i32, %c0_i32_0 : i32, i32
  }
  func.func @transform_7(%arg0: i32) -> (i32, i32) {
    %c0_i32 = arith.constant 0 : i32
    %c0_i32_0 = arith.constant 0 : i32
    %c0_i32_1 = arith.constant 0 : i32
    return %c0_i32, %c0_i32_0 : i32, i32
  }
  func.func @transform_8(%arg0: i32) -> (i32, i32) {
    %c0_i32 = arith.constant 0 : i32
    %c0_i32_0 = arith.constant 0 : i32
    %c0_i32_1 = arith.constant 0 : i32
    return %c0_i32, %c0_i32_0 : i32, i32
  }
  func.func @transform_9(%arg0: i32) -> (i32, i32) {
    %c0_i32 = arith.constant 0 : i32
    %c0_i32_0 = arith.constant 0 : i32
    %c0_i32_1 = arith.constant 0 : i32
    return %c0_i32, %c0_i32_0 : i32, i32
  }
  func.func @transform_10(%arg0: i32) -> (i32, i32) {
    %c0_i32 = arith.constant 0 : i32
    %c0_i32_0 = arith.constant 0 : i32
    %c0_i32_1 = arith.constant 0 : i32
    return %c0_i32, %c0_i32_0 : i32, i32
  }
  func.func @transform_11(%arg0: i32) -> (i32, i32) {
    %c0_i32 = arith.constant 0 : i32
    %c0_i32_0 = arith.constant 0 : i32
    %c0_i32_1 = arith.constant 0 : i32
    return %c0_i32, %c0_i32_0 : i32, i32
  }
  func.func @transform_12(%arg0: i32) -> (i32, i32) {
    %c0_i32 = arith.constant 0 : i32
    %c0_i32_0 = arith.constant 0 : i32
    %c0_i32_1 = arith.constant 0 : i32
    return %c0_i32, %c0_i32_0 : i32, i32
  }
  func.func @transform_13(%arg0: i32) -> (i32, i32) {
    %c0_i32 = arith.constant 0 : i32
    %c0_i32_0 = arith.constant 0 : i32
    %c0_i32_1 = arith.constant 0 : i32
    return %c0_i32, %c0_i32_0 : i32, i32
  }
}

</mosaic_0001>

<bundles_post_ra>
// kernel: conv_synthesizer_forward.1
= control target key start
LH: loop header
LB: loop body
LE: loop exit
PB: predicated region body
PF: predicated region fallthrough
CT: control target
= control target key end

     0   :  { %s10127_s16 = smov 42   ;;  %s10111_s21 = smov 41   ;;  %vm170_vm0 = vcmask 343040   ;;  %vm224_vm1 = vcmask 334848   ;;  %vm278_vm2 = vcmask 326656   ;;  %vm332_vm3 = vcmask 318464   ;;  %s10035_s0 = inlined_call_operand.vmem [shape: f32[8,1152], index: 0, kind: input, shape index: {}]   ;;  %s10036_s1 = inlined_call_operand.vmem [shape: f32[8,200], index: 1, kind: input, shape index: {}]   ;;  %s10037_s2 = inlined_call_operand.vmem [shape: f32[8,1], index: 2, kind: input, shape index: {}]   ;;  %s10038_s11 = inlined_call_operand.vmem [shape: f32[8,2], index: 11, kind: input, shape index: {}]   ;;  %s10039_s12 = inlined_call_operand.vmem [shape: f32[2,896], index: 12, kind: input, shape index: {}]   ;;  %s10040_s7 = inlined_call_operand.vmem [shape: f32[8,1], index: 7, kind: input, shape index: {}]   ;;  %s10041_s8 = inlined_call_operand.vmem [shape: f32[8,1], index: 8, kind: input, shape index: {}]   ;;  %s10042_s3 = inlined_call_operand.vmem [shape: f32[8,200], index: 3, kind: input, shape index: {}]   ;;  %s10043_s4 = inlined_call_operand.vmem [shape: f32[8,1], index: 4, kind: input, shape index: {}]   ;;  %s10044_s9 = inlined_call_operand.vmem [shape: f32[8,1], index: 9, kind: input, shape index: {}]   ;;  %s10045_s10 = inlined_call_operand.vmem [shape: f32[8,1], index: 10, kind: input, shape index: {}]   ;;  %s10046_s5 = inlined_call_operand.vmem [shape: f32[8,200], index: 5, kind: input, shape index: {}]   ;;  %s10047_s6 = inlined_call_operand.vmem [shape: f32[8,1], index: 6, kind: input, shape index: {}]   ;;  %s10048_s13 = inlined_call_operand.vmem [shape: f32[8,896], index: 13, kind: output, shape index: {}]  }
   0x1   :  { %v7721_v0 = vld [vmem:[%s10035_s0 + $0x8] sm:$0xff]  ;;  %v7726_v1 = vld [vmem:[%s10035_s0 + $0x10] sm:$0xff]  ;;  %v138_v2 = vld [vmem:[%s10035_s0] sm:$0xff]  ;;  %s10083_s22 = smov 40   ;;  %s10109_s23 = smov 39   ;;  %vm1631_vm4 = vcmask 588800  }
   0x2   :  { %v6389_v3 = vpack.i.bf16 %v7726_v1, %v7721_v0  ;;  %v7736_v4 = vld [vmem:[%s10035_s0 + $0x18] sm:$0xff]  ;;  %v7744_v6 = vld [vmem:[%s10035_s0 + $0x20] sm:$0xff]  ;;  %v7749_v7 = vld [vmem:[%s10035_s0 + $0x28] sm:$0xff]  ;;  %s10079_s24 = smov 38   ;;  %s10081_s25 = smov 22   ;;  %vm386_vm5 = vcmask 310272  }
   0x3   :  { %v6399_v5 = vpack.i.bf16 %v7736_v4, %v138_v2  ;;  %v6409_v8 = vpack.i.bf16 %v7749_v7, %v7744_v6  ;;  %s10065_s26 = smov 21   ;;  %s10077_s27 = smov 20   ;;  %v7788_v9 = vpack.i.bf16 %v7736_v4, %v7726_v1  ;;  %v7793_v10 = vpack.i.bf16 %v7744_v6, %v7721_v0  ;;  %v7798_v11 = vld [vmem:[%s10035_s0 + $0x30] sm:$0xff]  ;;  %v7894_v55 = vld [vmem:[%s10035_s0 + $0x38] sm:$0xff] }
   0x4   :  { %6390 = vrot.lane.b32.xlu0 %v6389_v3, %s10127_s16  ;;  %s10073_s28 = smov 19   ;;  %s10075_s29 = smov 18   ;;  %v6579_v12 = vpack.i.bf16 %v7798_v11, %v7749_v7  ;;  %v7902_v62 = vpack.i.bf16 %v7894_v55, %v7798_v11  ;;  %vm10108_vm6 = vcmask 179200   ;;  %vm10107_vm7 = vcmask 171008  }
   0x5   :  { %6400 = vrot.lane.b32.xlu1 %v6399_v5, %s10127_s16  ;;  %s10069_s30 = smov 2   ;;  %s10071_s14 = smov 1   ;;  %vm10106_vm8 = vcmask 162816   ;;  %vm10104_vm9 = vcmask 154624   ;;  %vm10103_vm10 = vcmask 146432   ;;  %vm10105_vm11 = vcmask 15360  }
   0x6   :  { %s10067_s18 = smov 127   ;;  %s10051_s19 = smov 126   ;;  %vm10088_vm12 = vcmask 7168   ;;  %vm10086_vm13 = vcmask 1039360   ;;  %vm10097_vm14 = vcmask 1031168   ;;  %vm10090_vm15 = vcmask 900096  }
   0x7   :  { %s10049_s20 = smov 110   ;;  %s10055_s15 = smov 109  }
   0x8   :  { %6395 = vrot.lane.b32.xlu0 %v6389_v3, %s10111_s21  ;;  %s10053_s17 = smov 108  }
   0x9   :  { %6405 = vrot.lane.b32.xlu1 %v6399_v5, %s10111_s21 }
   0xc   :  { %6410 = vrot.lane.b32.xlu0 %v6409_v8, %s10127_s16 }
   0xd   :  { %6415 = vrot.lane.b32.xlu1 %v6409_v8, %s10111_s21 }
  0x10   :  { %6420 = vrot.lane.b32.xlu0 %v6389_v3, %s10083_s22 }
  0x11   :  { %6425 = vrot.lane.b32.xlu1 %v6389_v3, %s10109_s23 }
  0x14   :  { %6430 = vrot.lane.b32.xlu0 %v6399_v5, %s10083_s22 }
  0x15   :  { %6435 = vrot.lane.b32.xlu1 %v6399_v5, %s10109_s23 }
  0x18   :  { %6440 = vrot.lane.b32.xlu0 %v6409_v8, %s10083_s22 }
  0x19   :  { %6445 = vrot.lane.b32.xlu1 %v6409_v8, %s10109_s23 }
  0x1c   :  { %6450 = vrot.lane.b32.xlu0 %v6389_v3, %s10079_s24 }
  0x1d   :  { %6455 = vrot.lane.b32.xlu1 %v6389_v3, %s10081_s25 }
  0x20   :  { %6460 = vrot.lane.b32.xlu0 %v6399_v5, %s10079_s24 }
  0x21   :  { %6465 = vrot.lane.b32.xlu1 %v6399_v5, %s10081_s25 }
  0x24   :  { %6470 = vrot.lane.b32.xlu0 %v6409_v8, %s10079_s24 }
  0x25   :  { %6475 = vrot.lane.b32.xlu1 %v6409_v8, %s10081_s25 }
  0x28   :  { %6480 = vrot.lane.b32.xlu0 %v6389_v3, %s10065_s26 }
  0x29   :  { %6485 = vrot.lane.b32.xlu1 %v6389_v3, %s10077_s27 }
  0x2c   :  { %6490 = vrot.lane.b32.xlu0 %v6399_v5, %s10065_s26 }
  0x2d   :  { %6495 = vrot.lane.b32.xlu1 %v6399_v5, %s10077_s27 }
  0x30   :  { %6500 = vrot.lane.b32.xlu0 %v6409_v8, %s10065_s26 }
  0x31   :  { %6505 = vrot.lane.b32.xlu1 %v6409_v8, %s10077_s27 }
  0x34   :  { %6510 = vrot.lane.b32.xlu0 %v6389_v3, %s10073_s28 }
  0x35   :  { %6515 = vrot.lane.b32.xlu1 %v6389_v3, %s10075_s29 }
  0x38   :  { %6520 = vrot.lane.b32.xlu0 %v6399_v5, %s10073_s28 }
  0x39   :  { %6525 = vrot.lane.b32.xlu1 %v6399_v5, %s10075_s29 }
  0x3c   :  { %6530 = vrot.lane.b32.xlu0 %v6409_v8, %s10073_s28 }
  0x3d   :  { %6535 = vrot.lane.b32.xlu1 %v6409_v8, %s10075_s29 }
  0x40   :  { %6540 = vrot.lane.b32.xlu0 %v6389_v3, %s10069_s30 }
  0x41   :  { %6545 = vrot.lane.b32.xlu1 %v6389_v3, %s10071_s14 }
  0x44   :  { %6550 = vrot.lane.b32.xlu0 %v6399_v5, %s10069_s30 }
  0x45   :  { %6555 = vrot.lane.b32.xlu1 %v6399_v5, %s10071_s14  ;;  %v7911_v5 = vld [vmem:[%s10036_s1 + $0x8] sm:$0xff] }
  0x46   :  { %5808 = vmatprep.mubr.msk.f32.mxu0 %vm1631_vm4, %v7911_v5  ;;  %5809 = vmatprep.mubr.msk.f32.mxu1 %vm1631_vm4, %v7911_v5 }
  0x48   :  { %6560 = vrot.lane.b32.xlu0 %v6409_v8, %s10069_s30 }
  0x49   :  { %6565 = vrot.lane.b32.xlu1 %v6409_v8, %s10071_s14 }
  0x4c   :  { %6570 = vrot.lane.b32.xlu0 %v7788_v9, %s10067_s18 }
  0x4d   :  { %6575 = vrot.lane.b32.xlu1 %v7793_v10, %s10067_s18 }
  0x50   :  { %6580 = vrot.lane.b32.xlu0 %v6579_v12, %s10067_s18 }
  0x51   :  { %6585 = vrot.lane.b32.xlu1 %v7788_v9, %s10051_s19 }
  0x54   :  { %6590 = vrot.lane.b32.xlu0 %v7788_v9, %s10049_s20 }
  0x55   :  { %6595 = vrot.lane.b32.xlu1 %v7793_v10, %s10051_s19 }
  0x58   :  { %6600 = vrot.lane.b32.xlu0 %v7793_v10, %s10049_s20 }
  0x59   :  { %878 = vrot.lane.b32.xlu1 %v7749_v7, %s10051_s19  ;;  %s10061_s19 = smov 106  }
  0x5c   :  { %932 = vrot.lane.b32.xlu0 %v7749_v7, %s10049_s20  ;;  %s10063_s20 = smov 107  }
  0x5d   :  { %6605 = vrot.lane.b32.xlu1 %v7788_v9, %s10055_s15 }
  0x60   :  { %6610 = vrot.lane.b32.xlu0 %v7788_v9, %s10053_s17 }
  0x61   :  { %6615 = vrot.lane.b32.xlu1 %v7793_v10, %s10055_s15 }
  0x64   :  { %6620 = vrot.lane.b32.xlu0 %v7793_v10, %s10053_s17 }
  0x65   :  { %986 = vrot.lane.b32.xlu1 %v7749_v7, %s10055_s15  ;;  %s10059_s15 = smov 89  }
  0x68   :  { %1040 = vrot.lane.b32.xlu0 %v7749_v7, %s10053_s17  ;;  %s10057_s17 = smov 90  }
  0x69   :  { %6625 = vrot.lane.b32.xlu1 %v7788_v9, %s10063_s20 }
  0x6c   :  { %6630 = vrot.lane.b32.xlu0 %v7788_v9, %s10061_s19 }
  0x6d   :  { %6635 = vrot.lane.b32.xlu1 %v7793_v10, %s10063_s20 }
  0x70   :  { %6640 = vrot.lane.b32.xlu0 %v7793_v10, %s10061_s19 }
  0x71   :  { %1094 = vrot.lane.b32.xlu1 %v7749_v7, %s10063_s20  ;;  %s10166_s20 = smov 110  }
  0x74   :  { %1148 = vrot.lane.b32.xlu0 %v7749_v7, %s10061_s19  ;;  %s10149_s19 = smov 86  }
  0x75   :  { %6645 = vrot.lane.b32.xlu1 %v7788_v9, %s10057_s17 }
  0x76   :  { %v6391_v13 = vpop.permute.xlu0 %6390 }
  0x77   :  { %v6401_v14 = vpop.permute.xlu1 %6400  ;;  %v6393_v15 = vunpack.i.h.bf16 %v6391_v13  ;;  %v6392_v16 = vunpack.i.l.bf16 %v6391_v13 }
  0x78   :  { %6650 = vrot.lane.b32.xlu0 %v7788_v9, %s10059_s15  ;;  %v6402_v17 = vunpack.i.l.bf16 %v6401_v14  ;;  %v6403_v26 = vunpack.i.h.bf16 %v6401_v14 }
  0x79   :  { %6655 = vrot.lane.b32.xlu1 %v7793_v10, %s10057_s17  ;;  %v172_v24 = vsel %vm170_vm0, %v6392_v16, %v6393_v15 }
  0x7a   :  { %v6396_v18 = vpop.permute.xlu0 %6395  ;;  %v171_v29 = vsel %vm170_vm0, %v6402_v17, %v6392_v16  ;;  %v173_v43 = vsel %vm170_vm0, %v6393_v15, %v6403_v26 }
  0x7b   :  { %v6398_v19 = vunpack.i.h.bf16 %v6396_v18  ;;  %v6397_v20 = vunpack.i.l.bf16 %v6396_v18  ;;  %v6406_v21 = vpop.permute.xlu1 %6405 }
  0x7c   :  { %v6407_v22 = vunpack.i.l.bf16 %v6406_v21  ;;  %6660 = vrot.lane.b32.xlu0 %v7793_v10, %s10059_s15  ;;  %v6408_v23 = vunpack.i.h.bf16 %v6406_v21 }
  0x7d   :  { %1202 = vrot.lane.b32.xlu1 %v7749_v7, %s10057_s17  ;;  %v226_v25 = vsel %vm224_vm1, %v6397_v20, %v6398_v19  ;;  %s10129_s17 = smov 88  }
  0x7e   :  { %v7855_v27 = vpop.permute.xlu0 %6410  ;;  %v5820_v28 = vpack.c.bf16 %v226_v25, %v172_v24  ;;  %v225_v30 = vsel %vm224_vm1, %v6407_v22, %v6397_v20  ;;  %v227_v39 = vsel %vm224_vm1, %v6398_v19, %v6408_v23 }
  0x7f   :  { %v6413_v31 = vunpack.i.h.bf16 %v7855_v27  ;;  %v6412_v32 = vunpack.i.l.bf16 %v7855_v27  ;;  %v7861_v33 = vpop.permute.xlu1 %6415  ;;  %v5822_v34 = vpack.c.bf16 %v225_v30, %v171_v29  ;;  %v5870_v51 = vpack.c.bf16 %v227_v39, %v173_v43 }
  0x80   :  { %v6418_v35 = vunpack.i.h.bf16 %v7861_v33  ;;  %v6417_v36 = vunpack.i.l.bf16 %v7861_v33  ;;  %1256 = vrot.lane.b32.xlu0 %v7749_v7, %s10059_s15  ;;  %5821 = vmatprep.subr.bf16.mxu0 %v5820_v28  ;;  %s10093_s15 = smov 87  }
  0x81   :  { %v7870_v37 = vsel %vm170_vm0, %v6412_v32, %v6413_v31  ;;  %6665 = vrot.lane.b32.xlu1 %v7788_v9, %s10129_s17  ;;  %5823 = vmatpush1.bf16.msra.mxu0 %v5822_v34  ;;  %v174_v38 = vsel %vm170_vm0, %v6403_v26, %v6412_v32 }
  0x82   :  { %v7879_v40 = vsel %vm224_vm1, %v6417_v36, %v6418_v35  ;;  %v6421_v41 = vpop.permute.xlu0 %6420  ;;  %v228_v42 = vsel %vm224_vm1, %v6408_v23, %v6417_v36 }
  0x83   :  { %v6423_v44 = vunpack.i.h.bf16 %v6421_v41  ;;  %v6422_v45 = vunpack.i.l.bf16 %v6421_v41  ;;  %v6426_v46 = vpop.permute.xlu1 %6425  ;;  %v5868_v47 = vpack.c.bf16 %v228_v42, %v174_v38  ;;  %v5918_v48 = vpack.c.bf16 %v7879_v40, %v7870_v37 }
  0x84   :  { %v6428_v49 = vunpack.i.h.bf16 %v6426_v46  ;;  %v6427_v50 = vunpack.i.l.bf16 %v6426_v46  ;;  %6670 = vrot.lane.b32.xlu0 %v7788_v9, %s10093_s15 }
  0x85   :  { %6675 = vrot.lane.b32.xlu1 %v7793_v10, %s10129_s17  ;;  %5869 = vmatprep.subr.bf16.mxu1 %v5868_v47  ;;  %v280_v52 = vsel %vm278_vm2, %v6422_v45, %v6423_v44 }
  0x86   :  { %5871 = vmatpush1.bf16.msra.mxu1 %v5870_v51  ;;  %v6431_v53 = vpop.permute.xlu0 %6430  ;;  %v334_v54 = vsel %vm332_vm3, %v6427_v50, %v6428_v49 }
  0x87   :  { %v6432_v56 = vunpack.i.l.bf16 %v6431_v53  ;;  %v6436_v57 = vpop.permute.xlu1 %6435  ;;  %v5824_v58 = vpack.c.bf16 %v334_v54, %v280_v52  ;;  %v6433_v59 = vunpack.i.h.bf16 %v6431_v53 }
  0x88   :  { %v6437_v60 = vunpack.i.l.bf16 %v6436_v57  ;;  %6680 = vrot.lane.b32.xlu0 %v7793_v10, %s10093_s15  ;;  %v6438_v61 = vunpack.i.h.bf16 %v6436_v57 }
  0x89   :  { %1310 = vrot.lane.b32.xlu1 %v7749_v7, %s10129_s17  ;;  %5825 = vmatprep.subr.bf16.mxu0 %v5824_v58  ;;  %v279_v63 = vsel %vm278_vm2, %v6432_v56, %v6422_v45  ;;  %v281_v14 = vsel %vm278_vm2, %v6423_v44, %v6433_v59 }
  0x8a   :  { %v7905_v2 = vpop.permute.xlu0 %6440  ;;  %v333_v3 = vsel %vm332_vm3, %v6437_v60, %v6427_v50  ;;  %v335_v17 = vsel %vm332_vm3, %v6428_v49, %v6438_v61 }
  0x8b   :  { %v6443_v8 = vunpack.i.h.bf16 %v7905_v2  ;;  %v6442_v9 = vunpack.i.l.bf16 %v7905_v2  ;;  %v7915_v10 = vpop.permute.xlu1 %6445  ;;  %v5826_v11 = vpack.c.bf16 %v333_v3, %v279_v63  ;;  %v5874_v29 = vpack.c.bf16 %v335_v17, %v281_v14 }
  0x8c   :  { %v6448_v12 = vunpack.i.h.bf16 %v7915_v10  ;;  %v6447_v13 = vunpack.i.l.bf16 %v7915_v10  ;;  %1364 = vrot.lane.b32.xlu0 %v7749_v7, %s10093_s15 }
  0x8d   :  { %v7929_v15 = vsel %vm278_vm2, %v6442_v9, %v6443_v8  ;;  %6685 = vrot.lane.b32.xlu1 %v7902_v62, %s10127_s16  ;;  %5827 = vmatpush1.bf16.msra.mxu0 %v5826_v11  ;;  %v282_v16 = vsel %vm278_vm2, %v6433_v59, %v6442_v9 }
  0x8e   :  { %v7938_v18 = vsel %vm332_vm3, %v6447_v13, %v6448_v12  ;;  %v6451_v19 = vpop.permute.xlu0 %6450  ;;  %v336_v20 = vsel %vm332_vm3, %v6438_v61, %v6447_v13 }
  0x8f   :  { %v6453_v21 = vunpack.i.h.bf16 %v6451_v19  ;;  %v6452_v22 = vunpack.i.l.bf16 %v6451_v19  ;;  %v6456_v23 = vpop.permute.xlu1 %6455  ;;  %v5872_v24 = vpack.c.bf16 %v336_v20, %v282_v16  ;;  %v5922_v25 = vpack.c.bf16 %v7938_v18, %v7929_v15 }
  0x90   :  { %v6458_v26 = vunpack.i.h.bf16 %v6456_v23  ;;  %v6457_v28 = vunpack.i.l.bf16 %v6456_v23  ;;  %6690 = vrot.lane.b32.xlu0 %v7902_v62, %s10111_s21 }
  0x91   :  { %1412 = vrot.lane.b32.xlu1 %v7726_v1, %s10149_s19  ;;  %5873 = vmatprep.subr.bf16.mxu1 %v5872_v24  ;;  %v388_v30 = vsel %vm386_vm5, %v6452_v22, %v6453_v21 }
  0x92   :  { %5875 = vmatpush1.bf16.msra.mxu1 %v5874_v29  ;;  %v6461_v32 = vpop.permute.xlu0 %6460  ;;  %v442_v34 = vsel %vm10108_vm6, %v6457_v28, %v6458_v26 }
  0x93   :  { %v6462_v36 = vunpack.i.l.bf16 %v6461_v32  ;;  %v6466_v38 = vpop.permute.xlu1 %6465  ;;  %v5828_v39 = vpack.c.bf16 %v442_v34, %v388_v30  ;;  %v6463_v41 = vunpack.i.h.bf16 %v6461_v32 }
  0x94   :  { %v6467_v42 = vunpack.i.l.bf16 %v6466_v38  ;;  %1414 = vrot.lane.b32.xlu0 %v7736_v4, %s10149_s19  ;;  %v6468_v43 = vunpack.i.h.bf16 %v6466_v38 }
  0x95   :  { %1410 = vrot.lane.b32.xlu1 %v7721_v0, %s10149_s19  ;;  %5829 = vmatprep.subr.bf16.mxu0 %v5828_v39  ;;  %v387_v1 = vsel %vm386_vm5, %v6462_v36, %v6452_v22  ;;  %v389_v0 = vsel %vm386_vm5, %v6453_v21, %v6463_v41 }
  0x96   :  { %v7954_v44 = vpop.permute.xlu0 %6470  ;;  %v441_v45 = vsel %vm10108_vm6, %v6467_v42, %v6457_v28  ;;  %v443_v54 = vsel %vm10108_vm6, %v6458_v26, %v6468_v43 }
  0x97   :  { %v6473_v46 = vunpack.i.h.bf16 %v7954_v44  ;;  %v6472_v47 = vunpack.i.l.bf16 %v7954_v44  ;;  %v7959_v49 = vpop.permute.xlu1 %6475  ;;  %v5830_v50 = vpack.c.bf16 %v441_v45, %v387_v1  ;;  %v5878_v13 = vpack.c.bf16 %v443_v54, %v389_v0 }
  0x98   :  { %v6478_v4 = vunpack.i.h.bf16 %v7959_v49  ;;  %v6477_v51 = vunpack.i.l.bf16 %v7959_v49  ;;  %6695 = vrot.lane.b32.xlu0 %v7902_v62, %s10083_s22  ;;  %s10171_s22 = smov 90  }
  0x99   :  { %v7969_v52 = vsel %vm386_vm5, %v6472_v47, %v6473_v46  ;;  %6700 = vrot.lane.b32.xlu1 %v7902_v62, %s10109_s23  ;;  %5831 = vmatpush1.bf16.msra.mxu0 %v5830_v50  ;;  %v390_v53 = vsel %vm386_vm5, %v6463_v41, %v6472_v47 }
  0x9a   :  { %v7978_v56 = vsel %vm10108_vm6, %v6477_v51, %v6478_v4  ;;  %v6481_v57 = vpop.permute.xlu0 %6480  ;;  %v444_v58 = vsel %vm10108_vm6, %v6468_v43, %v6477_v51 }
  0x9b   :  { %v6483_v59 = vunpack.i.h.bf16 %v6481_v57  ;;  %v6482_v60 = vunpack.i.l.bf16 %v6481_v57  ;;  %v6486_v61 = vpop.permute.xlu1 %6485  ;;  %v5876_v63 = vpack.c.bf16 %v444_v58, %v390_v53 }
  0x9c   :  { %v6488_v9 = vunpack.i.h.bf16 %v6486_v61  ;;  %v6487_v11 = vunpack.i.l.bf16 %v6486_v61  ;;  %1416 = vrot.lane.b32.xlu0 %v7744_v6, %s10149_s19 }
  0x9d   :  { %1418 = vrot.lane.b32.xlu1 %v7749_v7, %s10149_s19  ;;  %5877 = vmatprep.subr.bf16.mxu1 %v5876_v63  ;;  %v496_v14 = vsel %vm10107_vm7, %v6482_v60, %v6483_v59 }
  0x9e   :  { %5879 = vmatpush1.bf16.msra.mxu1 %v5878_v13  ;;  %v6491_v16 = vpop.permute.xlu0 %6490  ;;  %v550_v17 = vsel %vm10106_vm8, %v6487_v11, %v6488_v9 }
  0x9f   :  { %v6492_v19 = vunpack.i.l.bf16 %v6491_v16  ;;  %v6496_v20 = vpop.permute.xlu1 %6495  ;;  %v5832_v21 = vpack.c.bf16 %v550_v17, %v496_v14  ;;  %v6493_v22 = vunpack.i.h.bf16 %v6491_v16 }
  0xa0   :  { %v6497_v23 = vunpack.i.l.bf16 %v6496_v20  ;;  %6705 = vrot.lane.b32.xlu0 %v7902_v62, %s10079_s24  ;;  %v6498_v6 = vunpack.i.h.bf16 %v6496_v20  ;;  %s10220_s24 = smov 21  }
  0xa1   :  { %6710 = vrot.lane.b32.xlu1 %v7902_v62, %s10081_s25  ;;  %5833 = vmatprep.subr.bf16.mxu0 %v5832_v21  ;;  %v495_v7 = vsel %vm10107_vm7, %v6492_v19, %v6482_v60  ;;  %v497_v38 = vsel %vm10107_vm7, %v6483_v59, %v6493_v22  ;;  %v8031_v60 = vld [vmem:[%s10035_s0 + $0x40] sm:$0xff]  ;;  %s10226_s25 = smov 87  }
  0xa2   :  { %v7994_v24 = vpop.permute.xlu0 %6500  ;;  %v549_v26 = vsel %vm10106_vm8, %v6497_v23, %v6487_v11  ;;  %v551_v42 = vsel %vm10106_vm8, %v6488_v9, %v6498_v6  ;;  %v6744_v17 = vpack.i.bf16 %v8031_v60, %v7894_v55 }
  0xa3   :  { %v10101_v28 = vunpack.i.h.bf16 %v7994_v24  ;;  %v6502_v29 = vunpack.i.l.bf16 %v7994_v24  ;;  %v7999_v30 = vpop.permute.xlu1 %6505  ;;  %v5834_v32 = vpack.c.bf16 %v549_v26, %v495_v7  ;;  %v5882_v58 = vpack.c.bf16 %v551_v42, %v497_v38 }
  0xa4   :  { %v10100_v34 = vunpack.i.h.bf16 %v7999_v30  ;;  %v6507_v36 = vunpack.i.l.bf16 %v7999_v30  ;;  %6715 = vrot.lane.b32.xlu0 %v7902_v62, %s10065_s26  ;;  %s10165_s26 = smov 126   ;;  %v10173_v44 = vunpack.i.h.bf16 %v7994_v24 }
  0xa5   :  { %v8009_v39 = vsel %vm10107_vm7, %v6502_v29, %v10101_v28  ;;  %6720 = vrot.lane.b32.xlu1 %v7902_v62, %s10077_s27  ;;  %5835 = vmatpush1.bf16.msra.mxu0 %v5834_v32  ;;  %v498_v41 = vsel %vm10107_vm7, %v6493_v22, %v6502_v29  ;;  %s10170_s27 = smov 106  }
  0xa6   :  { %v8018_v43 = vsel %vm10106_vm8, %v6507_v36, %v10100_v34  ;;  %v6511_v1 = vpop.permute.xlu0 %6510  ;;  %v552_v45 = vsel %vm10106_vm8, %v6498_v6, %v6507_v36 }
  0xa7   :  { %v6513_v47 = vunpack.i.h.bf16 %v6511_v1  ;;  %v6512_v50 = vunpack.i.l.bf16 %v6511_v1  ;;  %v6516_v51 = vpop.permute.xlu1 %6515  ;;  %v5880_v0 = vpack.c.bf16 %v552_v45, %v498_v41 }
  0xa8   :  { %v6518_v54 = vunpack.i.h.bf16 %v6516_v51  ;;  %v6517_v57 = vunpack.i.l.bf16 %v6516_v51  ;;  %6725 = vrot.lane.b32.xlu0 %v7902_v62, %s10073_s28  ;;  %s10172_s28 = smov 89  }
  0xa9   :  { %6730 = vrot.lane.b32.xlu1 %v7902_v62, %s10075_s29  ;;  %5881 = vmatprep.subr.bf16.mxu1 %v5880_v0  ;;  %v604_v59 = vsel %vm10104_vm9, %v6512_v50, %v6513_v47  ;;  %s10218_s29 = smov 38  }
  0xaa   :  { %5883 = vmatpush1.bf16.msra.mxu1 %v5882_v58  ;;  %v6521_v61 = vpop.permute.xlu0 %6520  ;;  %v658_v63 = vsel %vm10103_vm10, %v6517_v57, %v6518_v54 }
  0xab   :  { %v6522_v9 = vunpack.i.l.bf16 %v6521_v61  ;;  %v6526_v11 = vpop.permute.xlu1 %6525  ;;  %v5836_v13 = vpack.c.bf16 %v658_v63, %v604_v59  ;;  %v6523_v14 = vunpack.i.h.bf16 %v6521_v61 }
  0xac   :  { %v6527_v16 = vunpack.i.l.bf16 %v6526_v11  ;;  %6735 = vrot.lane.b32.xlu0 %v7902_v62, %s10069_s30  ;;  %v6528_v19 = vunpack.i.h.bf16 %v6526_v11  ;;  %s10168_s30 = smov 108  }
  0xad   :  { %6740 = vrot.lane.b32.xlu1 %v7902_v62, %s10071_s14  ;;  %5837 = vmatprep.subr.bf16.mxu0 %v5836_v13  ;;  %v603_v20 = vsel %vm10104_vm9, %v6522_v9, %v6512_v50  ;;  %v605_v36 = vsel %vm10104_vm9, %v6513_v47, %v6523_v14  ;;  %s10169_s14 = smov 107  }
  0xae   :  { %v8041_v21 = vpop.permute.xlu0 %6530  ;;  %v657_v22 = vsel %vm10103_vm10, %v6527_v16, %v6517_v57  ;;  %v659_v42 = vsel %vm10103_vm10, %v6518_v54, %v6528_v19 }
  0xaf   :  { %v10095_v23 = vunpack.i.h.bf16 %v8041_v21  ;;  %v6532_v6 = vunpack.i.l.bf16 %v8041_v21  ;;  %v8046_v7 = vpop.permute.xlu1 %6535  ;;  %v5838_v26 = vpack.c.bf16 %v657_v22, %v603_v20  ;;  %v5886_v54 = vpack.c.bf16 %v659_v42, %v605_v36 }
  0xb0   :  { %v10091_v29 = vunpack.i.h.bf16 %v8046_v7  ;;  %v6537_v32 = vunpack.i.l.bf16 %v8046_v7  ;;  %6745 = vrot.lane.b32.xlu0 %v6744_v17, %s10067_s18  ;;  %s10167_s18 = smov 109  }
  0xb1   :  { %v8055_v38 = vsel %vm10104_vm9, %v6532_v6, %v10095_v23  ;;  %6750 = vrot.lane.b32.xlu1 %v7902_v62, %s10165_s26  ;;  %5839 = vmatpush1.bf16.msra.mxu0 %v5838_v26  ;;  %v606_v41 = vsel %vm10104_vm9, %v6523_v14, %v6532_v6 }
  0xb2   :  { %v8064_v1 = vsel %vm10103_vm10, %v6537_v32, %v10091_v29  ;;  %v6541_v45 = vpop.permute.xlu0 %6540  ;;  %v660_v47 = vsel %vm10103_vm10, %v6528_v19, %v6537_v32 }
  0xb3   :  { %v6543_v50 = vunpack.i.h.bf16 %v6541_v45  ;;  %v6542_v51 = vunpack.i.l.bf16 %v6541_v45  ;;  %v6546_v0 = vpop.permute.xlu1 %6545  ;;  %v5884_v57 = vpack.c.bf16 %v660_v47, %v606_v41 }
  0xb4   :  { %v6548_v59 = vunpack.i.h.bf16 %v6546_v0  ;;  %v6547_v61 = vunpack.i.l.bf16 %v6546_v0  ;;  %6755 = vrot.lane.b32.xlu0 %v7902_v62, %s10166_s20 }
  0xb5   :  { %6760 = vrot.lane.b32.xlu1 %v7902_v62, %s10167_s18  ;;  %5885 = vmatprep.subr.bf16.mxu1 %v5884_v57  ;;  %v712_v63 = vsel %vm10105_vm11, %v6542_v51, %v6543_v50 }
  0xb6   :  { %5887 = vmatpush1.bf16.msra.mxu1 %v5886_v54  ;;  %v6551_v9 = vpop.permute.xlu0 %6550  ;;  %v766_v11 = vsel %vm10088_vm12, %v6547_v61, %v6548_v59 }
  0xb7   :  { %v6552_v13 = vunpack.i.l.bf16 %v6551_v9  ;;  %v6556_v14 = vpop.permute.xlu1 %6555  ;;  %v5840_v16 = vpack.c.bf16 %v766_v11, %v712_v63  ;;  %v6553_v17 = vunpack.i.h.bf16 %v6551_v9 }
  0xb8   :  { %v6557_v19 = vunpack.i.l.bf16 %v6556_v14  ;;  %6765 = vrot.lane.b32.xlu0 %v7902_v62, %s10168_s30  ;;  %v6558_v20 = vunpack.i.h.bf16 %v6556_v14 }
  0xb9   :  { %884 = vrot.lane.b32.xlu1 %v8031_v60, %s10165_s26  ;;  %5841 = vmatprep.subr.bf16.mxu0 %v5840_v16  ;;  %v711_v22 = vsel %vm10105_vm11, %v6552_v13, %v6542_v51  ;;  %v713_v51 = vsel %vm10105_vm11, %v6543_v50, %v6553_v17  ;;  %v787_v16 = vld [vmem:[%s10035_s0 + $0x10] sm:$0xff] }
  0xba   :  { %v8080_v6 = vpop.permute.xlu0 %6560  ;;  %v765_v26 = vsel %vm10088_vm12, %v6557_v19, %v6547_v61  ;;  %v767_v61 = vsel %vm10088_vm12, %v6548_v59, %v6558_v20 }
  0xbb   :  { %v10089_v32 = vunpack.i.h.bf16 %v8080_v6  ;;  %v6562_v36 = vunpack.i.l.bf16 %v8080_v6  ;;  %v8085_v41 = vpop.permute.xlu1 %6565  ;;  %v5842_v42 = vpack.c.bf16 %v765_v26, %v711_v22  ;;  %v5890_v22 = vpack.c.bf16 %v767_v61, %v713_v51  ;;  %v789_v61 = vld [vmem:[%s10035_s0 + $0x20] sm:$0xff] }
  0xbc   :  { %v10087_v45 = vunpack.i.h.bf16 %v8085_v41  ;;  %v6567_v47 = vunpack.i.l.bf16 %v8085_v41  ;;  %938 = vrot.lane.b32.xlu0 %v8031_v60, %s10166_s20 }
  0xbd   :  { %v8095_v0 = vsel %vm10105_vm11, %v6562_v36, %v10089_v32  ;;  %6770 = vrot.lane.b32.xlu1 %v7902_v62, %s10169_s14  ;;  %5843 = vmatpush1.bf16.msra.mxu0 %v5842_v42  ;;  %v714_v57 = vsel %vm10105_vm11, %v6553_v17, %v6562_v36 }
  0xbe   :  { %v8104_v54 = vsel %vm10088_vm12, %v6567_v47, %v10087_v45  ;;  %v6571_v63 = vpop.permute.xlu0 %6570  ;;  %v768_v50 = vsel %vm10088_vm12, %v6558_v20, %v6567_v47  ;;  %v786_v20 = vld [vmem:[%s10035_s0 + $0x8] sm:$0xff]  ;;  %vm10092_vm12 = vcmask 883712  }
  0xbf   :  { %v6573_v9 = vunpack.i.h.bf16 %v6571_v63  ;;  %v6572_v11 = vunpack.i.l.bf16 %v6571_v63  ;;  %v6576_v13 = vpop.permute.xlu1 %6575  ;;  %v5888_v14 = vpack.c.bf16 %v768_v50, %v714_v57 }
  0xc0   :  { %v6578_v17 = vunpack.i.h.bf16 %v6576_v13  ;;  %v6577_v19 = vunpack.i.l.bf16 %v6576_v13  ;;  %6775 = vrot.lane.b32.xlu0 %v7902_v62, %s10170_s27 }
  0xc1   :  { %992 = vrot.lane.b32.xlu1 %v8031_v60, %s10167_s18  ;;  %5889 = vmatprep.subr.bf16.mxu1 %v5888_v14  ;;  %v834_v26 = vsel %vm10086_vm13, %v6572_v11, %v6573_v9  ;;  %v788_v14 = vld [vmem:[%s10035_s0 + $0x18] sm:$0xff] }
  0xc2   :  { %5891 = vmatpush1.bf16.msra.mxu1 %v5890_v22  ;;  %v8120_v36 = vpop.permute.xlu0 %6580  ;;  %v5844_v42 = vpack.c.bf16 %v834_v26, %v787_v16  ;;  %v833_v47 = vsel %vm10086_vm13, %v6577_v19, %v6572_v11  ;;  %v835_v11 = vsel %vm10086_vm13, %v6573_v9, %v6578_v17 }
  0xc3   :  { %v10085_v57 = vunpack.i.l.bf16 %v8120_v36  ;;  %v6586_v63 = vpop.permute.xlu1 %6585  ;;  %v5846_v51 = vpack.c.bf16 %v833_v47, %v786_v20  ;;  %v5894_v47 = vpack.c.bf16 %v835_v11, %v788_v14 }
  0xc4   :  { %v6588_v50 = vunpack.i.h.bf16 %v6586_v63  ;;  %v6587_v13 = vunpack.i.l.bf16 %v6586_v63  ;;  %1046 = vrot.lane.b32.xlu0 %v8031_v60, %s10168_s30  ;;  %5845 = vmatprep.subr.bf16.mxu0 %v5844_v42 }
  0xc5   :  { %6780 = vrot.lane.b32.xlu1 %v7902_v62, %s10171_s22  ;;  %5847 = vmatpush1.bf16.msra.mxu0 %v5846_v51  ;;  %v836_v16 = vsel %vm10086_vm13, %v6578_v17, %v10085_v57  ;;  %vm10096_vm13 = vcmask 891904  }
  0xc6   :  { %v6591_v19 = vpop.permute.xlu0 %6590  ;;  %v5892_v22 = vpack.c.bf16 %v836_v16, %v789_v61  ;;  %v888_v63 = vsel %vm10097_vm14, %v6587_v13, %v6588_v50 }
  0xc7   :  { %v6593_v20 = vunpack.i.h.bf16 %v6591_v19  ;;  %v6592_v26 = vunpack.i.l.bf16 %v6591_v19  ;;  %v6596_v42 = vpop.permute.xlu1 %6595 }
  0xc8   :  { %6785 = vrot.lane.b32.xlu0 %v7902_v62, %s10172_s28  ;;  %5893 = vmatprep.subr.bf16.mxu1 %v5892_v22  ;;  %v6597_v9 = vunpack.i.l.bf16 %v6596_v42  ;;  %v6598_v14 = vunpack.i.h.bf16 %v6596_v42 }
  0xc9   :  { %1100 = vrot.lane.b32.xlu1 %v8031_v60, %s10169_s14  ;;  %5895 = vmatpush1.bf16.msra.mxu1 %v5894_v47  ;;  %v942_v17 = vsel %vm10090_vm15, %v6592_v26, %v6593_v20 }
  0xca   :  { %v6601_v51 = vpop.permute.xlu0 %6600  ;;  %v5848_v61 = vpack.c.bf16 %v942_v17, %v888_v63  ;;  %v887_v11 = vsel %vm10097_vm14, %v6597_v9, %v6587_v13  ;;  %v889_v13 = vsel %vm10097_vm14, %v6588_v50, %v6598_v14 }
  0xcb   :  { %v6603_v16 = vunpack.i.h.bf16 %v6601_v51  ;;  %v6602_v59 = vunpack.i.l.bf16 %v6601_v51  ;;  %v8144_v19 = vpop.permute.xlu1 %878 }
  0xcc   :  { %1154 = vrot.lane.b32.xlu0 %v8031_v60, %s10170_s27  ;;  %5849 = vmatprep.subr.bf16.mxu0 %v5848_v61  ;;  %v890_v17 = vsel %vm10097_vm14, %v6598_v14, %v8144_v19  ;;  %vm10102_vm14 = vcmask 728064  }
  0xcd   :  { %6790 = vrot.lane.b32.xlu1 %v7902_v62, %s10129_s17  ;;  %v941_v22 = vsel %vm10090_vm15, %v6602_v59, %v6592_v26  ;;  %v943_v63 = vsel %vm10090_vm15, %v6593_v20, %v6603_v16 }
  0xce   :  { %v8152_v47 = vpop.permute.xlu0 %932  ;;  %v5850_v57 = vpack.c.bf16 %v941_v22, %v887_v11  ;;  %v5898_v20 = vpack.c.bf16 %v943_v63, %v889_v13  ;;  %v8175_v63 = vld [vmem:[%s10035_s0 + $0x30] sm:$0xff] }
  0xcf   :  { %v944_v42 = vsel %vm10090_vm15, %v6603_v16, %v8152_v47  ;;  %v6606_v51 = vpop.permute.xlu1 %6605  ;;  %vm10099_vm15 = vcmask 875520  }
  0xd0   :  { %v6608_v61 = vunpack.i.h.bf16 %v6606_v51  ;;  %v6607_v45 = vunpack.i.l.bf16 %v6606_v51  ;;  %6795 = vrot.lane.b32.xlu0 %v7902_v62, %s10093_s15  ;;  %5851 = vmatpush1.bf16.msra.mxu0 %v5850_v57  ;;  %v5896_v59 = vpack.c.bf16 %v944_v42, %v890_v17  ;;  %v7643_v62 = vmov 0  }
  0xd1   :  { %1208 = vrot.lane.b32.xlu1 %v8031_v60, %s10171_s22  ;;  %6799 = vset.pattern.permute.xlu0 %v7643_v62 }
  0xd2   :  { %v6611_v26 = vpop.permute.xlu0 %6610  ;;  %5897 = vmatprep.subr.bf16.mxu1 %v5896_v59  ;;  %v996_v22 = vsel %vm10096_vm13, %v6607_v45, %v6608_v61  ;;  %6800 = vset.pattern.permute.xlu1 %v7643_v62 }
  0xd3   :  { %v6613_v9 = vunpack.i.h.bf16 %v6611_v26  ;;  %v6612_v16 = vunpack.i.l.bf16 %v6611_v26  ;;  %v6616_v11 = vpop.permute.xlu1 %6615  ;;  %5899 = vmatpush1.bf16.msra.mxu1 %v5898_v20 }
  0xd4   :  { %1262 = vrot.lane.b32.xlu0 %v8031_v60, %s10172_s28  ;;  %v6617_v57 = vunpack.i.l.bf16 %v6616_v11  ;;  %v6618_v13 = vunpack.i.h.bf16 %v6616_v11 }
  0xd5   :  { %1316 = vrot.lane.b32.xlu1 %v8031_v60, %s10129_s17  ;;  %v1050_v50 = vsel %vm10092_vm12, %v6612_v16, %v6613_v9 }
  0xd6   :  { %v6621_v14 = vpop.permute.xlu0 %6620  ;;  %v5852_v17 = vpack.c.bf16 %v1050_v50, %v996_v22  ;;  %v995_v20 = vsel %vm10096_vm13, %v6617_v57, %v6607_v45  ;;  %v1625_v57 = vld [vmem:[%s10037_s2] sm:$0xff]  ;;  %s10221_s2 = smov 18  }
  0xd7   :  { %v6623_v42 = vunpack.i.h.bf16 %v6621_v14  ;;  %v6622_v51 = vunpack.i.l.bf16 %v6621_v14  ;;  %v8177_v59 = vpop.permute.xlu1 %986 }
  0xd8   :  { %1370 = vrot.lane.b32.xlu0 %v8031_v60, %s10093_s15  ;;  %5853 = vmatprep.subr.bf16.mxu0 %v5852_v17  ;;  %v998_v50 = vsel %vm10096_vm13, %v6618_v13, %v8177_v59  ;;  %s10225_s15 = smov 127  }
  0xd9   :  { %1420 = vrot.lane.b32.xlu1 %v8175_v63, %s10149_s19  ;;  %v1049_v26 = vsel %vm10092_vm12, %v6622_v51, %v6612_v16  ;;  %v1051_v22 = vsel %vm10092_vm12, %v6613_v9, %v6623_v42  ;;  %v997_v16 = vsel %vm10096_vm13, %v6608_v61, %v6618_v13  ;;  %v1918_v51 = vld [vmem:[%s10038_s11] sm:$0xff]  ;;  %vm1210_vm13 = vcmask 736256   ;;  %s10222_s11 = smov 19  }
  0xda   :  { %v8185_v58 = vpop.permute.xlu0 %1040  ;;  %v5854_v32 = vpack.c.bf16 %v1049_v26, %v995_v20  ;;  %v5902_v9 = vpack.c.bf16 %v1051_v22, %v997_v16 }
  0xdb   :  { %v1052_v11 = vsel %vm10092_vm12, %v6623_v42, %v8185_v58  ;;  %v6626_v14 = vpop.permute.xlu1 %6625  ;;  %vm10098_vm12 = vcmask 867328  }
  0xdc   :  { %v6628_v17 = vunpack.i.h.bf16 %v6626_v14  ;;  %v6627_v29 = vunpack.i.l.bf16 %v6626_v14  ;;  %1422 = vrot.lane.b32.xlu0 %v7894_v55, %s10149_s19  ;;  %5855 = vmatpush1.bf16.msra.mxu0 %v5854_v32  ;;  %v5900_v45 = vpack.c.bf16 %v1052_v11, %v998_v50 }
  0xdd   :  { %1424 = vrot.lane.b32.xlu1 %v8031_v60, %s10149_s19 }
  0xde   :  { %v6631_v42 = vpop.permute.xlu0 %6630  ;;  %5901 = vmatprep.subr.bf16.mxu1 %v5900_v45  ;;  %v1104_v61 = vsel %vm10099_vm15, %v6627_v29, %v6628_v17 }
  0xdf   :  { %v6633_v55 = vunpack.i.h.bf16 %v6631_v42  ;;  %v6632_v32 = vunpack.i.l.bf16 %v6631_v42  ;;  %v6636_v20 = vpop.permute.xlu1 %6635  ;;  %5903 = vmatpush1.bf16.msra.mxu1 %v5902_v9  ;;  %v7644_v9 = vmov 1  }
  0xe0   :  { %1628 = vperm.xlu0 %6799, %v1625_v57   ;;  %v6637_v60 = vunpack.i.l.bf16 %v6636_v20  ;;  %v6638_v45 = vunpack.i.h.bf16 %v6636_v20 }
  0xe1   :  { %v1158_v13 = vsel %vm10098_vm12, %v6632_v32, %v6633_v55  ;;  %1921 = vperm.xlu1 %6800, %v1918_v51  }
  0xe2   :  { %v6641_v26 = vpop.permute.xlu0 %6640  ;;  %v5856_v22 = vpack.c.bf16 %v1158_v13, %v1104_v61  ;;  %v1103_v16 = vsel %vm10099_vm15, %v6637_v60, %v6627_v29  ;;  %v1105_v60 = vsel %vm10099_vm15, %v6628_v17, %v6638_v45 }
  0xe3   :  { %v6643_v50 = vunpack.i.h.bf16 %v6641_v26  ;;  %v6642_v11 = vunpack.i.l.bf16 %v6641_v26  ;;  %v8205_v14 = vpop.permute.xlu1 %1094 }
  0xe4   :  { %5857 = vmatprep.subr.bf16.mxu0 %v5856_v22  ;;  %v1106_v61 = vsel %vm10099_vm15, %v6638_v45, %v8205_v14  ;;  %vm1372_vm15 = vcmask 711680  }
  0xe5   :  { %v1157_v42 = vsel %vm10098_vm12, %v6642_v11, %v6632_v32  ;;  %6801 = vset.pattern.permute.xlu1 %v7644_v9  ;;  %v1159_v23 = vsel %vm10098_vm12, %v6633_v55, %v6643_v50 }
  0xe6   :  { %v8209_v53 = vpop.permute.xlu0 %1148  ;;  %v5858_v57 = vpack.c.bf16 %v1157_v42, %v1103_v16  ;;  %2002 = vperm.xlu1 %6801, %v1918_v51   ;;  %v5906_v22 = vpack.c.bf16 %v1159_v23, %v1105_v60 }
  0xe7   :  { %v1160_v13 = vsel %vm10098_vm12, %v6643_v50, %v8209_v53  ;;  %v6646_v20 = vpop.permute.xlu1 %6645  ;;  %vm1318_vm12 = vcmask 719872  }
  0xe8   :  { %v6648_v26 = vunpack.i.h.bf16 %v6646_v20  ;;  %v6647_v29 = vunpack.i.l.bf16 %v6646_v20  ;;  %5859 = vmatpush1.bf16.msra.mxu0 %v5858_v57  ;;  %v5904_v32 = vpack.c.bf16 %v1160_v13, %v1106_v61 }
  0xea   :  { %v6651_v11 = vpop.permute.xlu0 %6650  ;;  %5905 = vmatprep.subr.bf16.mxu1 %v5904_v32  ;;  %6802 = vset.pattern.permute.xlu1 %v7643_v62  ;;  %v1212_v50 = vsel %vm1210_vm13, %v6647_v29, %v6648_v26 }
  0xeb   :  { %v6653_v51 = vunpack.i.h.bf16 %v6651_v11  ;;  %v6652_v55 = vunpack.i.l.bf16 %v6651_v11  ;;  %v6656_v16 = vpop.permute.xlu1 %6655  ;;  %5907 = vmatpush1.bf16.msra.mxu1 %v5906_v22 }
  0xec   :  { %v6657_v42 = vunpack.i.l.bf16 %v6656_v16  ;;  %v6658_v23 = vunpack.i.h.bf16 %v6656_v16 }
  0xed   :  { %v1266_v9 = vsel %vm10102_vm14, %v6652_v55, %v6653_v51 }
  0xee   :  { %v6661_v20 = vpop.permute.xlu0 %6660  ;;  %v5860_v57 = vpack.c.bf16 %v1266_v9, %v1212_v50  ;;  %v1211_v45 = vsel %vm1210_vm13, %v6657_v42, %v6647_v29  ;;  %v1213_v29 = vsel %vm1210_vm13, %v6648_v26, %v6658_v23 }
  0xef   :  { %v6663_v61 = vunpack.i.h.bf16 %v6661_v20  ;;  %v6662_v13 = vunpack.i.l.bf16 %v6661_v20  ;;  %v8220_v17 = vpop.permute.xlu1 %1202 }
  0xf0   :  { %5861 = vmatprep.subr.bf16.mxu0 %v5860_v57  ;;  %v1214_v11 = vsel %vm1210_vm13, %v6658_v23, %v8220_v17 }
  0xf1   :  { %v1265_v62 = vsel %vm10102_vm14, %v6662_v13, %v6652_v55  ;;  %v1267_v22 = vsel %vm10102_vm14, %v6653_v51, %v6663_v61 }
  0xf2   :  { %v8224_v32 = vpop.permute.xlu0 %1256  ;;  %v5862_v60 = vpack.c.bf16 %v1265_v62, %v1211_v45  ;;  %v5910_v55 = vpack.c.bf16 %v1267_v22, %v1213_v29 }
  0xf3   :  { %v1268_v50 = vsel %vm10102_vm14, %v6663_v61, %v8224_v32  ;;  %v6666_v9 = vpop.permute.xlu1 %6665  ;;  %vm1426_vm14 = vcmask 703488  }
  0xf4   :  { %v6668_v20 = vunpack.i.h.bf16 %v6666_v9  ;;  %v6667_v16 = vunpack.i.l.bf16 %v6666_v9  ;;  %5863 = vmatpush1.bf16.msra.mxu0 %v5862_v60  ;;  %v5908_v57 = vpack.c.bf16 %v1268_v50, %v1214_v11 }
  0xf6   :  { %v6671_v42 = vpop.permute.xlu0 %6670  ;;  %5909 = vmatprep.subr.bf16.mxu1 %v5908_v57  ;;  %v1320_v62 = vsel %vm1318_vm12, %v6667_v16, %v6668_v20 }
  0xf7   :  { %v6673_v13 = vunpack.i.h.bf16 %v6671_v42  ;;  %v6672_v51 = vunpack.i.l.bf16 %v6671_v42  ;;  %v6676_v45 = vpop.permute.xlu1 %6675  ;;  %5911 = vmatpush1.bf16.msra.mxu1 %v5910_v55 }
  0xf8   :  { %v6677_v34 = vunpack.i.l.bf16 %v6676_v45  ;;  %v6678_v26 = vunpack.i.h.bf16 %v6676_v45 }
  0xf9   :  { %v1374_v61 = vsel %vm1372_vm15, %v6672_v51, %v6673_v13 }
  0xfa   :  { %v6681_v3 = vpop.permute.xlu0 %6680  ;;  %v5864_v28 = vpack.c.bf16 %v1374_v61, %v1320_v62  ;;  %v1319_v23 = vsel %vm1318_vm12, %v6677_v34, %v6667_v16 }
  0xfb   :  { %v6683_v9 = vunpack.i.h.bf16 %v6681_v3  ;;  %v6682_v60 = vunpack.i.l.bf16 %v6681_v3  ;;  %v8234_v11 = vpop.permute.xlu1 %1310 }
  0xfc   :  { %5865 = vmatprep.subr.bf16.mxu0 %v5864_v28  ;;  %v1322_v55 = vsel %vm1318_vm12, %v6678_v26, %v8234_v11  ;;  %v1321_v28 = vsel %vm1318_vm12, %v6668_v20, %v6678_v26  ;;  %v8256_v26 = vld [vmem:[%s10036_s1] sm:$0xff]  ;;  %s10224_s1 = smov 2  }
  0xfd   :  { %v1373_v22 = vsel %vm1372_vm15, %v6682_v60, %v6672_v51  ;;  %v1375_v29 = vsel %vm1372_vm15, %v6673_v13, %v6683_v9 }
  0xfe   :  { %v8238_v50 = vpop.permute.xlu0 %1364  ;;  %v5866_v57 = vpack.c.bf16 %v1373_v22, %v1319_v23  ;;  %v5914_v45 = vpack.c.bf16 %v1375_v29, %v1321_v28 }
  0xff   :  { %v1376_v42 = vsel %vm1372_vm15, %v6683_v9, %v8238_v50  ;;  %v6686_v3 = vpop.permute.xlu1 %6685 }
 0x100   :  { %5867 = vmatpush1.bf16.msra.mxu0 %v5866_v57  ;;  %v5912_v62 = vpack.c.bf16 %v1376_v42, %v1322_v55  ;;  %v6687_v16 = vunpack.i.l.bf16 %v6686_v3  ;;  %v6688_v33 = vunpack.i.h.bf16 %v6686_v3 }
 0x102   :  { %v6691_v34 = vpop.permute.xlu0 %6690  ;;  %5913 = vmatprep.subr.bf16.mxu1 %v5912_v62  ;;  %v176_v20 = vsel %vm170_vm0, %v6413_v31, %v6687_v16  ;;  %v177_v3 = vsel %vm170_vm0, %v6687_v16, %v6688_v33 }
 0x103   :  { %v6692_v51 = vunpack.i.l.bf16 %v6691_v34  ;;  %v1413_v61 = vpop.permute.xlu1 %1412  ;;  %5915 = vmatpush1.bf16.msra.mxu1 %v5914_v45 }
 0x105   :  { %v230_v13 = vsel %vm224_vm1, %v6418_v35, %v6692_v51  ;;  %v6693_v35 = vunpack.i.h.bf16 %v6691_v34 }
 0x106   :  { %v1415_v60 = vpop.permute.xlu0 %1414  ;;  %v5916_v57 = vpack.c.bf16 %v230_v13, %v176_v20 }
 0x107   :  { %v1411_v23 = vpop.permute.xlu1 %1410  ;;  %v1428_v9 = vsel %vm1426_vm14, %v1413_v61, %v1415_v60  ;;  %v231_v62 = vsel %vm224_vm1, %v6692_v51, %v6693_v35 }
 0x108   :  { %1683 = vmatprep.subr.mxu0 %v1428_v9  ;;  %v1427_v22 = vsel %vm1426_vm14, %v1411_v23, %v1413_v61  ;;  %v5965_v10 = vpack.c.bf16 %v231_v62, %v177_v3  ;;  %v10175_v62 = vunpack.i.h.bf16 %v7999_v30 }
 0x109   :  { %1684 = vmatpush1.msra.mxu0 %v1427_v22 }
 0x10a   :  { %v6696_v29 = vpop.permute.xlu0 %6695  ;;  %5917 = vmatprep.subr.bf16.mxu0 %v5916_v57  ;;  %1700 = vmatmul.mubr.f32.vlgmr.msra.gmra.mrb[0].mxu0 %v8256_v26 }
 0x10b   :  { %v6697_v55 = vunpack.i.l.bf16 %v6696_v29  ;;  %v6701_v27 = vpop.permute.xlu1 %6700  ;;  %5919 = vmatpush1.bf16.msra.mxu0 %v5918_v48  ;;  %5810 = vmatprep.mubr.msk.f32.mxu0 %vm1631_vm4, %v7911_v5  ;;  %v6698_v34 = vunpack.i.h.bf16 %v6696_v29 }
 0x10c   :  { %v6702_v31 = vunpack.i.l.bf16 %v6701_v27  ;;  %v6703_v37 = vunpack.i.h.bf16 %v6701_v27 }
 0x10d   :  { %v284_v42 = vsel %vm278_vm2, %v6443_v8, %v6697_v55 }
 0x10e   :  { %v1417_v28 = vpop.permute.xlu0 %1416  ;;  %v338_v45 = vsel %vm332_vm3, %v6448_v12, %v6702_v31  ;;  %v285_v12 = vsel %vm278_vm2, %v6697_v55, %v6698_v34  ;;  %v339_v16 = vsel %vm332_vm3, %v6702_v31, %v6703_v37 }
 0x10f   :  { %v8273_v40 = vpop.permute.xlu1 %1418  ;;  %v5920_v48 = vpack.c.bf16 %v338_v45, %v284_v42  ;;  %v1429_v61 = vsel %vm1426_vm14, %v1415_v60, %v1417_v28  ;;  %v10117_v60 = vmov 0.0|0.0   ;;  %v5968_v22 = vpack.c.bf16 %v339_v16, %v285_v12 }
 0x110   :  { %v1430_v2 = vsel %vm1426_vm14, %v1417_v28, %v8273_v40  ;;  %v10178_v16 = vunpack.i.h.bf16 %v8046_v7 }
 0x111   :  { %1754 = vmatprep.subr.mxu1 %v1430_v2  ;;  %5921 = vmatprep.subr.bf16.mxu0 %v5920_v48 }
 0x112   :  { %1755 = vmatpush1.msra.mxu1 %v1429_v61  ;;  %5923 = vmatpush1.bf16.msra.mxu0 %v5922_v25  ;;  %v6706_v8 = vpop.permute.xlu0 %6705 }
 0x113   :  { %v6708_v51 = vunpack.i.h.bf16 %v6706_v8  ;;  %v6707_v13 = vunpack.i.l.bf16 %v6706_v8  ;;  %v6711_v23 = vpop.permute.xlu1 %6710  ;;  %5964 = vmatprep.subr.bf16.mxu1 %v10117_v60  ;;  %1771 = vmatmul.mubr.f32.vlgmr.msra.gmra.mrb[0].mxu1 %v8256_v26  ;;  %v10177_v8 = vpack.c.bf16 %v8018_v43, %v8009_v39  ;;  %v10179_v39 = vunpack.i.h.bf16 %v8080_v6 }
 0x114   :  { %v6713_v9 = vunpack.i.h.bf16 %v6711_v23  ;;  %v6712_v20 = vunpack.i.l.bf16 %v6711_v23  ;;  %5966 = vmatpush1.bf16.msra.mxu1 %v5965_v10  ;;  %5811 = vmatprep.mubr.msk.f32.mxu1 %vm1631_vm4, %v7911_v5 }
 0x115   :  { %5967 = vmatprep.subr.bf16.mxu1 %v10117_v60  ;;  %v392_v15 = vsel %vm386_vm5, %v6473_v46, %v6707_v13  ;;  %v393_v18 = vsel %vm386_vm5, %v6707_v13, %v6708_v51 }
 0x116   :  { %v6716_v25 = vpop.permute.xlu0 %6715  ;;  %v446_v57 = vsel %vm10108_vm6, %v6478_v4, %v6712_v20  ;;  %v447_v33 = vsel %vm10108_vm6, %v6712_v20, %v6713_v9  ;;  %v10174_v4 = vpack.c.bf16 %v7978_v56, %v7969_v52  ;;  %v10176_v52 = vunpack.i.h.bf16 %v8041_v21 }
 0x117   :  { %v6718_v35 = vunpack.i.h.bf16 %v6716_v25  ;;  %v6717_v29 = vunpack.i.l.bf16 %v6716_v25  ;;  %v6721_v55 = vpop.permute.xlu1 %6720  ;;  %v5924_v5 = vpack.c.bf16 %v446_v57, %v392_v15  ;;  %v5971_v3 = vpack.c.bf16 %v447_v33, %v393_v18 }
 0x118   :  { %v6723_v27 = vunpack.i.h.bf16 %v6721_v55  ;;  %v6722_v31 = vunpack.i.l.bf16 %v6721_v55  ;;  %5969 = vmatpush1.bf16.msra.mxu1 %v5968_v22  ;;  %v6583_v25 = vunpack.i.h.bf16 %v8120_v36  ;;  %v10180_v22 = vpack.c.bf16 %v8064_v1, %v8055_v38 }
 0x119   :  { %5925 = vmatprep.subr.bf16.mxu0 %v5924_v5  ;;  %5970 = vmatprep.subr.bf16.mxu1 %v10117_v60  ;;  %v500_v46 = vsel %vm10107_vm7, %v10173_v44, %v6717_v29  ;;  %v501_v49 = vsel %vm10107_vm7, %v6717_v29, %v6718_v35  ;;  %v10181_v35 = vunpack.i.h.bf16 %v8085_v41  ;;  %v790_v41 = vld [vmem:[%s10035_s0 + $0x28] sm:$0xff]  ;;  %vm10198_vm6 = vcmask 900096  }
 0x11a   :  { %5927 = vmatpush1.bf16.msra.mxu0 %v10174_v4  ;;  %v6726_v42 = vpop.permute.xlu0 %6725  ;;  %v554_v28 = vsel %vm10106_vm8, %v10175_v62, %v6722_v31  ;;  %v555_v45 = vsel %vm10106_vm8, %v6722_v31, %v6723_v27  ;;  %v10187_v4 = vpack.c.bf16 %v8104_v54, %v8095_v0 }
 0x11b   :  { %v6728_v34 = vunpack.i.h.bf16 %v6726_v42  ;;  %v6727_v37 = vunpack.i.l.bf16 %v6726_v42  ;;  %v6731_v48 = vpop.permute.xlu1 %6730  ;;  %v5928_v24 = vpack.c.bf16 %v554_v28, %v500_v46  ;;  %v5974_v12 = vpack.c.bf16 %v555_v45, %v501_v49 }
 0x11c   :  { %v6733_v61 = vunpack.i.h.bf16 %v6731_v48  ;;  %v6732_v2 = vunpack.i.l.bf16 %v6731_v48  ;;  %5972 = vmatpush1.bf16.msra.mxu1 %v5971_v3  ;;  %v10184_v46 = vunpack.i.l.bf16 %v8120_v36 }
 0x11d   :  { %5929 = vmatprep.subr.bf16.mxu0 %v5928_v24  ;;  %5973 = vmatprep.subr.bf16.mxu1 %v10117_v60  ;;  %v608_v56 = vsel %vm10104_vm9, %v10176_v52, %v6727_v37  ;;  %v609_v30 = vsel %vm10104_vm9, %v6727_v37, %v6728_v34  ;;  %v792_v37 = vld [vmem:[%s10035_s0 + $0x38] sm:$0xff]  ;;  %s10219_s0 = smov 20  }
 0x11e   :  { %5931 = vmatpush1.bf16.msra.mxu0 %v10177_v8  ;;  %v6736_v10 = vpop.permute.xlu0 %6735  ;;  %v662_v51 = vsel %vm10103_vm10, %v10178_v16, %v6732_v2  ;;  %v663_v13 = vsel %vm10103_vm10, %v6732_v2, %v6733_v61  ;;  %vm10182_vm10 = vcmask 7168  }
 0x11f   :  { %v6738_v23 = vunpack.i.h.bf16 %v6736_v10  ;;  %v6737_v9 = vunpack.i.l.bf16 %v6736_v10  ;;  %v6741_v20 = vpop.permute.xlu1 %6740  ;;  %v5932_v21 = vpack.c.bf16 %v662_v51, %v608_v56  ;;  %v5977_v33 = vpack.c.bf16 %v663_v13, %v609_v30  ;;  %vm10183_vm9 = vmmov %vm10182_vm10 }
 0x120   :  { %v6743_v15 = vunpack.i.h.bf16 %v6741_v20  ;;  %v6742_v18 = vunpack.i.l.bf16 %v6741_v20  ;;  %5975 = vmatpush1.bf16.msra.mxu1 %v5974_v12 }
 0x121   :  { %5933 = vmatprep.subr.bf16.mxu0 %v5932_v21  ;;  %5976 = vmatprep.subr.bf16.mxu1 %v10117_v60  ;;  %v716_v43 = vsel %vm10105_vm11, %v10179_v39, %v6737_v9  ;;  %v717_v7 = vsel %vm10105_vm11, %v6737_v9, %v6738_v23  ;;  %vm10185_vm11 = vcmask 1039360  }
 0x122   :  { %5935 = vmatpush1.bf16.msra.mxu0 %v10180_v22  ;;  %v6746_v57 = vpop.permute.xlu0 %6745  ;;  %v770_v29 = vsel %vm10182_vm10, %v10181_v35, %v6742_v18  ;;  %v771_v55 = vsel %vm10183_vm9, %v6742_v18, %v6743_v15  ;;  %v837_v49 = vsel %vm10185_vm11, %v10184_v46, %v6583_v25  ;;  %vm10186_vm8 = vmmov %vm10185_vm11  ;;  %vm10191_vm11 = vcmask 900096  }
 0x123   :  { %v6748_v5 = vunpack.i.h.bf16 %v6746_v57  ;;  %v6747_v27 = vunpack.i.l.bf16 %v6746_v57  ;;  %v6751_v31 = vpop.permute.xlu1 %6750  ;;  %v5936_v6 = vpack.c.bf16 %v770_v29, %v716_v43  ;;  %v5980_v3 = vpack.c.bf16 %v771_v55, %v717_v7  ;;  %vm10188_vm9 = vmmov %vm10186_vm8 }
 0x124   :  { %v6753_v44 = vunpack.i.h.bf16 %v6751_v31  ;;  %5978 = vmatpush1.bf16.msra.mxu1 %v5977_v33  ;;  %v6752_v38 = vunpack.i.l.bf16 %v6751_v31  ;;  %v5942_v0 = vpack.c.bf16 %v837_v49, %v790_v41 }
 0x125   :  { %5937 = vmatprep.subr.bf16.mxu0 %v5936_v6  ;;  %5979 = vmatprep.subr.bf16.mxu1 %v10117_v60  ;;  %v838_v1 = vsel %vm10186_vm8, %v6583_v25, %v6747_v27  ;;  %v839_v62 = vsel %vm10188_vm9, %v6747_v27, %v6748_v5  ;;  %vm10189_vm8 = vcmask 1031168   ;;  %vm10192_vm9 = vmmov %vm10191_vm11 }
 0x126   :  { %5939 = vmatpush1.bf16.msra.mxu0 %v10187_v4  ;;  %v6756_v42 = vpop.permute.xlu0 %6755  ;;  %v5940_v36 = vpack.c.bf16 %v838_v1, %v8175_v63  ;;  %v892_v48 = vsel %vm10189_vm8, %v6752_v38, %v6753_v44  ;;  %vm10190_vm10 = vmmov %vm10189_vm8  ;;  %v5983_v56 = vpack.c.bf16 %v839_v62, %v792_v37  ;;  %vm10193_vm8 = vcmask 891904  }
 0x127   :  { %v6758_v28 = vunpack.i.h.bf16 %v6756_v42  ;;  %v6757_v45 = vunpack.i.l.bf16 %v6756_v42  ;;  %v6761_v34 = vpop.permute.xlu1 %6760  ;;  %v891_v54 = vsel %vm10190_vm10, %v8144_v19, %v6752_v38  ;;  %vm10194_vm10 = vmmov %vm10193_vm8 }
 0x128   :  { %v6763_v24 = vunpack.i.h.bf16 %v6761_v34  ;;  %5981 = vmatpush1.bf16.msra.mxu1 %v5980_v3  ;;  %5941 = vmatprep.subr.bf16.mxu0 %v5940_v36  ;;  %v6762_v61 = vunpack.i.l.bf16 %v6761_v34 }
 0x129   :  { %v945_v63 = vsel %vm10191_vm11, %v8152_v47, %v6757_v45  ;;  %5982 = vmatprep.subr.bf16.mxu1 %v10117_v60  ;;  %v946_v2 = vsel %vm10192_vm9, %v6757_v45, %v6758_v28  ;;  %vm10195_vm11 = vcmask 883712   ;;  %vm10197_vm9 = vcmask 1031168  }
 0x12a   :  { %5943 = vmatpush1.bf16.msra.mxu0 %v5942_v0  ;;  %v6766_v52 = vpop.permute.xlu0 %6765  ;;  %v5944_v30 = vpack.c.bf16 %v946_v2, %v892_v48  ;;  %v5946_v8 = vpack.c.bf16 %v945_v63, %v891_v54  ;;  %v1000_v51 = vsel %vm10193_vm8, %v6762_v61, %v6763_v24  ;;  %v999_v19 = vsel %vm10194_vm10, %v8177_v59, %v6762_v61  ;;  %vm10196_vm7 = vmmov %vm10195_vm11 }
 0x12b   :  { %v6768_v10 = vunpack.i.h.bf16 %v6766_v52  ;;  %v6767_v12 = vunpack.i.l.bf16 %v6766_v52  ;;  %v885_v16 = vpop.permute.xlu1 %884 }
 0x12c   :  { %5984 = vmatpush1.bf16.msra.mxu1 %v5983_v56  ;;  %5945 = vmatprep.subr.bf16.mxu0 %v5944_v30  ;;  %v893_v21 = vsel %vm10197_vm9, %v6753_v44, %v885_v16  ;;  %vm10204_vm9 = vcmask 883712  }
 0x12d   :  { %v1053_v47 = vsel %vm10195_vm11, %v8185_v58, %v6767_v12  ;;  %v1054_v13 = vsel %vm10196_vm7, %v6767_v12, %v6768_v10  ;;  %5985 = vmatprep.subr.bf16.mxu1 %v10117_v60  ;;  %vm10199_vm7 = vcmask 875520   ;;  %vm10203_vm11 = vcmask 891904  }
 0x12e   :  { %5947 = vmatpush1.bf16.msra.mxu0 %v5946_v8  ;;  %v939_v23 = vpop.permute.xlu0 %938  ;;  %v5948_v9 = vpack.c.bf16 %v1054_v13, %v1000_v51  ;;  %v5950_v20 = vpack.c.bf16 %v1053_v47, %v999_v19  ;;  %vm10200_vm8 = vmmov %vm10199_vm7 }
 0x12f   :  { %v947_v15 = vsel %vm10198_vm6, %v6758_v28, %v939_v23  ;;  %v6771_v18 = vpop.permute.xlu1 %6770  ;;  %vm10201_vm6 = vcmask 867328  }
 0x130   :  { %v5986_v25 = vpack.c.bf16 %v947_v15, %v893_v21  ;;  %v6773_v39 = vunpack.i.h.bf16 %v6771_v18  ;;  %5949 = vmatprep.subr.bf16.mxu0 %v5948_v9  ;;  %v6772_v59 = vunpack.i.l.bf16 %v6771_v18  ;;  %vm10202_vm10 = vmmov %vm10201_vm6  ;;  %v10131_v18 = vmov 0.0  }
 0x132   :  { %5951 = vmatpush1.bf16.msra.mxu0 %v5950_v20  ;;  %v6776_v43 = vpop.permute.xlu0 %6775  ;;  %5987 = vmatpush1.bf16.msra.mxu1 %v5986_v25  ;;  %v1108_v57 = vsel %vm10199_vm7, %v6772_v59, %v6773_v39  ;;  %v1107_v33 = vsel %vm10200_vm8, %v8205_v14, %v6772_v59  ;;  %vm10205_vm7 = vcmask 728064  }
 0x133   :  { %v6778_v58 = vunpack.i.h.bf16 %v6776_v43  ;;  %v6777_v7 = vunpack.i.l.bf16 %v6776_v43  ;;  %v993_v22 = vpop.permute.xlu1 %992  ;;  %5988 = vmatprep.subr.bf16.mxu1 %v10117_v60  ;;  %vm10206_vm8 = vmmov %vm10205_vm7 }
 0x134   :  { %v1001_v31 = vsel %vm10203_vm11, %v6763_v24, %v993_v22  ;;  %vm10208_vm11 = vmmov %vm10205_vm7  ;;  %v52_v22 = vlaneseq }
 0x135   :  { %v1161_v35 = vsel %vm10201_vm6, %v8209_v53, %v6777_v7  ;;  %v1162_v29 = vsel %vm10202_vm10, %v6777_v7, %v6778_v58  ;;  %vm10207_vm6 = vcmask 875520  }
 0x136   :  { %v1047_v55 = vpop.permute.xlu0 %1046  ;;  %v5952_v5 = vpack.c.bf16 %v1162_v29, %v1108_v57  ;;  %v5954_v27 = vpack.c.bf16 %v1161_v35, %v1107_v33  ;;  %v7647_v57 = vmov 1983009808  }
 0x137   :  { %v1055_v6 = vsel %vm10204_vm9, %v6768_v10, %v1047_v55  ;;  %v6781_v44 = vpop.permute.xlu1 %6780  ;;  %v50_v33 = vunpack.c.l.s4 %v7647_v57  ;;  %vm88_vm9 = vcmask 1041408  }
 0x138   :  { %v5989_v46 = vpack.c.bf16 %v1055_v6, %v1001_v31  ;;  %v6783_v49 = vunpack.i.h.bf16 %v6781_v44  ;;  %5953 = vmatprep.subr.bf16.mxu0 %v5952_v5  ;;  %v6782_v38 = vunpack.i.l.bf16 %v6781_v44 }
 0x139   :  { %5955 = vmatpush1.bf16.msra.mxu0 %v5954_v27  ;;  %v51_v35 = vunpack.c.0.s8 %v50_v33 }
 0x13a   :  { %v6786_v1 = vpop.permute.xlu0 %6785  ;;  %5990 = vmatpush1.bf16.msra.mxu1 %v5989_v46  ;;  %v1216_v4 = vsel %vm1210_vm13, %v6782_v38, %v6783_v49  ;;  %v1215_v42 = vsel %vm1210_vm13, %v8220_v17, %v6782_v38 }
 0x13b   :  { %v6788_v14 = vunpack.i.h.bf16 %v6786_v1  ;;  %v6787_v41 = vunpack.i.l.bf16 %v6786_v1  ;;  %v1101_v53 = vpop.permute.xlu1 %1100  ;;  %5991 = vmatprep.subr.bf16.mxu1 %v10117_v60 }
 0x13c   :  { %v1109_v34 = vsel %vm10207_vm6, %v6773_v39, %v1101_v53 }
 0x13d   :  { %v1269_v3 = vsel %vm10205_vm7, %v8224_v32, %v6787_v41  ;;  %v1270_v36 = vsel %vm10206_vm8, %v6787_v41, %v6788_v14  ;;  %vm10228_vm7 = vcmask 179200  }
 0x13e   :  { %v1155_v62 = vpop.permute.xlu0 %1154  ;;  %v5956_v28 = vpack.c.bf16 %v1270_v36, %v1216_v4  ;;  %v5958_v45 = vpack.c.bf16 %v1269_v3, %v1215_v42  ;;  %v8437_v3 = vld [vmem:[%s10039_s12 + $0x8] sm:$0x3f]  ;;  %vm10229_vm8 = vmmov %vm10228_vm7 }
 0x13f   :  { %v1163_v37 = vsel %vm10202_vm10, %v6778_v58, %v1155_v62  ;;  %v6791_v48 = vpop.permute.xlu1 %6790  ;;  %vm10230_vm6 = vmmov %vm10228_vm7 }
 0x140   :  { %v5992_v24 = vpack.c.bf16 %v1163_v37, %v1109_v34  ;;  %v6793_v0 = vunpack.i.h.bf16 %v6791_v48  ;;  %5957 = vmatprep.subr.bf16.mxu0 %v5956_v28  ;;  %v6792_v54 = vunpack.i.l.bf16 %v6791_v48  ;;  %vm10232_vm10 = vmmov %vm10230_vm6 }
 0x141   :  { %5959 = vmatpush1.bf16.msra.mxu0 %v5958_v45 }
 0x142   :  { %v6796_v63 = vpop.permute.xlu0 %6795  ;;  %5993 = vmatpush1.bf16.msra.mxu1 %v5992_v24  ;;  %v1324_v2 = vsel %vm1318_vm12, %v6792_v54, %v6793_v0  ;;  %v1323_v52 = vsel %vm1318_vm12, %v8234_v11, %v6792_v54  ;;  %v65_v54 = vcombine.high %v8437_v3, %v8437_v3 }
 0x143   :  { %v6798_v17 = vunpack.i.h.bf16 %v6796_v63  ;;  %v6797_v61 = vunpack.i.l.bf16 %v6796_v63  ;;  %v1209_v32 = vpop.permute.xlu1 %1208  ;;  %5994 = vmatprep.subr.bf16.mxu1 %v10117_v60 }
 0x144   :  { %v1217_v16 = vsel %vm1210_vm13, %v6783_v49, %v1209_v32 }
 0x145   :  { %v1377_v56 = vsel %vm1372_vm15, %v8238_v50, %v6797_v61  ;;  %v1378_v30 = vsel %vm1372_vm15, %v6797_v61, %v6798_v17 }
 0x146   :  { %v1263_v8 = vpop.permute.xlu0 %1262  ;;  %v5960_v10 = vpack.c.bf16 %v1378_v30, %v1324_v2  ;;  %v5962_v12 = vpack.c.bf16 %v1377_v56, %v1323_v52 }
 0x147   :  { %v1271_v51 = vsel %vm10208_vm11, %v6788_v14, %v1263_v8  ;;  %v1317_v19 = vpop.permute.xlu1 %1316  ;;  %vm10233_vm11 = vmmov %vm10230_vm6 }
 0x148   :  { %v5995_v47 = vpack.c.bf16 %v1271_v51, %v1217_v16  ;;  %5961 = vmatprep.subr.bf16.mxu0 %v5960_v10  ;;  %v1325_v11 = vsel %vm1318_vm12, %v6793_v0, %v1317_v19 }
 0x149   :  { %5963 = vmatpush1.bf16.msra.mxu0 %v5962_v12 }
 0x14a   :  { %v1371_v13 = vpop.permute.xlu0 %1370  ;;  %5996 = vmatpush1.bf16.msra.mxu1 %v5995_v47 }
 0x14b   :  { %v1379_v23 = vsel %vm1372_vm15, %v6798_v17, %v1371_v13  ;;  %v1421_v50 = vpop.permute.xlu1 %1420  ;;  %5997 = vmatprep.subr.bf16.mxu1 %v10117_v60 }
 0x14c   :  { %v5998_v9 = vpack.c.bf16 %v1379_v23, %v1325_v11  ;;  %v1431_v25 = vsel %vm1426_vm14, %v8273_v40, %v1421_v50  ;;  %v8410_v40 = vshrl.u32 %v52_v22, 7 }
 0x14e   :  { %v1423_v20 = vpop.permute.xlu0 %1422  ;;  %5999 = vmatpush1.bf16.msra.mxu1 %v5998_v9  ;;  %v54_v29 = vsub.s32 %v51_v35, %v8410_v40  ;;  %v8422_v6 = vsub.s32 0, %v8410_v40  ;;  %v1930_v49 = vsub.s32 2, %v8410_v40  ;;  %v8431_v4 = vsub.s32 1, %v8410_v40 }
 0x14f   :  { %v1425_v21 = vpop.permute.xlu1 %1424  ;;  %v1432_v15 = vsel %vm1426_vm14, %v1421_v50, %v1423_v20  ;;  %1896 = vmatprep.subr.mxu1 %v10131_v18  ;;  %v1934_v42 = vsub.s32 4, %v8410_v40  ;;  %v2011_v24 = vsub.s32 3, %v8410_v40  ;;  %v2015_v61 = vsub.s32 5, %v8410_v40 }
 0x150   :  { %1825 = vmatprep.subr.mxu0 %v1432_v15  ;;  %v1433_v39 = vsel %vm1426_vm14, %v1423_v20, %v1425_v21  ;;  %v72_v62 = vrot.slane %v8437_v3, %v54_v29  ;;  %v1938_v2 = vsub.s32 6, %v8410_v40  ;;  %v79_v19 = vrot.slane %v65_v54, %v54_v29 }
 0x151   :  { %1826 = vmatpush1.msra.mxu0 %v1431_v25  ;;  %v2019_v15 = vsub.s32 7, %v8410_v40 }
 0x152   :  { %1842 = vmatmul.mubr.f32.vlgmr.msra.gmra.mrb[2].mxu0 %v8256_v26  ;;  %1897 = vmatpush1.msra.mxu1 %v1433_v39  ;;  %v117_v52 = vsel %vm88_vm9, %v72_v62, 0.0  ;;  %v80_v56 = vcombine.high %v72_v62, %v72_v62 }
 0x153   :  { %1913 = vmatmul.mubr.f32.vlgmr.msra.gmra.mrb[2].mxu1 %v8256_v26  ;;  %v8416_v26 = vld [vmem:[%s10039_s12] sm:$0xff]  ;;  %v118_v50 = vrot.slane %v117_v52, 4  ;;  %s10223_s12 = smov 1  }
 0x154   :  { %v55_v55 = vrot.slane %v8416_v26, %v54_v29  ;;  %v48_v5 = vcombine.high %v8416_v26, %v8416_v26  ;;  %v1927_v41 = vrot.slane %v8416_v26, %v8422_v6  ;;  %v1931_v28 = vrot.slane %v8416_v26, %v1930_v49 }
 0x155   :  { %v2008_v63 = vrot.slane %v8416_v26, %v8431_v4  ;;  %v1935_v17 = vrot.slane %v8416_v26, %v1934_v42  ;;  %v2012_v51 = vrot.slane %v8416_v26, %v2011_v24  ;;  %v2016_v23 = vrot.slane %v8416_v26, %v2015_v61 }
 0x156   :  { %v63_v27 = vcombine.high %v55_v55, %v55_v55  ;;  %v62_v31 = vrot.slane %v48_v5, %v54_v29  ;;  %v89_v44 = vsel %vm88_vm9, %v55_v55, 0.0  ;;  %v1962_v37 = vrot.slane %v1927_v41, %v8422_v6 }
 0x157   :  { %v90_v38 = vrot.slane %v89_v44, 4  ;;  %v1966_v30 = vrot.slane %v1931_v28, %v8422_v6  ;;  %v2043_v13 = vrot.slane %v2008_v63, %v8431_v4  ;;  %v1970_v11 = vrot.slane %v1935_v17, %v8422_v6 }
 0x158   :  { %v96_v46 = vsel %vm88_vm9, %v63_v27, 0.0  ;;  %v103_v14 = vsel %vm88_vm9, %v62_v31, 0.0  ;;  %v64_v53 = vcombine.high %v62_v31, %v62_v31  ;;  %v1939_v21 = vrot.slane %v8416_v26, %v1938_v2 }
 0x159   :  { %v97_v1 = vrot.slane %v96_v46, 4  ;;  %v104_v36 = vrot.slane %v103_v14, 4  ;;  %v91_v45 = vadd.f32 %v90_v38, %v89_v44  ;;  %v124_v25 = vsel %vm88_vm9, %v80_v56, 0.0 }
 0x15a   :  { %v110_v0 = vsel %vm88_vm9, %v64_v53, 0.0  ;;  %v2047_v55 = vrot.slane %v2012_v51, %v8431_v4  ;;  %v131_v5 = vsel %vm88_vm9, %v79_v19, 0.0  ;;  %v119_v44 = vadd.f32 %v118_v50, %v117_v52 }
 0x15b   :  { %v98_v34 = vadd.f32 %v97_v1, %v96_v46  ;;  %v105_v32 = vadd.f32 %v104_v36, %v103_v14  ;;  %v92_v8 = vrot.slane %v91_v45, 2  ;;  %v111_v12 = vrot.slane %v110_v0, 4 }
 0x15c   :  { %v125_v46 = vrot.slane %v124_v25, 4  ;;  %v2051_v1 = vrot.slane %v2016_v23, %v8431_v4  ;;  %v1974_v14 = vrot.slane %v1939_v21, %v8422_v6  ;;  %v132_v36 = vrot.slane %v131_v5, 4 }
 0x15d   :  { %v99_v10 = vrot.slane %v98_v34, 2  ;;  %v106_v20 = vrot.slane %v105_v32, 2  ;;  %v93_v22 = vadd.f32 %v92_v8, %v91_v45  ;;  %v112_v33 = vadd.f32 %v111_v12, %v110_v0 }
 0x15e   :  { %v126_v0 = vadd.f32 %v125_v46, %v124_v25  ;;  %v133_v56 = vadd.f32 %v132_v36, %v131_v5  ;;  %v2024_v50 = vrot.slane %v8437_v3, %v8431_v4  ;;  %vm10234_vm9 = vcmask 171008  }
 0x15f   :  { %v8463_v47 = vpop.permute.xlu0 %1628  ;;  %v100_v57 = vadd.f32 %v99_v10, %v98_v34  ;;  %v107_v38 = vadd.f32 %v106_v20, %v105_v32  ;;  %v94_v41 = vrot.slane %v93_v22, 1 }
 0x160   :  { %v8444_v48 = vpop.permute.xlu1 %1921  ;;  %v134_v20 = vrot.slane %v133_v56, 2 }
 0x161   :  { %v1987_v16 = vmul.f32 %v1962_v37, %v8444_v48  ;;  %v1988_v39 = vmul.f32 %v1966_v30, %v8444_v48  ;;  %v1989_v31 = vmul.f32 %v1970_v11, %v8444_v48  ;;  %v101_v53 = vrot.slane %v100_v57, 1 }
 0x162   :  { %v120_v37 = vrot.slane %v119_v44, 2  ;;  %v108_v54 = vrot.slane %v107_v38, 1  ;;  %v1990_v17 = vmul.f32 %v1974_v14, %v8444_v48  ;;  %v8493_v32 = vadd.f32 %v94_v41, %v93_v22 }
 0x163   :  { %v8495_v2 = vadd.f32 %v101_v53, %v100_v57  ;;  %v1947_v11 = vrot.slane %v8437_v3, %v1930_v49  ;;  %v2028_v49 = vrot.slane %v8437_v3, %v2011_v24 }
 0x164   :  { %10209 = vst [vmem:[#allocation4_spill] sm:$0xff] %v8493_v32  ;;  %v121_v12 = vadd.f32 %v120_v37, %v119_v44  ;;  %v8503_v51 = vadd.f32 %v108_v54, %v107_v38  ;;  %v135_v44 = vadd.f32 %v134_v20, %v133_v56 }
 0x165   :  { %v8470_v9 = vpop.permute.xlu1 %2002  ;;  %10210 = vst [vmem:[#allocation5_spill] sm:$0xff] %v8495_v2  ;;  %v2063_v40 = vrot.slane %v2028_v49, %v8431_v4 }
 0x166   :  { %v2068_v27 = vmul.f32 %v2043_v13, %v8470_v9  ;;  %v2069_v34 = vmul.f32 %v2047_v55, %v8470_v9  ;;  %v2070_v63 = vmul.f32 %v2051_v1, %v8470_v9  ;;  %10211 = vst [vmem:[#allocation6_spill] sm:$0xff] %v8503_v51  ;;  %v1943_v13 = vrot.slane %v8437_v3, %v8422_v6 }
 0x167   :  { %v122_v22 = vrot.slane %v121_v12, 1  ;;  %v2059_v55 = vrot.slane %v2024_v50, %v8431_v4 }
 0x169   :  { %v8538_v46 = vadd.f32 %v122_v22, %v121_v12  ;;  %v2072_v53 = vmul.f32 %v2059_v55, %v8470_v9 }
 0x16b   :  { %10213 = vst [vmem:[#allocation8_spill] sm:$0xff] %v8538_v46 }
 0x1dd   :  { %v8402_v59 = vpop.f32.mrb[0].mxu0 }
 0x1de   :  { %v8404_v43 = vpop.f32.mrb[1].mxu0  ;;  %v1702_v35 = vadd.f32 %v8402_v59, %v8463_v47  ;;  %v2020_v59 = vrot.slane %v8416_v26, %v2019_v15 }
 0x1df   :  { %v1704_v29 = vadd.f32 %v8404_v43, %v8463_v47  ;;  %v113_v43 = vrot.slane %v112_v33, 2 }
 0x1e0   :  { %v1994_v45 = vadd.f32 %v1987_v16, %v1702_v35  ;;  %v2055_v26 = vrot.slane %v2020_v59, %v8431_v4  ;;  %v127_v16 = vrot.slane %v126_v0, 2  ;;  %v2032_v35 = vrot.slane %v8437_v3, %v2015_v61 }
 0x1e1   :  { %v1995_v62 = vadd.f32 %v1988_v39, %v1704_v29  ;;  %v114_v52 = vadd.f32 %v113_v43, %v112_v33  ;;  %v1978_v33 = vrot.slane %v1943_v13, %v8422_v6 }
 0x1e2   :  { %v2071_v19 = vmul.f32 %v2055_v26, %v8470_v9  ;;  %v128_v57 = vadd.f32 %v127_v16, %v126_v0  ;;  %v2067_v41 = vrot.slane %v2032_v35, %v8431_v4  ;;  %v136_v0 = vrot.slane %v135_v44, 1 }
 0x1e3   :  { %v8499_v8 = vadd.f32 %v2069_v34, %v1995_v62  ;;  %v115_v23 = vrot.slane %v114_v52, 1  ;;  %v1991_v61 = vmul.f32 %v1978_v33, %v8444_v48 }
 0x1e4   :  { %v129_v1 = vrot.slane %v128_v57, 1 }
 0x1e5   :  { %v2083_v25 = vmul.f32 %v8499_v8, %v8495_v2  ;;  %v8530_v29 = vadd.f32 %v115_v23, %v114_v52  ;;  %v2074_v52 = vmul.f32 %v2067_v41, %v8470_v9 }
 0x1e6   :  { %v8406_v58 = vpop.f32.mrb[0].mxu1  ;;  %v8552_v4 = vadd.f32 %v129_v1, %v128_v57 }
 0x1e7   :  { %v8408_v7 = vpop.f32.mrb[1].mxu1  ;;  %v1773_v28 = vadd.f32 %v8406_v58, %v8463_v47  ;;  %v8497_v58 = vadd.f32 %v2068_v27, %v1994_v45  ;;  %10212 = vst [vmem:[#allocation7_spill] sm:$0xff] %v8530_v29 }
 0x1e8   :  { %v1775_v10 = vadd.f32 %v8408_v7, %v8463_v47  ;;  %v1951_v7 = vrot.slane %v8437_v3, %v1934_v42  ;;  %v1982_v42 = vrot.slane %v1947_v11, %v8422_v6  ;;  %10214 = vst [vmem:[#allocation9_spill] sm:$0xff] %v8552_v4 }
 0x1e9   :  { %v1996_v30 = vadd.f32 %v1989_v31, %v1773_v28  ;;  %v2082_v15 = vmul.f32 %v8497_v58, %v8493_v32 }
 0x1ea   :  { %v1997_v39 = vadd.f32 %v1990_v17, %v1775_v10  ;;  %v1986_v5 = vrot.slane %v1951_v7, %v8422_v6  ;;  %v1992_v6 = vmul.f32 %v1982_v42, %v8444_v48 }
 0x1eb   :  { %v8516_v21 = vadd.f32 %v2070_v63, %v1996_v30  ;;  %v2089_v31 = vadd.f32 %v2083_v25, %v2082_v15  ;;  %v2073_v63 = vmul.f32 %v2063_v40, %v8470_v9  ;;  %v8563_v30 = vadd.f32 %v136_v0, %v135_v44 }
 0x1ec   :  { %v8536_v24 = vadd.f32 %v2071_v19, %v1997_v39  ;;  %v1993_v62 = vmul.f32 %v1986_v5, %v8444_v48 }
 0x1ed   :  { %v2084_v27 = vmul.f32 %v8516_v21, %v8503_v51  ;;  %10215 = vst [vmem:[#allocation10_spill] sm:$0xff] %v8563_v30 }
 0x1ee   :  { %v2085_v34 = vmul.f32 %v8536_v24, %v8530_v29 }
 0x1ef   :  { %v2090_v45 = vadd.f32 %v2089_v31, %v2084_v27 }
 0x1f1   :  { %v2091_v10 = vadd.f32 %v2090_v45, %v2085_v34 }
 0x225   :  { %v1843_v38 = vpop.f32.mrb[2].mxu0 }
 0x226   :  { %v1844_v3 = vadd.f32 %v1843_v38, %v8463_v47  ;;  %v1845_v14 = vpop.f32.mrb[3].mxu0  ;;  %v1914_v59 = vpop.f32.mrb[2].mxu1 }
 0x227   :  { %v1846_v43 = vadd.f32 %v1845_v14, %v8463_v47  ;;  %v1915_v36 = vadd.f32 %v1914_v59, %v8463_v47  ;;  %v1916_v28 = vpop.f32.mrb[3].mxu1 }
 0x228   :  { %v1998_v37 = vadd.f32 %v1991_v61, %v1844_v3  ;;  %v2128_v28 = vld [vmem:[%s10040_s7] sm:$0xff]  ;;  %s10216_s7 = smov 40  }
 0x229   :  { %v1999_v54 = vadd.f32 %v1992_v6, %v1846_v43  ;;  %v2000_v17 = vadd.f32 %v1993_v62, %v1915_v36 }
 0x22a   :  { %v8554_v26 = vadd.f32 %v2072_v53, %v1998_v37  ;;  %v2132_v37 = vld [vmem:[%s10041_s8] sm:$0xff]  ;;  %s10217_s8 = smov 22  }
 0x22b   :  { %v8557_v47 = vadd.f32 %v2073_v63, %v1999_v54  ;;  %v8561_v56 = vadd.f32 %v2074_v52, %v2000_v17 }
 0x22c   :  { %v2086_v48 = vmul.f32 %v8554_v26, %v8538_v46 }
 0x22d   :  { %v2087_v12 = vmul.f32 %v8557_v47, %v8552_v4  ;;  %v2088_v19 = vmul.f32 %v8561_v56, %v8563_v30 }
 0x22e   :  { %v2092_v16 = vadd.f32 %v2091_v10, %v2086_v48 }
 0x230   :  { %v2093_v13 = vadd.f32 %v2092_v16, %v2087_v12 }
 0x232   :  { %v2094_v11 = vadd.f32 %v2093_v13, %v2088_v19 }
 0x234   :  { %2095 = vadd.xlane.f32.xlu0 %v2094_v11 }
 0x24a   :  { %2975 = vrot.lane.b32.xlu0 %v10131_v18, %s10166_s20 }
 0x24e   :  { %3081 = vrot.lane.b32.xlu0 %v10131_v18, %s10168_s30 }
 0x252   :  { %3187 = vrot.lane.b32.xlu0 %v10131_v18, %s10170_s27 }
 0x2c1   :  { %v2096_v9 = vpop.xlane.xlu0 %2095 }
 0x2c2   :  { %v2097_v23 = vmul.f32 0.001953125, %v2096_v9 }
 0x2c4   :  { %v2098_v50 = vsub.f32 %v8497_v58, %v2097_v23  ;;  %v2099_v7 = vsub.f32 %v8499_v8, %v2097_v23  ;;  %v2100_v20 = vsub.f32 %v8516_v21, %v2097_v23  ;;  %v2101_v15 = vsub.f32 %v8536_v24, %v2097_v23 }
 0x2c5   :  { %v2102_v25 = vsub.f32 %v8554_v26, %v2097_v23  ;;  %v2103_v57 = vsub.f32 %v8557_v47, %v2097_v23  ;;  %v2104_v55 = vsub.f32 %v8561_v56, %v2097_v23  ;;  %v8601_v63 = vpop.permute.xlu0 %2975 }
 0x2c6   :  { %v2105_v39 = vmul.f32 %v2098_v50, %v8493_v32  ;;  %v2106_v22 = vmul.f32 %v2099_v7, %v8495_v2  ;;  %v2107_v49 = vmul.f32 %v2100_v20, %v8503_v51  ;;  %v2108_v33 = vmul.f32 %v2101_v15, %v8530_v29 }
 0x2c7   :  { %v2109_v5 = vmul.f32 %v2102_v25, %v8538_v46  ;;  %v2110_v44 = vmul.f32 %v2103_v57, %v8552_v4  ;;  %v2111_v1 = vmul.f32 %v2104_v55, %v8563_v30 }
 0x2c8   :  { %v2112_v42 = vmul.f32 %v2105_v39, %v2105_v39  ;;  %v2113_v35 = vmul.f32 %v2106_v22, %v2106_v22  ;;  %v2114_v27 = vmul.f32 %v2107_v49, %v2107_v49  ;;  %v2115_v38 = vmul.f32 %v2108_v33, %v2108_v33 }
 0x2c9   :  { %v2116_v3 = vmul.f32 %v2109_v5, %v2109_v5  ;;  %v2117_v14 = vmul.f32 %v2110_v44, %v2110_v44  ;;  %v2118_v59 = vmul.f32 %v2111_v1, %v2111_v1  ;;  %v8605_v52 = vpop.permute.xlu0 %3081 }
 0x2ca   :  { %v2119_v31 = vadd.f32 %v2113_v35, %v2112_v42 }
 0x2cc   :  { %v2120_v40 = vadd.f32 %v2119_v31, %v2114_v27 }
 0x2cd   :  { %v8609_v10 = vpop.permute.xlu0 %3187 }
 0x2ce   :  { %v2121_v61 = vadd.f32 %v2120_v40, %v2115_v38 }
 0x2d0   :  { %v2122_v6 = vadd.f32 %v2121_v61, %v2116_v3 }
 0x2d2   :  { %v2123_v41 = vadd.f32 %v2122_v6, %v2117_v14 }
 0x2d4   :  { %v2124_v53 = vadd.f32 %v2123_v41, %v2118_v59 }
 0x2d6   :  { %2125 = vadd.xlane.f32.xlu1 %v2124_v53 }
 0x2e7   :  { %2922 = vrot.lane.b32.xlu1 %v10131_v18, %s10165_s26 }
 0x2eb   :  { %3028 = vrot.lane.b32.xlu1 %v10131_v18, %s10167_s18 }
 0x2ef   :  { %3134 = vrot.lane.b32.xlu1 %v10131_v18, %s10169_s14 }
 0x363   :  { %v2126_v43 = vpop.xlane.xlu1 %2125 }
 0x364   :  { %v2127_v36 = vmul.f32 0.001953125, %v2126_v43 }
 0x366   :  { %v2129_v62 = vadd.f32 1e-05, %v2127_v36 }
 0x367   :  { %v8603_v17 = vpop.permute.xlu1 %2922 }
 0x368   :  { %7615 = vrsqrt.f32 %v2129_v62 }
 0x36b   :  { %v8607_v48 = vpop.permute.xlu1 %3028 }
 0x36f   :  { %v8611_v12 = vpop.permute.xlu1 %3134 }
 0x372   :  { %v7616_v45 = vpop.eup %7615 }
 0x373   :  { %v2131_v34 = vmul.f32 %v7616_v45, %v2128_v28 }
 0x375   :  { %2137 = vperm.xlu0 %6799, %v2131_v34   ;;  %v2133_v0 = vmul.f32 %v2131_v34, %v2097_v23 }
 0x377   :  { %v2134_v54 = vsub.f32 %v2132_v37, %v2133_v0 }
 0x379   :  { %2149 = vperm.xlu1 %6802, %v2134_v54  }
 0x3f4   :  { %v8613_v16 = vpop.permute.xlu0 %2137 }
 0x3f5   :  { %v2140_v19 = vmul.f32 %v8613_v16, %v8497_v58  ;;  %v2141_v13 = vmul.f32 %v8613_v16, %v8499_v8  ;;  %v2142_v11 = vmul.f32 %v8613_v16, %v8516_v21  ;;  %v2143_v9 = vmul.f32 %v8613_v16, %v8536_v24 }
 0x3f6   :  { %v2144_v50 = vmul.f32 %v8613_v16, %v8554_v26  ;;  %v2145_v27 = vmul.f32 %v8613_v16, %v8557_v47  ;;  %v2146_v36 = vmul.f32 %v8613_v16, %v8561_v56 }
 0x3f8   :  { %v8623_v23 = vpop.permute.xlu1 %2149 }
 0x3f9   :  { %v2152_v7 = vadd.f32 %v8623_v23, %v2140_v19  ;;  %v2153_v20 = vadd.f32 %v8623_v23, %v2141_v13  ;;  %v2154_v58 = vadd.f32 %v8623_v23, %v2142_v11  ;;  %v2155_v15 = vadd.f32 %v8623_v23, %v2143_v9 }
 0x3fa   :  { %v2156_v8 = vadd.f32 %v8623_v23, %v2144_v50  ;;  %v2157_v31 = vadd.f32 %v8623_v23, %v2145_v27  ;;  %v2158_v0 = vadd.f32 %v8623_v23, %v2146_v36 }
 0x3fb   :  { %v2159_v25 = vmax.f32 %v2152_v7, 0.0  ;;  %v2160_v21 = vmax.f32 %v2153_v20, 0.0  ;;  %v2161_v39 = vmax.f32 %v2154_v58, 0.0  ;;  %v2162_v26 = vmax.f32 %v2155_v15, 0.0 }
 0x3fc   :  { %v2163_v49 = vmax.f32 %v2156_v8, 0.0  ;;  %v2164_v44 = vmax.f32 %v2157_v31, 0.0  ;;  %v2165_v58 = vmax.f32 %v2158_v0, 0.0 }
 0x3fd   :  { %v8633_v24 = vmul.f32 %v2159_v25, %v8493_v32  ;;  %v8636_v22 = vmul.f32 %v2160_v21, %v8495_v2  ;;  %v8639_v57 = vmul.f32 %v2161_v39, %v8503_v51  ;;  %v8646_v42 = vmul.f32 %v2162_v26, %v8530_v29 }
 0x3fe   :  { %v8649_v35 = vmul.f32 %v2163_v49, %v8538_v46  ;;  %v8693_v38 = vmul.f32 %v2164_v44, %v8552_v4 }
 0x3ff   :  { %v6808_v33 = vpack.i.bf16 %v8636_v22, %v8633_v24  ;;  %v6818_v55 = vpack.i.bf16 %v8639_v57, %v10131_v18  ;;  %v8697_v47 = vpack.i.bf16 %v8646_v42, %v8633_v24  ;;  %v8701_v40 = vpack.i.bf16 %v8639_v57, %v8636_v22 }
 0x400   :  { %v6828_v5 = vpack.i.bf16 %v8649_v35, %v8646_v42  ;;  %v6993_v1 = vpack.i.bf16 %v8693_v38, %v8649_v35 }
 0x401   :  { %6809 = vrot.lane.b32.xlu1 %v6808_v33, %s10111_s21  ;;  %6804 = vrot.lane.b32.xlu0 %v6808_v33, %s10127_s16 }
 0x405   :  { %6819 = vrot.lane.b32.xlu1 %v6818_v55, %s10111_s21  ;;  %6814 = vrot.lane.b32.xlu0 %v6818_v55, %s10127_s16 }
 0x409   :  { %6829 = vrot.lane.b32.xlu1 %v6828_v5, %s10111_s21  ;;  %6824 = vrot.lane.b32.xlu0 %v6828_v5, %s10127_s16  ;;  %s10227_s21 = smov 41  }
 0x40d   :  { %6839 = vrot.lane.b32.xlu1 %v6808_v33, %s10109_s23  ;;  %6834 = vrot.lane.b32.xlu0 %v6808_v33, %s10216_s7 }
 0x411   :  { %6849 = vrot.lane.b32.xlu1 %v6818_v55, %s10109_s23  ;;  %6844 = vrot.lane.b32.xlu0 %v6818_v55, %s10216_s7 }
 0x415   :  { %6859 = vrot.lane.b32.xlu1 %v6828_v5, %s10109_s23  ;;  %6854 = vrot.lane.b32.xlu0 %v6828_v5, %s10216_s7  ;;  %s10231_s23 = smov 39  }
 0x419   :  { %6869 = vrot.lane.b32.xlu1 %v6808_v33, %s10217_s8  ;;  %6864 = vrot.lane.b32.xlu0 %v6808_v33, %s10218_s29 }
 0x41d   :  { %6879 = vrot.lane.b32.xlu1 %v6818_v55, %s10217_s8  ;;  %6874 = vrot.lane.b32.xlu0 %v6818_v55, %s10218_s29 }
 0x421   :  { %6889 = vrot.lane.b32.xlu1 %v6828_v5, %s10217_s8  ;;  %6884 = vrot.lane.b32.xlu0 %v6828_v5, %s10218_s29 }
 0x425   :  { %6899 = vrot.lane.b32.xlu1 %v6808_v33, %s10219_s0  ;;  %6894 = vrot.lane.b32.xlu0 %v6808_v33, %s10220_s24 }
 0x429   :  { %6909 = vrot.lane.b32.xlu1 %v6818_v55, %s10219_s0  ;;  %6904 = vrot.lane.b32.xlu0 %v6818_v55, %s10220_s24 }
 0x42d   :  { %6919 = vrot.lane.b32.xlu1 %v6828_v5, %s10219_s0  ;;  %6914 = vrot.lane.b32.xlu0 %v6828_v5, %s10220_s24 }
 0x431   :  { %6929 = vrot.lane.b32.xlu1 %v6808_v33, %s10221_s2  ;;  %6924 = vrot.lane.b32.xlu0 %v6808_v33, %s10222_s11 }
 0x435   :  { %6939 = vrot.lane.b32.xlu1 %v6818_v55, %s10221_s2  ;;  %6934 = vrot.lane.b32.xlu0 %v6818_v55, %s10222_s11 }
 0x439   :  { %6949 = vrot.lane.b32.xlu1 %v6828_v5, %s10221_s2  ;;  %6944 = vrot.lane.b32.xlu0 %v6828_v5, %s10222_s11 }
 0x43d   :  { %6959 = vrot.lane.b32.xlu1 %v6808_v33, %s10223_s12  ;;  %6954 = vrot.lane.b32.xlu0 %v6808_v33, %s10224_s1 }
 0x441   :  { %6969 = vrot.lane.b32.xlu1 %v6818_v55, %s10223_s12  ;;  %6964 = vrot.lane.b32.xlu0 %v6818_v55, %s10224_s1 }
 0x445   :  { %6979 = vrot.lane.b32.xlu1 %v6828_v5, %s10223_s12  ;;  %6974 = vrot.lane.b32.xlu0 %v6828_v5, %s10224_s1 }
 0x449   :  { %6989 = vrot.lane.b32.xlu1 %v8697_v47, %s10225_s15  ;;  %6984 = vrot.lane.b32.xlu0 %v8701_v40, %s10225_s15 }
 0x44d   :  { %6999 = vrot.lane.b32.xlu1 %v8701_v40, %s10165_s26  ;;  %6994 = vrot.lane.b32.xlu0 %v6993_v1, %s10225_s15 }
 0x451   :  { %7009 = vrot.lane.b32.xlu1 %v8697_v47, %s10165_s26  ;;  %7004 = vrot.lane.b32.xlu0 %v8701_v40, %s10166_s20 }
 0x455   :  { %2916 = vrot.lane.b32.xlu1 %v8649_v35, %s10165_s26  ;;  %7014 = vrot.lane.b32.xlu0 %v8697_v47, %s10166_s20 }
 0x459   :  { %7019 = vrot.lane.b32.xlu1 %v8701_v40, %s10167_s18  ;;  %2969 = vrot.lane.b32.xlu0 %v8649_v35, %s10166_s20 }
 0x45d   :  { %7029 = vrot.lane.b32.xlu1 %v8697_v47, %s10167_s18  ;;  %7024 = vrot.lane.b32.xlu0 %v8701_v40, %s10168_s30 }
 0x461   :  { %3022 = vrot.lane.b32.xlu1 %v8649_v35, %s10167_s18  ;;  %7034 = vrot.lane.b32.xlu0 %v8697_v47, %s10168_s30 }
 0x465   :  { %7039 = vrot.lane.b32.xlu1 %v8701_v40, %s10169_s14  ;;  %3075 = vrot.lane.b32.xlu0 %v8649_v35, %s10168_s30 }
 0x469   :  { %7049 = vrot.lane.b32.xlu1 %v8697_v47, %s10169_s14  ;;  %7044 = vrot.lane.b32.xlu0 %v8701_v40, %s10170_s27 }
 0x46d   :  { %3128 = vrot.lane.b32.xlu1 %v8649_v35, %s10169_s14  ;;  %7054 = vrot.lane.b32.xlu0 %v8697_v47, %s10170_s27 }
 0x471   :  { %7059 = vrot.lane.b32.xlu1 %v8701_v40, %s10171_s22  ;;  %3181 = vrot.lane.b32.xlu0 %v8649_v35, %s10170_s27 }
 0x473   :  { %v6810_v3 = vpop.permute.xlu1 %6809  ;;  %v6805_v61 = vpop.permute.xlu0 %6804 }
 0x474   :  { %v6812_v14 = vunpack.i.h.bf16 %v6810_v3  ;;  %v6811_v6 = vunpack.i.l.bf16 %v6810_v3  ;;  %v6807_v59 = vunpack.i.h.bf16 %v6805_v61  ;;  %v6806_v41 = vunpack.i.l.bf16 %v6805_v61 }
 0x475   :  { %7069 = vrot.lane.b32.xlu1 %v8697_v47, %s10171_s22  ;;  %7064 = vrot.lane.b32.xlu0 %v8701_v40, %s10172_s28 }
 0x476   :  { %v2222_v53 = vsel %vm170_vm0, %v6806_v41, %v6807_v59  ;;  %v2275_v43 = vsel %vm224_vm1, %v6811_v6, %v6812_v14 }
 0x477   :  { %v6820_v62 = vpop.permute.xlu1 %6819  ;;  %v6815_v28 = vpop.permute.xlu0 %6814  ;;  %v6000_v45 = vpack.c.bf16 %v2275_v43, %v2222_v53 }
 0x478   :  { %v6821_v34 = vunpack.i.l.bf16 %v6820_v62  ;;  %v6816_v37 = vunpack.i.l.bf16 %v6815_v28  ;;  %v6822_v54 = vunpack.i.h.bf16 %v6820_v62  ;;  %v6817_v19 = vunpack.i.h.bf16 %v6815_v28 }
 0x479   :  { %3234 = vrot.lane.b32.xlu1 %v8649_v35, %s10171_s22  ;;  %7074 = vrot.lane.b32.xlu0 %v8697_v47, %s10172_s28 }
 0x47a   :  { %v2274_v13 = vsel %vm224_vm1, %v6821_v34, %v6811_v6  ;;  %v2221_v11 = vsel %vm170_vm0, %v6816_v37, %v6806_v41  ;;  %6001 = vmatprep.subr.bf16.mxu0 %v6000_v45  ;;  %v2276_v15 = vsel %vm224_vm1, %v6812_v14, %v6822_v54  ;;  %v2223_v8 = vsel %vm170_vm0, %v6807_v59, %v6817_v19 }
 0x47b   :  { %v8763_v56 = vpop.permute.xlu1 %6829  ;;  %v8765_v16 = vpop.permute.xlu0 %6824  ;;  %v6002_v9 = vpack.c.bf16 %v2274_v13, %v2221_v11  ;;  %v6050_v3 = vpack.c.bf16 %v2276_v15, %v2223_v8  ;;  %v8798_v6 = vmul.f32 %v2165_v58, %v8563_v30 }
 0x47c   :  { %v10124_v23 = vunpack.i.h.bf16 %v8763_v56  ;;  %v6831_v50 = vunpack.i.l.bf16 %v8763_v56  ;;  %v10123_v7 = vunpack.i.h.bf16 %v8765_v16  ;;  %v6826_v20 = vunpack.i.l.bf16 %v8765_v16 }
 0x47d   :  { %7079 = vrot.lane.b32.xlu1 %v8701_v40, %s10129_s17  ;;  %3287 = vrot.lane.b32.xlu0 %v8649_v35, %s10172_s28  ;;  %v8812_v0 = vpack.i.bf16 %v8798_v6, %v8693_v38 }
 0x47e   :  { %v8780_v25 = vsel %vm224_vm1, %v6831_v50, %v10124_v23  ;;  %v8785_v21 = vsel %vm170_vm0, %v6826_v20, %v10123_v7  ;;  %6003 = vmatpush1.bf16.msra.mxu0 %v6002_v9  ;;  %v2224_v39 = vsel %vm170_vm0, %v6817_v19, %v6826_v20  ;;  %v2277_v26 = vsel %vm224_vm1, %v6822_v54, %v6831_v50  ;;  %v8817_v19 = vld [vmem:[%s10042_s3 + $0x8] sm:$0xff] }
 0x47f   :  { %v6840_v49 = vpop.permute.xlu1 %6839  ;;  %v6835_v33 = vpop.permute.xlu0 %6834  ;;  %v6048_v55 = vpack.c.bf16 %v2277_v26, %v2224_v39  ;;  %5812 = vmatprep.mubr.msk.f32.mxu0 %vm1631_vm4, %v8817_v19  ;;  %5813 = vmatprep.mubr.msk.f32.mxu1 %vm1631_vm4, %v8817_v19 }
 0x480   :  { %v6842_v27 = vunpack.i.h.bf16 %v6840_v49  ;;  %v6841_v31 = vunpack.i.l.bf16 %v6840_v49  ;;  %v6837_v44 = vunpack.i.h.bf16 %v6835_v33  ;;  %v6836_v1 = vunpack.i.l.bf16 %v6835_v33 }
 0x481   :  { %7089 = vrot.lane.b32.xlu1 %v8697_v47, %s10129_s17  ;;  %7084 = vrot.lane.b32.xlu0 %v8701_v40, %s10226_s25 }
 0x482   :  { %6049 = vmatprep.subr.bf16.mxu1 %v6048_v55  ;;  %v2328_v61 = vsel %vm278_vm2, %v6836_v1, %v6837_v44  ;;  %v2381_v14 = vsel %vm332_vm3, %v6841_v31, %v6842_v27 }
 0x483   :  { %6051 = vmatpush1.bf16.msra.mxu1 %v6050_v3  ;;  %v6850_v59 = vpop.permute.xlu1 %6849  ;;  %v6845_v41 = vpop.permute.xlu0 %6844  ;;  %v6004_v53 = vpack.c.bf16 %v2381_v14, %v2328_v61 }
 0x484   :  { %v6851_v43 = vunpack.i.l.bf16 %v6850_v59  ;;  %v6846_v36 = vunpack.i.l.bf16 %v6845_v41  ;;  %v6852_v62 = vunpack.i.h.bf16 %v6850_v59  ;;  %v6847_v28 = vunpack.i.h.bf16 %v6845_v41 }
 0x485   :  { %3340 = vrot.lane.b32.xlu1 %v8649_v35, %s10129_s17  ;;  %7094 = vrot.lane.b32.xlu0 %v8697_v47, %s10226_s25 }
 0x486   :  { %v2380_v40 = vsel %vm332_vm3, %v6851_v43, %v6841_v31  ;;  %v2327_v45 = vsel %vm278_vm2, %v6846_v36, %v6836_v1  ;;  %6005 = vmatprep.subr.bf16.mxu0 %v6004_v53  ;;  %v2382_v50 = vsel %vm332_vm3, %v6842_v27, %v6852_v62  ;;  %v2329_v20 = vsel %vm278_vm2, %v6837_v44, %v6847_v28 }
 0x487   :  { %v8806_v34 = vpop.permute.xlu1 %6859  ;;  %v8808_v37 = vpop.permute.xlu0 %6854  ;;  %v6006_v54 = vpack.c.bf16 %v2380_v40, %v2327_v45  ;;  %v6054_v3 = vpack.c.bf16 %v2382_v50, %v2329_v20 }
 0x488   :  { %v10120_v47 = vunpack.i.h.bf16 %v8806_v34  ;;  %v6861_v13 = vunpack.i.l.bf16 %v8806_v34  ;;  %v10121_v11 = vunpack.i.h.bf16 %v8808_v37  ;;  %v6856_v9 = vunpack.i.l.bf16 %v8808_v37 }
 0x489   :  { %7099 = vrot.lane.b32.xlu1 %v8812_v0, %s10127_s16  ;;  %3393 = vrot.lane.b32.xlu0 %v8649_v35, %s10226_s25 }
 0x48a   :  { %v8836_v58 = vsel %vm332_vm3, %v6861_v13, %v10120_v47  ;;  %v8841_v15 = vsel %vm278_vm2, %v6856_v9, %v10121_v11  ;;  %6007 = vmatpush1.bf16.msra.mxu0 %v6006_v54  ;;  %v2330_v8 = vsel %vm278_vm2, %v6847_v28, %v6856_v9  ;;  %v2383_v39 = vsel %vm332_vm3, %v6852_v62, %v6861_v13 }
 0x48b   :  { %v6870_v26 = vpop.permute.xlu1 %6869  ;;  %v6865_v49 = vpop.permute.xlu0 %6864  ;;  %v6052_v33 = vpack.c.bf16 %v2383_v39, %v2330_v8 }
 0x48c   :  { %v6872_v27 = vunpack.i.h.bf16 %v6870_v26  ;;  %v6871_v31 = vunpack.i.l.bf16 %v6870_v26  ;;  %v6867_v44 = vunpack.i.h.bf16 %v6865_v49  ;;  %v6866_v1 = vunpack.i.l.bf16 %v6865_v49 }
 0x48d   :  { %3440 = vrot.lane.b32.xlu1 %v8636_v22, %s10149_s19  ;;  %7104 = vrot.lane.b32.xlu0 %v8812_v0, %s10227_s21 }
 0x48e   :  { %6053 = vmatprep.subr.bf16.mxu1 %v6052_v33  ;;  %v2434_v61 = vsel %vm386_vm5, %v6866_v1, %v6867_v44  ;;  %v2487_v14 = vsel %vm10228_vm7, %v6871_v31, %v6872_v27  ;;  %vm10235_vm7 = vcmask 162816  }
 0x48f   :  { %6055 = vmatpush1.bf16.msra.mxu1 %v6054_v3  ;;  %v6880_v59 = vpop.permute.xlu1 %6879  ;;  %v6875_v41 = vpop.permute.xlu0 %6874  ;;  %v6008_v53 = vpack.c.bf16 %v2487_v14, %v2434_v61 }
 0x490   :  { %v6881_v43 = vunpack.i.l.bf16 %v6880_v59  ;;  %v6876_v36 = vunpack.i.l.bf16 %v6875_v41  ;;  %v6882_v62 = vunpack.i.h.bf16 %v6880_v59  ;;  %v6877_v28 = vunpack.i.h.bf16 %v6875_v41 }
 0x491   :  { %3438 = vrot.lane.b32.xlu1 %v8633_v24, %s10149_s19  ;;  %3442 = vrot.lane.b32.xlu0 %v8639_v57, %s10149_s19 }
 0x492   :  { %v2486_v40 = vsel %vm10229_vm8, %v6881_v43, %v6871_v31  ;;  %v2433_v45 = vsel %vm386_vm5, %v6876_v36, %v6866_v1  ;;  %6009 = vmatprep.subr.bf16.mxu0 %v6008_v53  ;;  %v2488_v26 = vsel %vm10230_vm6, %v6872_v27, %v6882_v62  ;;  %v2435_v49 = vsel %vm386_vm5, %v6867_v44, %v6877_v28  ;;  %vm10236_vm8 = vmmov %vm10235_vm7 }
 0x493   :  { %v8859_v54 = vpop.permute.xlu1 %6889  ;;  %v8861_v13 = vpop.permute.xlu0 %6884  ;;  %v6010_v9 = vpack.c.bf16 %v2486_v40, %v2433_v45  ;;  %v6058_v36 = vpack.c.bf16 %v2488_v26, %v2435_v49  ;;  %vm10237_vm6 = vmmov %vm10234_vm9 }
 0x494   :  { %v10113_v50 = vunpack.i.h.bf16 %v8859_v54  ;;  %v6891_v20 = vunpack.i.l.bf16 %v8859_v54  ;;  %v10115_v8 = vunpack.i.h.bf16 %v8861_v13  ;;  %v6886_v39 = vunpack.i.l.bf16 %v8861_v13 }
 0x495   :  { %7114 = vrot.lane.b32.xlu1 %v8812_v0, %s10231_s23  ;;  %7109 = vrot.lane.b32.xlu0 %v8812_v0, %s10216_s7 }
 0x496   :  { %v8876_v33 = vsel %vm10232_vm10, %v6891_v20, %v10113_v50  ;;  %v8881_v31 = vsel %vm386_vm5, %v6886_v39, %v10115_v8  ;;  %6011 = vmatpush1.bf16.msra.mxu0 %v6010_v9  ;;  %v2436_v27 = vsel %vm386_vm5, %v6877_v28, %v6886_v39  ;;  %v2489_v44 = vsel %vm10233_vm11, %v6882_v62, %v6891_v20  ;;  %vm10238_vm10 = vmmov %vm10235_vm7 }
 0x497   :  { %v6900_v1 = vpop.permute.xlu1 %6899  ;;  %v6895_v3 = vpop.permute.xlu0 %6894  ;;  %v6056_v61 = vpack.c.bf16 %v2489_v44, %v2436_v27  ;;  %vm10239_vm11 = vmmov %vm10237_vm6 }
 0x498   :  { %v6902_v59 = vunpack.i.h.bf16 %v6900_v1  ;;  %v6901_v41 = vunpack.i.l.bf16 %v6900_v1  ;;  %v6897_v53 = vunpack.i.h.bf16 %v6895_v3  ;;  %v6896_v43 = vunpack.i.l.bf16 %v6895_v3 }
 0x499   :  { %3446 = vrot.lane.b32.xlu1 %v8649_v35, %s10149_s19  ;;  %3444 = vrot.lane.b32.xlu0 %v8646_v42, %s10149_s19 }
 0x49a   :  { %6057 = vmatprep.subr.bf16.mxu1 %v6056_v61  ;;  %v2540_v62 = vsel %vm10234_vm9, %v6896_v43, %v6897_v53  ;;  %v2593_v28 = vsel %vm10235_vm7, %v6901_v41, %v6902_v59  ;;  %vm10240_vm9 = vmmov %vm10235_vm7 }
 0x49b   :  { %6059 = vmatpush1.bf16.msra.mxu1 %v6058_v36  ;;  %v6910_v40 = vpop.permute.xlu1 %6909  ;;  %v6905_v45 = vpop.permute.xlu0 %6904  ;;  %v6012_v9 = vpack.c.bf16 %v2593_v28, %v2540_v62  ;;  %vm10241_vm7 = vmmov %vm10237_vm6 }
 0x49c   :  { %v6911_v20 = vunpack.i.l.bf16 %v6910_v40  ;;  %v6906_v39 = vunpack.i.l.bf16 %v6905_v45  ;;  %v6912_v27 = vunpack.i.h.bf16 %v6910_v40  ;;  %v6907_v44 = vunpack.i.h.bf16 %v6905_v45 }
 0x49d   :  { %7124 = vrot.lane.b32.xlu1 %v8812_v0, %s10217_s8  ;;  %7119 = vrot.lane.b32.xlu0 %v8812_v0, %s10218_s29 }
 0x49e   :  { %v2592_v26 = vsel %vm10236_vm8, %v6911_v20, %v6901_v41  ;;  %v2539_v49 = vsel %vm10237_vm6, %v6906_v39, %v6896_v43  ;;  %6013 = vmatprep.subr.bf16.mxu0 %v6012_v9  ;;  %v2594_v45 = vsel %vm10238_vm10, %v6902_v59, %v6912_v27  ;;  %v2541_v41 = vsel %vm10239_vm11, %v6897_v53, %v6907_v44  ;;  %vm10242_vm8 = vmmov %vm10237_vm6 }
 0x49f   :  { %v8899_v1 = vpop.permute.xlu1 %6919  ;;  %v8901_v3 = vpop.permute.xlu0 %6914  ;;  %v6014_v61 = vpack.c.bf16 %v2592_v26, %v2539_v49  ;;  %vm10243_vm6 = vmmov %vm10240_vm9  ;;  %vm10244_vm10 = vcmask 154624   ;;  %vm10245_vm11 = vcmask 146432  }
 0x4a0   :  { %v10114_v36 = vunpack.i.h.bf16 %v8899_v1  ;;  %v6921_v62 = vunpack.i.l.bf16 %v8899_v1  ;;  %v10116_v28 = vunpack.i.h.bf16 %v8901_v3  ;;  %v6916_v40 = vunpack.i.l.bf16 %v8901_v3 }
 0x4a1   :  { %7134 = vrot.lane.b32.xlu1 %v8812_v0, %s10219_s0  ;;  %7129 = vrot.lane.b32.xlu0 %v8812_v0, %s10220_s24 }
 0x4a2   :  { %v8916_v43 = vsel %vm10240_vm9, %v6921_v62, %v10114_v36  ;;  %v8921_v9 = vsel %vm10241_vm7, %v6916_v40, %v10116_v28  ;;  %6015 = vmatpush1.bf16.msra.mxu0 %v6014_v61  ;;  %v2542_v59 = vsel %vm10242_vm8, %v6907_v44, %v6916_v40  ;;  %v2595_v53 = vsel %vm10243_vm6, %v6912_v27, %v6921_v62  ;;  %vm10246_vm9 = vmmov %vm10245_vm11 }
 0x4a3   :  { %v6930_v20 = vpop.permute.xlu1 %6929  ;;  %v6925_v39 = vpop.permute.xlu0 %6924  ;;  %v6060_v26 = vpack.c.bf16 %v2595_v53, %v2542_v59  ;;  %v6062_v61 = vpack.c.bf16 %v2594_v45, %v2541_v41  ;;  %vm10247_vm7 = vmmov %vm10244_vm10 }
 0x4a4   :  { %v6932_v14 = vunpack.i.h.bf16 %v6930_v20  ;;  %v6931_v50 = vunpack.i.l.bf16 %v6930_v20  ;;  %v6927_v36 = vunpack.i.h.bf16 %v6925_v39  ;;  %v6926_v8 = vunpack.i.l.bf16 %v6925_v39  ;;  %vm10248_vm8 = vmmov %vm10246_vm9 }
 0x4a5   :  { %7144 = vrot.lane.b32.xlu1 %v8812_v0, %s10221_s2  ;;  %7139 = vrot.lane.b32.xlu0 %v8812_v0, %s10222_s11  ;;  %vm10249_vm6 = vmmov %vm10247_vm7 }
 0x4a6   :  { %6061 = vmatprep.subr.bf16.mxu1 %v6060_v26  ;;  %v2646_v27 = vsel %vm10244_vm10, %v6926_v8, %v6927_v36  ;;  %v2699_v44 = vsel %vm10245_vm11, %v6931_v50, %v6932_v14  ;;  %vm10250_vm10 = vmmov %vm10248_vm8 }
 0x4a7   :  { %6063 = vmatpush1.bf16.msra.mxu1 %v6062_v61  ;;  %v6940_v62 = vpop.permute.xlu1 %6939  ;;  %v6935_v40 = vpop.permute.xlu0 %6934  ;;  %v6016_v59 = vpack.c.bf16 %v2699_v44, %v2646_v27  ;;  %vm10251_vm11 = vmmov %vm10249_vm6 }
 0x4a8   :  { %v6941_v53 = vunpack.i.l.bf16 %v6940_v62  ;;  %v6936_v20 = vunpack.i.l.bf16 %v6935_v40  ;;  %v6942_v49 = vunpack.i.h.bf16 %v6940_v62  ;;  %v6937_v39 = vunpack.i.h.bf16 %v6935_v40 }
 0x4a9   :  { %7154 = vrot.lane.b32.xlu1 %v8812_v0, %s10223_s12  ;;  %7149 = vrot.lane.b32.xlu0 %v8812_v0, %s10224_s1 }
 0x4aa   :  { %v2698_v45 = vsel %vm10246_vm9, %v6941_v53, %v6931_v50  ;;  %v2645_v41 = vsel %vm10247_vm7, %v6936_v20, %v6926_v8  ;;  %6017 = vmatprep.subr.bf16.mxu0 %v6016_v59  ;;  %v2700_v60 = vsel %vm10248_vm8, %v6932_v14, %v6942_v49  ;;  %v2647_v50 = vsel %vm10249_vm6, %v6927_v36, %v6937_v39  ;;  %vm10252_vm9 = vmmov %vm10249_vm6 }
 0x4ab   :  { %v8939_v26 = vpop.permute.xlu1 %6949  ;;  %v8941_v61 = vpop.permute.xlu0 %6944  ;;  %v6018_v27 = vpack.c.bf16 %v2698_v45, %v2645_v41  ;;  %vm10253_vm7 = vmmov %vm10248_vm8  ;;  %v7158_v45 = vpack.i.bf16 %v10131_v18, %v8798_v6  ;;  %vm10254_vm8 = vcmask 15360   ;;  %vm10255_vm6 = vcmask 7168  }
 0x4ac   :  { %v10119_v44 = vunpack.i.h.bf16 %v8939_v26  ;;  %v6951_v62 = vunpack.i.l.bf16 %v8939_v26  ;;  %v10122_v40 = vunpack.i.h.bf16 %v8941_v61  ;;  %v6946_v28 = vunpack.i.l.bf16 %v8941_v61 }
 0x4ad   :  { %3240 = vrot.lane.b32.xlu1 %v10131_v18, %s10171_s22  ;;  %3293 = vrot.lane.b32.xlu0 %v10131_v18, %s10172_s28 }
 0x4ae   :  { %v8956_v8 = vsel %vm10250_vm10, %v6951_v62, %v10119_v44  ;;  %v8961_v59 = vsel %vm10251_vm11, %v6946_v28, %v10122_v40  ;;  %6019 = vmatpush1.bf16.msra.mxu0 %v6018_v27  ;;  %v2648_v14 = vsel %vm10252_vm9, %v6937_v39, %v6946_v28  ;;  %v2701_v36 = vsel %vm10253_vm7, %v6942_v49, %v6951_v62  ;;  %vm10256_vm10 = vmmov %vm10255_vm6 }
 0x4af   :  { %v6960_v53 = vpop.permute.xlu1 %6959  ;;  %v6955_v20 = vpop.permute.xlu0 %6954  ;;  %v6064_v41 = vpack.c.bf16 %v2701_v36, %v2648_v14  ;;  %v6066_v28 = vpack.c.bf16 %v2700_v60, %v2647_v50  ;;  %vm10257_vm11 = vmmov %vm10254_vm8 }
 0x4b0   :  { %v6962_v55 = vunpack.i.h.bf16 %v6960_v53  ;;  %v6961_v47 = vunpack.i.l.bf16 %v6960_v53  ;;  %v6957_v11 = vunpack.i.h.bf16 %v6955_v20  ;;  %v6956_v5 = vunpack.i.l.bf16 %v6955_v20  ;;  %vm10258_vm9 = vmmov %vm10255_vm6 }
 0x4b1   :  { %7164 = vrot.lane.b32.xlu1 %v8812_v0, %s10165_s26  ;;  %7159 = vrot.lane.b32.xlu0 %v7158_v45, %s10225_s15  ;;  %vm10259_vm7 = vmmov %vm10254_vm8 }
 0x4b2   :  { %6065 = vmatprep.subr.bf16.mxu1 %v6064_v41  ;;  %v2752_v49 = vsel %vm10254_vm8, %v6956_v5, %v6957_v11  ;;  %v2805_v39 = vsel %vm10255_vm6, %v6961_v47, %v6962_v55  ;;  %vm10260_vm8 = vmmov %vm10255_vm6 }
 0x4b3   :  { %6067 = vmatpush1.bf16.msra.mxu1 %v6066_v28  ;;  %v6970_v27 = vpop.permute.xlu1 %6969  ;;  %v6965_v62 = vpop.permute.xlu0 %6964  ;;  %v6020_v14 = vpack.c.bf16 %v2805_v39, %v2752_v49  ;;  %vm10261_vm6 = vmmov %vm10259_vm7 }
 0x4b4   :  { %v6971_v36 = vunpack.i.l.bf16 %v6970_v27  ;;  %v6966_v44 = vunpack.i.l.bf16 %v6965_v62  ;;  %v6972_v53 = vunpack.i.h.bf16 %v6970_v27  ;;  %v6967_v40 = vunpack.i.h.bf16 %v6965_v62 }
 0x4b5   :  { %7174 = vrot.lane.b32.xlu1 %v8812_v0, %s10167_s18  ;;  %7169 = vrot.lane.b32.xlu0 %v8812_v0, %s10166_s20 }
 0x4b6   :  { %v2804_v60 = vsel %vm10256_vm10, %v6971_v36, %v6961_v47  ;;  %v2751_v50 = vsel %vm10257_vm11, %v6966_v44, %v6956_v5  ;;  %6021 = vmatprep.subr.bf16.mxu0 %v6020_v14  ;;  %v2806_v62 = vsel %vm10258_vm9, %v6962_v55, %v6972_v53  ;;  %v2753_v47 = vsel %vm10259_vm7, %v6957_v11, %v6967_v40  ;;  %vm10262_vm10 = vmmov %vm10261_vm6 }
 0x4b7   :  { %v8980_v20 = vpop.permute.xlu1 %6979  ;;  %v8982_v45 = vpop.permute.xlu0 %6974  ;;  %v6022_v41 = vpack.c.bf16 %v2804_v60, %v2751_v50  ;;  %vm10263_vm11 = vmmov %vm10260_vm8  ;;  %vm10264_vm9 = vcmask 1039360  }
 0x4b8   :  { %v10125_v28 = vunpack.i.h.bf16 %v8980_v20  ;;  %v6981_v49 = vunpack.i.l.bf16 %v8980_v20  ;;  %v10126_v39 = vunpack.i.h.bf16 %v8982_v45  ;;  %v6976_v27 = vunpack.i.l.bf16 %v8982_v45  ;;  %vm10265_vm7 = vmmov %vm10264_vm9 }
 0x4b9   :  { %7184 = vrot.lane.b32.xlu1 %v8812_v0, %s10169_s14  ;;  %7179 = vrot.lane.b32.xlu0 %v8812_v0, %s10168_s30 }
 0x4ba   :  { %v8997_v5 = vsel %vm10260_vm8, %v6981_v49, %v10125_v28  ;;  %v9002_v44 = vsel %vm10261_vm6, %v6976_v27, %v10126_v39  ;;  %6023 = vmatpush1.bf16.msra.mxu0 %v6022_v41  ;;  %v2754_v55 = vsel %vm10262_vm10, %v6967_v40, %v6976_v27  ;;  %v2807_v11 = vsel %vm10263_vm11, %v6972_v53, %v6981_v49  ;;  %vm10266_vm8 = vmmov %vm10265_vm7 }
 0x4bb   :  { %v6990_v14 = vpop.permute.xlu1 %6989  ;;  %v6985_v36 = vpop.permute.xlu0 %6984  ;;  %v6068_v60 = vpack.c.bf16 %v2807_v11, %v2754_v55  ;;  %v6070_v41 = vpack.c.bf16 %v2806_v62, %v2753_v47  ;;  %vm10267_vm6 = vmmov %vm10265_vm7  ;;  %vm10268_vm10 = vcmask 1031168   ;;  %vm10269_vm11 = vcmask 900096  }
 0x4bc   :  { %v6991_v7 = vunpack.i.l.bf16 %v6990_v14  ;;  %v6987_v23 = vunpack.i.h.bf16 %v6985_v36  ;;  %v6986_v28 = vunpack.i.l.bf16 %v6985_v36  ;;  %v6992_v39 = vunpack.i.h.bf16 %v6990_v14 }
 0x4bd   :  { %7194 = vrot.lane.b32.xlu1 %v8812_v0, %s10171_s22  ;;  %7189 = vrot.lane.b32.xlu0 %v8812_v0, %s10170_s27 }
 0x4be   :  { %v2871_v40 = vsel %vm10264_vm9, %v6991_v7, %v6986_v28  ;;  %6069 = vmatprep.subr.bf16.mxu1 %v6068_v60  ;;  %v2872_v53 = vsel %vm10265_vm7, %v6986_v28, %v6987_v23  ;;  %v2873_v7 = vsel %vm10266_vm8, %v6987_v23, %v6992_v39  ;;  %vm10270_vm9 = vmmov %vm10268_vm10 }
 0x4bf   :  { %6071 = vmatpush1.bf16.msra.mxu1 %v6070_v41  ;;  %v7000_v49 = vpop.permute.xlu1 %6999  ;;  %v9014_v27 = vpop.permute.xlu0 %6994  ;;  %v6024_v55 = vpack.c.bf16 %v2872_v53, %v8636_v22  ;;  %v6026_v11 = vpack.c.bf16 %v2871_v40, %v8633_v24  ;;  %v6074_v23 = vpack.c.bf16 %v2873_v7, %v8639_v57  ;;  %vm10271_vm7 = vmmov %vm10269_vm11 }
 0x4c0   :  { %v10133_v36 = vunpack.i.l.bf16 %v9014_v27  ;;  %v7002_v62 = vunpack.i.h.bf16 %v7000_v49  ;;  %v7001_v28 = vunpack.i.l.bf16 %v7000_v49  ;;  %vm10272_vm8 = vmmov %vm10271_vm7 }
 0x4c1   :  { %7204 = vrot.lane.b32.xlu1 %v8812_v0, %s10129_s17  ;;  %7199 = vrot.lane.b32.xlu0 %v8812_v0, %s10172_s28 }
 0x4c2   :  { %6025 = vmatprep.subr.bf16.mxu0 %v6024_v55  ;;  %v2874_v47 = vsel %vm10267_vm6, %v6992_v39, %v10133_v36  ;;  %v2925_v53 = vsel %vm10268_vm10, %v7001_v28, %v7002_v62  ;;  %vm10273_vm6 = vmmov %vm10270_vm9 }
 0x4c3   :  { %6027 = vmatpush1.bf16.msra.mxu0 %v6026_v11  ;;  %v7010_v22 = vpop.permute.xlu1 %7009  ;;  %v7005_v24 = vpop.permute.xlu0 %7004  ;;  %v6072_v14 = vpack.c.bf16 %v2874_v47, %v8646_v42  ;;  %vm10274_vm10 = vmmov %vm10271_vm7 }
 0x4c4   :  { %v7007_v60 = vunpack.i.h.bf16 %v7005_v24  ;;  %v7006_v41 = vunpack.i.l.bf16 %v7005_v24  ;;  %v7011_v40 = vunpack.i.l.bf16 %v7010_v22  ;;  %v7012_v24 = vunpack.i.h.bf16 %v7010_v22 }
 0x4c5   :  { %3346 = vrot.lane.b32.xlu1 %v10131_v18, %s10129_s17  ;;  %7209 = vrot.lane.b32.xlu0 %v8812_v0, %s10226_s25  ;;  %s10369_s17 = smov 86  }
 0x4c6   :  { %6073 = vmatprep.subr.bf16.mxu1 %v6072_v14  ;;  %v2978_v39 = vsel %vm10269_vm11, %v7006_v41, %v7007_v60  ;;  %v2924_v57 = vsel %vm10270_vm9, %v7011_v40, %v7001_v28  ;;  %vm10275_vm11 = vmmov %vm10273_vm6  ;;  %vm10276_vm9 = vcmask 891904  }
 0x4c7   :  { %6075 = vmatpush1.bf16.msra.mxu1 %v6074_v23  ;;  %v9035_v49 = vpop.permute.xlu1 %2916  ;;  %v7015_v42 = vpop.permute.xlu0 %7014  ;;  %v6028_v55 = vpack.c.bf16 %v2978_v39, %v2925_v53 }
 0x4c8   :  { %v7017_v11 = vunpack.i.h.bf16 %v7015_v42  ;;  %v7016_v47 = vunpack.i.l.bf16 %v7015_v42  ;;  %v2927_v22 = vsel %vm10273_vm6, %v7012_v24, %v9035_v49  ;;  %v2926_v42 = vsel %vm10275_vm11, %v7002_v62, %v7012_v24 }
 0x4c9   :  { %3448 = vrot.lane.b32.xlu1 %v8693_v38, %s10149_s19  ;;  %3399 = vrot.lane.b32.xlu0 %v10131_v18, %s10226_s25 }
 0x4ca   :  { %v2977_v0 = vsel %vm10271_vm7, %v7016_v47, %v7006_v41  ;;  %6029 = vmatprep.subr.bf16.mxu0 %v6028_v55  ;;  %v2979_v7 = vsel %vm10272_vm8, %v7007_v60, %v7017_v11  ;;  %v3652_v55 = vld [vmem:[%s10043_s4] sm:$0xff]  ;;  %vm10277_vm7 = vcmask 883712   ;;  %vm10278_vm8 = vmmov %vm10276_vm9 }
 0x4cb   :  { %v7020_v14 = vpop.permute.xlu1 %7019  ;;  %v9044_v23 = vpop.permute.xlu0 %2969  ;;  %v6030_v53 = vpack.c.bf16 %v2977_v0, %v2924_v57  ;;  %v6078_v40 = vpack.c.bf16 %v2979_v7, %v2926_v42  ;;  %vm10279_vm6 = vmmov %vm10277_vm7 }
 0x4cc   :  { %v2980_v39 = vsel %vm10274_vm10, %v7017_v11, %v9044_v23  ;;  %v7022_v60 = vunpack.i.h.bf16 %v7020_v14  ;;  %v7021_v41 = vunpack.i.l.bf16 %v7020_v14  ;;  %vm10280_vm10 = vmmov %vm10279_vm6 }
 0x4cd   :  { %3452 = vrot.lane.b32.xlu1 %v10131_v18, %s10149_s19  ;;  %3450 = vrot.lane.b32.xlu0 %v8798_v6, %s10149_s19  ;;  %v6076_v28 = vpack.c.bf16 %v2980_v39, %v2927_v22  ;;  %vm10281_vm11 = vmmov %vm10278_vm8 }
 0x4ce   :  { %6031 = vmatpush1.bf16.msra.mxu0 %v6030_v53  ;;  %v3031_v0 = vsel %vm10276_vm9, %v7021_v41, %v7022_v60  ;;  %vm10282_vm9 = vmmov %vm10279_vm6 }
 0x4cf   :  { %v7030_v47 = vpop.permute.xlu1 %7029  ;;  %v7025_v57 = vpop.permute.xlu0 %7024  ;;  %6077 = vmatprep.subr.bf16.mxu1 %v6076_v28 }
 0x4d0   :  { %v7027_v11 = vunpack.i.h.bf16 %v7025_v57  ;;  %v7026_v62 = vunpack.i.l.bf16 %v7025_v57  ;;  %6079 = vmatpush1.bf16.msra.mxu1 %v6078_v40  ;;  %v7031_v24 = vunpack.i.l.bf16 %v7030_v47  ;;  %v7032_v18 = vunpack.i.h.bf16 %v7030_v47 }
 0x4d1   :  { %3655 = vperm.xlu0 %6799, %v3652_v55  }
 0x4d2   :  { %v3084_v22 = vsel %vm10277_vm7, %v7026_v62, %v7027_v11  ;;  %v3030_v36 = vsel %vm10278_vm8, %v7031_v24, %v7021_v41  ;;  %vm10283_vm7 = vmmov %vm10278_vm8  ;;  %vm10284_vm8 = vcmask 875520  }
 0x4d3   :  { %v9060_v39 = vpop.permute.xlu1 %3022  ;;  %v7035_v14 = vpop.permute.xlu0 %7034  ;;  %v6032_v7 = vpack.c.bf16 %v3084_v22, %v3031_v0  ;;  %v3032_v22 = vsel %vm10283_vm7, %v7022_v60, %v7032_v18  ;;  %vm10289_vm7 = vmmov %vm10284_vm8 }
 0x4d4   :  { %v7037_v53 = vunpack.i.h.bf16 %v7035_v14  ;;  %v7036_v42 = vunpack.i.l.bf16 %v7035_v14  ;;  %v3033_v30 = vsel %vm10281_vm11, %v7032_v18, %v9060_v39 }
 0x4d5   :  { %6033 = vmatprep.subr.bf16.mxu0 %v6032_v7 }
 0x4d6   :  { %v3083_v28 = vsel %vm10279_vm6, %v7036_v42, %v7026_v62  ;;  %v3085_v40 = vsel %vm10280_vm10, %v7027_v11, %v7037_v53  ;;  %vm10285_vm6 = vcmask 867328   ;;  %vm10286_vm10 = vmmov %vm10284_vm8 }
 0x4d7   :  { %v7040_v55 = vpop.permute.xlu1 %7039  ;;  %v9065_v57 = vpop.permute.xlu0 %3075  ;;  %v6034_v50 = vpack.c.bf16 %v3083_v28, %v3030_v36  ;;  %v6082_v24 = vpack.c.bf16 %v3085_v40, %v3032_v22  ;;  %vm10287_vm11 = vmmov %vm10285_vm6 }
 0x4d8   :  { %v3086_v0 = vsel %vm10282_vm9, %v7037_v53, %v9065_v57  ;;  %v7042_v14 = vunpack.i.h.bf16 %v7040_v55  ;;  %v7041_v41 = vunpack.i.l.bf16 %v7040_v55  ;;  %vm10288_vm9 = vmmov %vm10285_vm6 }
 0x4d9   :  { %6035 = vmatpush1.bf16.msra.mxu0 %v6034_v50  ;;  %v6080_v47 = vpack.c.bf16 %v3086_v0, %v3033_v30 }
 0x4da   :  { %v3137_v28 = vsel %vm10284_vm8, %v7041_v41, %v7042_v14  ;;  %vm10290_vm8 = vmmov %vm10285_vm6 }
 0x4db   :  { %v7050_v62 = vpop.permute.xlu1 %7049  ;;  %v7045_v7 = vpop.permute.xlu0 %7044  ;;  %6081 = vmatprep.subr.bf16.mxu1 %v6080_v47 }
 0x4dc   :  { %v7047_v11 = vunpack.i.h.bf16 %v7045_v7  ;;  %v7046_v42 = vunpack.i.l.bf16 %v7045_v7  ;;  %6083 = vmatpush1.bf16.msra.mxu1 %v6082_v24  ;;  %v7051_v36 = vunpack.i.l.bf16 %v7050_v62  ;;  %v7052_v60 = vunpack.i.h.bf16 %v7050_v62 }
 0x4de   :  { %v3190_v4 = vsel %vm10285_vm6, %v7046_v42, %v7047_v11  ;;  %v3136_v40 = vsel %vm10286_vm10, %v7051_v36, %v7041_v41  ;;  %vm10291_vm6 = vmmov %vm10289_vm7  ;;  %vm10292_vm10 = vcmask 728064  }
 0x4df   :  { %v9074_v46 = vpop.permute.xlu1 %3128  ;;  %v7055_v53 = vpop.permute.xlu0 %7054  ;;  %v6036_v18 = vpack.c.bf16 %v3190_v4, %v3137_v28  ;;  %v3138_v28 = vsel %vm10291_vm6, %v7042_v14, %v7052_v60 }
 0x4e0   :  { %v7057_v50 = vunpack.i.h.bf16 %v7055_v53  ;;  %v7056_v30 = vunpack.i.l.bf16 %v7055_v53  ;;  %v3139_v7 = vsel %vm10289_vm7, %v7052_v60, %v9074_v46 }
 0x4e1   :  { %6037 = vmatprep.subr.bf16.mxu0 %v6036_v18 }
 0x4e2   :  { %v3189_v55 = vsel %vm10287_vm11, %v7056_v30, %v7046_v42  ;;  %v3191_v0 = vsel %vm10288_vm9, %v7047_v11, %v7057_v50  ;;  %vm10293_vm11 = vmmov %vm10292_vm10 }
 0x4e3   :  { %v7060_v22 = vpop.permute.xlu1 %7059  ;;  %v9079_v47 = vpop.permute.xlu0 %3181  ;;  %v6038_v24 = vpack.c.bf16 %v3189_v55, %v3136_v40  ;;  %v6086_v36 = vpack.c.bf16 %v3191_v0, %v3138_v28  ;;  %vm10294_vm9 = vmmov %vm10292_vm10 }
 0x4e4   :  { %v3192_v4 = vsel %vm10290_vm8, %v7057_v50, %v9079_v47  ;;  %v7062_v53 = vunpack.i.h.bf16 %v7060_v22  ;;  %v7061_v41 = vunpack.i.l.bf16 %v7060_v22  ;;  %vm10295_vm7 = vmmov %vm10294_vm9  ;;  %vm10306_vm8 = vcmask 179200  }
 0x4e5   :  { %6039 = vmatpush1.bf16.msra.mxu0 %v6038_v24  ;;  %v6084_v62 = vpack.c.bf16 %v3192_v4, %v3139_v7  ;;  %vm10307_vm6 = vmmov %vm10306_vm8 }
 0x4e6   :  { %v3243_v55 = vsel %vm1210_vm13, %v7061_v41, %v7062_v53 }
 0x4e7   :  { %v7070_v42 = vpop.permute.xlu1 %7069  ;;  %v7065_v18 = vpop.permute.xlu0 %7064  ;;  %6085 = vmatprep.subr.bf16.mxu1 %v6084_v62 }
 0x4e8   :  { %v7067_v11 = vunpack.i.h.bf16 %v7065_v18  ;;  %v7066_v30 = vunpack.i.l.bf16 %v7065_v18  ;;  %6087 = vmatpush1.bf16.msra.mxu1 %v6086_v36  ;;  %v7071_v40 = vunpack.i.l.bf16 %v7070_v42  ;;  %v7072_v7 = vunpack.i.h.bf16 %v7070_v42 }
 0x4ea   :  { %v3296_v29 = vsel %vm10292_vm10, %v7066_v30, %v7067_v11  ;;  %v3242_v0 = vsel %vm1210_vm13, %v7071_v40, %v7061_v41  ;;  %vm10310_vm10 = vcmask 171008  }
 0x4eb   :  { %v9088_v51 = vpop.permute.xlu1 %3234  ;;  %v7075_v50 = vpop.permute.xlu0 %7074  ;;  %v6040_v14 = vpack.c.bf16 %v3296_v29, %v3243_v55  ;;  %v3244_v55 = vsel %vm1210_vm13, %v7062_v53, %v7072_v7 }
 0x4ec   :  { %v7077_v60 = vunpack.i.h.bf16 %v7075_v50  ;;  %v7076_v24 = vunpack.i.l.bf16 %v7075_v50  ;;  %v3245_v18 = vsel %vm1210_vm13, %v7072_v7, %v9088_v51 }
 0x4ed   :  { %6041 = vmatprep.subr.bf16.mxu0 %v6040_v14 }
 0x4ee   :  { %v3295_v22 = vsel %vm10293_vm11, %v7076_v24, %v7066_v30  ;;  %v3297_v4 = vsel %vm10294_vm9, %v7067_v11, %v7077_v60  ;;  %vm10312_vm11 = vcmask 162816  }
 0x4ef   :  { %v7080_v28 = vpop.permute.xlu1 %7079  ;;  %v9093_v62 = vpop.permute.xlu0 %3287  ;;  %v6042_v36 = vpack.c.bf16 %v3295_v22, %v3242_v0  ;;  %v6090_v40 = vpack.c.bf16 %v3297_v4, %v3244_v55  ;;  %vm10313_vm9 = vmmov %vm10312_vm11 }
 0x4f0   :  { %v3298_v29 = vsel %vm10295_vm7, %v7077_v60, %v9093_v62  ;;  %v7082_v50 = vunpack.i.h.bf16 %v7080_v28  ;;  %v7081_v41 = vunpack.i.l.bf16 %v7080_v28  ;;  %vm10314_vm7 = vmmov %vm10310_vm10 }
 0x4f1   :  { %6043 = vmatpush1.bf16.msra.mxu0 %v6042_v36  ;;  %v6088_v42 = vpack.c.bf16 %v3298_v29, %v3245_v18 }
 0x4f2   :  { %v3349_v22 = vsel %vm1318_vm12, %v7081_v41, %v7082_v50 }
 0x4f3   :  { %v7090_v30 = vpop.permute.xlu1 %7089  ;;  %v7085_v14 = vpop.permute.xlu0 %7084  ;;  %6089 = vmatprep.subr.bf16.mxu1 %v6088_v42 }
 0x4f4   :  { %v7087_v11 = vunpack.i.h.bf16 %v7085_v14  ;;  %v7086_v24 = vunpack.i.l.bf16 %v7085_v14  ;;  %6091 = vmatpush1.bf16.msra.mxu1 %v6090_v40  ;;  %v7091_v0 = vunpack.i.l.bf16 %v7090_v30  ;;  %v7092_v18 = vunpack.i.h.bf16 %v7090_v30 }
 0x4f6   :  { %v3402_v2 = vsel %vm1372_vm15, %v7086_v24, %v7087_v11  ;;  %v3348_v4 = vsel %vm1318_vm12, %v7091_v0, %v7081_v41 }
 0x4f7   :  { %v9102_v32 = vpop.permute.xlu1 %3340  ;;  %v7095_v60 = vpop.permute.xlu0 %7094  ;;  %v6044_v53 = vpack.c.bf16 %v3402_v2, %v3349_v22  ;;  %v3350_v22 = vsel %vm1318_vm12, %v7082_v50, %v7092_v18  ;;  %v9122_v50 = vld [vmem:[%s10042_s3] sm:$0xff]  ;;  %s10364_s3 = smov 88  }
 0x4f8   :  { %10296 = vst [vmem:[#allocation11_spill] sm:$0xff] %v9102_v32  ;;  %v7097_v7 = vunpack.i.h.bf16 %v7095_v60  ;;  %v7096_v36 = vunpack.i.l.bf16 %v7095_v60  ;;  %v3351_v14 = vsel %vm1318_vm12, %v7092_v18, %v9102_v32  ;;  %v10298_v18 = vunpack.i.h.bf16 %v8765_v16 }
 0x4f9   :  { %6045 = vmatprep.subr.bf16.mxu0 %v6044_v53  ;;  %v10297_v53 = vunpack.i.h.bf16 %v8763_v56 }
 0x4fa   :  { %v3401_v28 = vsel %vm1372_vm15, %v7096_v36, %v7086_v24  ;;  %v3403_v29 = vsel %vm1372_vm15, %v7087_v11, %v7097_v7 }
 0x4fb   :  { %v7100_v55 = vpop.permute.xlu1 %7099  ;;  %v9107_v42 = vpop.permute.xlu0 %3393  ;;  %v6046_v40 = vpack.c.bf16 %v3401_v28, %v3348_v4  ;;  %v6094_v60 = vpack.c.bf16 %v3403_v29, %v3350_v22 }
 0x4fc   :  { %v3404_v2 = vsel %vm1372_vm15, %v7097_v7, %v9107_v42  ;;  %v7101_v24 = vunpack.i.l.bf16 %v7100_v55  ;;  %v7102_v16 = vunpack.i.h.bf16 %v7100_v55 }
 0x4fd   :  { %6047 = vmatpush1.bf16.msra.mxu0 %v6046_v40  ;;  %v6092_v30 = vpack.c.bf16 %v3404_v2, %v3351_v14 }
 0x4fe   :  { %v2226_v29 = vsel %vm170_vm0, %v10298_v18, %v7101_v24 }
 0x4ff   :  { %v3441_v41 = vpop.permute.xlu1 %3440  ;;  %v7105_v0 = vpop.permute.xlu0 %7104  ;;  %6093 = vmatprep.subr.bf16.mxu1 %v6092_v30 }
 0x500   :  { %v7106_v11 = vunpack.i.l.bf16 %v7105_v0  ;;  %6095 = vmatpush1.bf16.msra.mxu1 %v6094_v60  ;;  %v7107_v56 = vunpack.i.h.bf16 %v7105_v0  ;;  %v10299_v60 = vpack.c.bf16 %v8780_v25, %v8785_v21  ;;  %v10301_v0 = vunpack.i.h.bf16 %v8806_v34 }
 0x501   :  { %v10302_v34 = vpack.c.bf16 %v8836_v58, %v8841_v15  ;;  %v10304_v15 = vunpack.i.h.bf16 %v8861_v13 }
 0x502   :  { %v2279_v36 = vsel %vm224_vm1, %v10297_v53, %v7106_v11 }
 0x503   :  { %v3439_v4 = vpop.permute.xlu1 %3438  ;;  %v3443_v28 = vpop.permute.xlu0 %3442  ;;  %v6096_v40 = vpack.c.bf16 %v2279_v36, %v2226_v29  ;;  %v2280_v36 = vsel %vm224_vm1, %v7106_v11, %v7107_v56 }
 0x504   :  { %v3454_v32 = vsel %vm1426_vm14, %v3439_v4, %v3441_v41  ;;  %v3455_v7 = vsel %vm1426_vm14, %v3441_v41, %v3443_v28  ;;  %v10300_v41 = vunpack.i.h.bf16 %v8808_v37  ;;  %v2227_v37 = vsel %vm170_vm0, %v7101_v24, %v7102_v16 }
 0x505   :  { %3709 = vmatprep.subr.mxu0 %v3455_v7  ;;  %v6145_v11 = vpack.c.bf16 %v2280_v36, %v2227_v37 }
 0x506   :  { %3710 = vmatpush1.msra.mxu0 %v3454_v32 }
 0x507   :  { %v7115_v14 = vpop.permute.xlu1 %7114  ;;  %v7110_v2 = vpop.permute.xlu0 %7109  ;;  %3726 = vmatmul.mubr.f32.vlgmr.msra.gmra.mrb[4].mxu0 %v9122_v50  ;;  %6097 = vmatprep.subr.bf16.mxu0 %v6096_v40 }
 0x508   :  { %v7116_v22 = vunpack.i.l.bf16 %v7115_v14  ;;  %v7111_v30 = vunpack.i.l.bf16 %v7110_v2  ;;  %6099 = vmatpush1.bf16.msra.mxu0 %v10299_v60  ;;  %5814 = vmatprep.mubr.msk.f32.mxu0 %vm1631_vm4, %v8817_v19  ;;  %v7117_v4 = vunpack.i.h.bf16 %v7115_v14  ;;  %v7112_v7 = vunpack.i.h.bf16 %v7110_v2 }
 0x509   :  { %v10303_v60 = vmov 0.0|0.0  }
 0x50a   :  { %v2332_v32 = vsel %vm278_vm2, %v10300_v41, %v7111_v30  ;;  %v2385_v53 = vsel %vm332_vm3, %v10301_v0, %v7116_v22  ;;  %v2386_v40 = vsel %vm332_vm3, %v7116_v22, %v7117_v4  ;;  %v2333_v56 = vsel %vm278_vm2, %v7111_v30, %v7112_v7 }
 0x50b   :  { %v9140_v18 = vpop.permute.xlu1 %3446  ;;  %v3445_v25 = vpop.permute.xlu0 %3444  ;;  %v6100_v21 = vpack.c.bf16 %v2385_v53, %v2332_v32  ;;  %v6148_v58 = vpack.c.bf16 %v2386_v40, %v2333_v56  ;;  %v10305_v30 = vunpack.i.h.bf16 %v8859_v54  ;;  %v10308_v54 = vpack.c.bf16 %v8876_v33, %v8881_v31 }
 0x50c   :  { %v3457_v29 = vsel %vm1426_vm14, %v3445_v25, %v9140_v18  ;;  %v3456_v55 = vsel %vm1426_vm14, %v3443_v28, %v3445_v25 }
 0x50d   :  { %3780 = vmatprep.subr.mxu1 %v3457_v29  ;;  %6101 = vmatprep.subr.bf16.mxu0 %v6100_v21 }
 0x50e   :  { %3781 = vmatpush1.msra.mxu1 %v3456_v55  ;;  %6103 = vmatpush1.bf16.msra.mxu0 %v10302_v34  ;;  %v10309_v55 = vunpack.i.h.bf16 %v8901_v3  ;;  %v10311_v34 = vunpack.i.h.bf16 %v8899_v1  ;;  %v10315_v1 = vpack.c.bf16 %v8916_v43, %v8921_v9 }
 0x50f   :  { %v7125_v14 = vpop.permute.xlu1 %7124  ;;  %v7120_v2 = vpop.permute.xlu0 %7119  ;;  %3797 = vmatmul.mubr.f32.vlgmr.msra.gmra.mrb[4].mxu1 %v9122_v50  ;;  %6144 = vmatprep.subr.bf16.mxu1 %v10303_v60 }
 0x510   :  { %v7127_v28 = vunpack.i.h.bf16 %v7125_v14  ;;  %v7126_v24 = vunpack.i.l.bf16 %v7125_v14  ;;  %v7122_v16 = vunpack.i.h.bf16 %v7120_v2  ;;  %v7121_v41 = vunpack.i.l.bf16 %v7120_v2  ;;  %6146 = vmatpush1.bf16.msra.mxu1 %v6145_v11  ;;  %5815 = vmatprep.mubr.msk.f32.mxu1 %vm1631_vm4, %v8817_v19 }
 0x511   :  { %6147 = vmatprep.subr.bf16.mxu1 %v10303_v60 }
 0x512   :  { %v2438_v22 = vsel %vm386_vm5, %v10304_v15, %v7121_v41  ;;  %v2491_v32 = vsel %vm10306_vm8, %v10305_v30, %v7126_v24  ;;  %v2492_v0 = vsel %vm10307_vm6, %v7126_v24, %v7127_v28  ;;  %v2439_v53 = vsel %vm386_vm5, %v7121_v41, %v7122_v16 }
 0x513   :  { %v7135_v36 = vpop.permute.xlu1 %7134  ;;  %v7130_v4 = vpop.permute.xlu0 %7129  ;;  %v6104_v7 = vpack.c.bf16 %v2491_v32, %v2438_v22  ;;  %v6151_v13 = vpack.c.bf16 %v2492_v0, %v2439_v53  ;;  %v10316_v41 = vunpack.i.h.bf16 %v8941_v61  ;;  %vm10317_vm8 = vcmask 154624  }
 0x514   :  { %v7137_v25 = vunpack.i.h.bf16 %v7135_v36  ;;  %v7136_v19 = vunpack.i.l.bf16 %v7135_v36  ;;  %v7132_v21 = vunpack.i.h.bf16 %v7130_v4  ;;  %v7131_v29 = vunpack.i.l.bf16 %v7130_v4  ;;  %6149 = vmatpush1.bf16.msra.mxu1 %v6148_v58 }
 0x515   :  { %6105 = vmatprep.subr.bf16.mxu0 %v6104_v7  ;;  %6150 = vmatprep.subr.bf16.mxu1 %v10303_v60  ;;  %v10318_v15 = vunpack.i.h.bf16 %v8939_v26  ;;  %vm10319_vm6 = vcmask 146432   ;;  %v10322_v26 = vpack.c.bf16 %v8956_v8, %v8961_v59  ;;  %v6997_v8 = vunpack.i.h.bf16 %v9014_v27 }
 0x516   :  { %6107 = vmatpush1.bf16.msra.mxu0 %v10308_v54  ;;  %v2544_v37 = vsel %vm10310_vm10, %v10309_v55, %v7131_v29  ;;  %v2597_v11 = vsel %vm10312_vm11, %v10311_v34, %v7136_v19  ;;  %v2598_v40 = vsel %vm10313_vm9, %v7136_v19, %v7137_v25  ;;  %v2545_v56 = vsel %vm10314_vm7, %v7131_v29, %v7132_v21  ;;  %vm10320_vm10 = vmmov %vm10319_vm6 }
 0x517   :  { %v7145_v14 = vpop.permute.xlu1 %7144  ;;  %v7140_v2 = vpop.permute.xlu0 %7139  ;;  %v6108_v28 = vpack.c.bf16 %v2597_v11, %v2544_v37  ;;  %v6154_v3 = vpack.c.bf16 %v2598_v40, %v2545_v56  ;;  %vm10321_vm11 = vmmov %vm10317_vm8  ;;  %v10323_v25 = vunpack.i.h.bf16 %v8982_v45  ;;  %vm10324_vm9 = vcmask 15360  }
 0x518   :  { %v7147_v24 = vunpack.i.h.bf16 %v7145_v14  ;;  %v7146_v16 = vunpack.i.l.bf16 %v7145_v14  ;;  %v7142_v33 = vunpack.i.h.bf16 %v7140_v2  ;;  %v7141_v31 = vunpack.i.l.bf16 %v7140_v2  ;;  %6152 = vmatpush1.bf16.msra.mxu1 %v6151_v13 }
 0x519   :  { %6109 = vmatprep.subr.bf16.mxu0 %v6108_v28  ;;  %6153 = vmatprep.subr.bf16.mxu1 %v10303_v60  ;;  %v10325_v21 = vunpack.i.h.bf16 %v8980_v20  ;;  %vm10326_vm7 = vcmask 7168   ;;  %v10329_v59 = vpack.c.bf16 %v8997_v5, %v9002_v44  ;;  %v10330_v14 = vunpack.i.l.bf16 %v9014_v27 }
 0x51a   :  { %6111 = vmatpush1.bf16.msra.mxu0 %v10315_v1  ;;  %v2650_v58 = vsel %vm10317_vm8, %v10316_v41, %v7141_v31  ;;  %v2703_v22 = vsel %vm10319_vm6, %v10318_v15, %v7146_v16  ;;  %v2704_v30 = vsel %vm10320_vm10, %v7146_v16, %v7147_v24  ;;  %v2651_v32 = vsel %vm10321_vm11, %v7141_v31, %v7142_v33  ;;  %vm10327_vm8 = vmmov %vm10326_vm7 }
 0x51b   :  { %v7155_v0 = vpop.permute.xlu1 %7154  ;;  %v7150_v53 = vpop.permute.xlu0 %7149  ;;  %v6112_v36 = vpack.c.bf16 %v2703_v22, %v2650_v58  ;;  %v6157_v61 = vpack.c.bf16 %v2704_v30, %v2651_v32  ;;  %vm10328_vm6 = vmmov %vm10324_vm9  ;;  %vm10331_vm10 = vcmask 1039360  }
 0x51c   :  { %v7157_v4 = vunpack.i.h.bf16 %v7155_v0  ;;  %v7156_v7 = vunpack.i.l.bf16 %v7155_v0  ;;  %v7152_v43 = vunpack.i.h.bf16 %v7150_v53  ;;  %v7151_v9 = vunpack.i.l.bf16 %v7150_v53  ;;  %6155 = vmatpush1.bf16.msra.mxu1 %v6154_v3  ;;  %vm10332_vm11 = vmmov %vm10331_vm10 }
 0x51d   :  { %6113 = vmatprep.subr.bf16.mxu0 %v6112_v36  ;;  %6156 = vmatprep.subr.bf16.mxu1 %v10303_v60  ;;  %v2875_v2 = vsel %vm10331_vm10, %v10330_v14, %v6997_v8 }
 0x51e   :  { %6115 = vmatpush1.bf16.msra.mxu0 %v10322_v26  ;;  %v2756_v19 = vsel %vm10324_vm9, %v10323_v25, %v7151_v9  ;;  %v2809_v29 = vsel %vm10326_vm7, %v10325_v21, %v7156_v7  ;;  %v2810_v54 = vsel %vm10327_vm8, %v7156_v7, %v7157_v4  ;;  %v2757_v13 = vsel %vm10328_vm6, %v7151_v9, %v7152_v43  ;;  %vm10333_vm9 = vmmov %vm10331_vm10 }
 0x51f   :  { %v9200_v55 = vpop.permute.xlu1 %3240  ;;  %v9202_v37 = vpop.permute.xlu0 %3293  ;;  %v6116_v34 = vpack.c.bf16 %v2809_v29, %v2756_v19  ;;  %v6160_v20 = vpack.c.bf16 %v2810_v54, %v2757_v13  ;;  %v6122_v27 = vpack.c.bf16 %v2875_v2, %v8649_v35  ;;  %vm10334_vm7 = vcmask 1031168  }
 0x520   :  { %6158 = vmatpush1.bf16.msra.mxu1 %v6157_v61  ;;  %vm10335_vm8 = vcmask 900096   ;;  %vm10337_vm10 = vmmov %vm10334_vm7 }
 0x521   :  { %6117 = vmatprep.subr.bf16.mxu0 %v6116_v34  ;;  %6159 = vmatprep.subr.bf16.mxu1 %v10303_v60  ;;  %vm10336_vm6 = vmmov %vm10335_vm8 }
 0x522   :  { %6119 = vmatpush1.bf16.msra.mxu0 %v10329_v59 }
 0x523   :  { %v7165_v45 = vpop.permute.xlu1 %7164  ;;  %v7160_v11 = vpop.permute.xlu0 %7159 }
 0x524   :  { %v7162_v40 = vunpack.i.h.bf16 %v7160_v11  ;;  %v7161_v56 = vunpack.i.l.bf16 %v7160_v11  ;;  %6161 = vmatpush1.bf16.msra.mxu1 %v6160_v20  ;;  %v7167_v28 = vunpack.i.h.bf16 %v7165_v45  ;;  %v7166_v33 = vunpack.i.l.bf16 %v7165_v45 }
 0x525   :  { %6162 = vmatprep.subr.bf16.mxu1 %v10303_v60 }
 0x526   :  { %v2877_v24 = vsel %vm10332_vm11, %v7161_v56, %v7162_v40  ;;  %v2876_v16 = vsel %vm10333_vm9, %v6997_v8, %v7161_v56  ;;  %v2930_v58 = vsel %vm10334_vm7, %v7167_v28, %v8603_v17  ;;  %vm10338_vm11 = vmmov %vm10336_vm6 }
 0x527   :  { %v7175_v5 = vpop.permute.xlu1 %7174  ;;  %v7170_v44 = vpop.permute.xlu0 %7169  ;;  %v6120_v31 = vpack.c.bf16 %v2876_v16, %v8693_v38  ;;  %v6163_v1 = vpack.c.bf16 %v2877_v24, %v8798_v6  ;;  %v2928_v38 = vsel %vm10337_vm10, %v9035_v49, %v7166_v33  ;;  %vm10339_vm9 = vmmov %vm10334_vm7  ;;  %vm10340_vm7 = vcmask 891904  }
 0x528   :  { %v7172_v3 = vunpack.i.h.bf16 %v7170_v44  ;;  %v7171_v41 = vunpack.i.l.bf16 %v7170_v44  ;;  %v7177_v15 = vunpack.i.h.bf16 %v7175_v5  ;;  %v7176_v6 = vunpack.i.l.bf16 %v7175_v5  ;;  %vm10343_vm10 = vmmov %vm10340_vm7 }
 0x529   :  { %6121 = vmatprep.subr.bf16.mxu0 %v6120_v31  ;;  %6164 = vmatpush1.bf16.msra.mxu1 %v6163_v1  ;;  %v2929_v4 = vsel %vm10339_vm9, %v7166_v33, %v7167_v28  ;;  %vm10345_vm9 = vmmov %vm10340_vm7 }
 0x52a   :  { %v2983_v22 = vsel %vm10335_vm8, %v7172_v3, %v8601_v63  ;;  %v2981_v30 = vsel %vm10336_vm6, %v9044_v23, %v7171_v41  ;;  %6123 = vmatpush1.bf16.msra.mxu0 %v6122_v27  ;;  %6165 = vmatprep.subr.bf16.mxu1 %v10303_v60  ;;  %v2982_v35 = vsel %vm10338_vm11, %v7171_v41, %v7172_v3  ;;  %vm10341_vm8 = vcmask 883712  }
 0x52b   :  { %v7185_v32 = vpop.permute.xlu1 %7184  ;;  %v7180_v0 = vpop.permute.xlu0 %7179  ;;  %v6166_v53 = vpack.c.bf16 %v2983_v22, %v2930_v58  ;;  %v6126_v63 = vpack.c.bf16 %v2981_v30, %v2928_v38  ;;  %v6124_v7 = vpack.c.bf16 %v2982_v35, %v2929_v4  ;;  %v3036_v23 = vsel %vm10340_vm7, %v7177_v15, %v8607_v48  ;;  %vm10342_vm6 = vmmov %vm10341_vm8 }
 0x52c   :  { %v7182_v17 = vunpack.i.h.bf16 %v7180_v0  ;;  %v7181_v36 = vunpack.i.l.bf16 %v7180_v0  ;;  %v7187_v43 = vunpack.i.h.bf16 %v7185_v32  ;;  %v3034_v26 = vsel %vm10343_vm10, %v9060_v39, %v7176_v6  ;;  %vm10344_vm11 = vmmov %vm10342_vm6 }
 0x52d   :  { %6167 = vmatpush1.bf16.msra.mxu1 %v6166_v53  ;;  %v7186_v61 = vunpack.i.l.bf16 %v7185_v32  ;;  %6125 = vmatprep.subr.bf16.mxu0 %v6124_v7  ;;  %vm10346_vm7 = vcmask 875520   ;;  %v10356_v7 = vmov 0.0  }
 0x52e   :  { %v3089_v49 = vsel %vm10341_vm8, %v7182_v17, %v8605_v52  ;;  %v3087_v9 = vsel %vm10342_vm6, %v9065_v57, %v7181_v36  ;;  %6168 = vmatprep.subr.bf16.mxu1 %v10303_v60  ;;  %v3088_v21 = vsel %vm10344_vm11, %v7181_v36, %v7182_v17  ;;  %6127 = vmatpush1.bf16.msra.mxu0 %v6126_v63  ;;  %vm10347_vm8 = vcmask 867328   ;;  %vm10349_vm10 = vmmov %vm10346_vm7 }
 0x52f   :  { %v7195_v25 = vpop.permute.xlu1 %7194  ;;  %v7190_v19 = vpop.permute.xlu0 %7189  ;;  %v6169_v29 = vpack.c.bf16 %v3089_v49, %v3036_v23  ;;  %v3035_v52 = vsel %vm10345_vm9, %v7176_v6, %v7177_v15  ;;  %v6130_v13 = vpack.c.bf16 %v3087_v9, %v3034_v26  ;;  %v3142_v39 = vsel %vm10346_vm7, %v7187_v43, %v8611_v12  ;;  %vm10348_vm6 = vmmov %vm10347_vm8 }
 0x530   :  { %v7192_v48 = vunpack.i.h.bf16 %v7190_v19  ;;  %v7191_v54 = vunpack.i.l.bf16 %v7190_v19  ;;  %v7197_v34 = vunpack.i.h.bf16 %v7195_v25  ;;  %v7196_v57 = vunpack.i.l.bf16 %v7195_v25  ;;  %vm10350_vm11 = vmmov %vm10348_vm6 }
 0x531   :  { %v6128_v8 = vpack.c.bf16 %v3088_v21, %v3035_v52  ;;  %6170 = vmatpush1.bf16.msra.mxu1 %v6169_v29  ;;  %v3140_v45 = vsel %vm10349_vm10, %v9074_v46, %v7186_v61  ;;  %vm10351_vm9 = vmmov %vm10346_vm7  ;;  %vm10352_vm7 = vcmask 728064   ;;  %vm10370_vm10 = vcmask 179200  }
 0x532   :  { %v3195_v59 = vsel %vm10347_vm8, %v7192_v48, %v8609_v10  ;;  %v3193_v20 = vsel %vm10348_vm6, %v9079_v47, %v7191_v54  ;;  %6171 = vmatprep.subr.bf16.mxu1 %v10303_v60  ;;  %v3194_v56 = vsel %vm10350_vm11, %v7191_v54, %v7192_v48  ;;  %v3141_v28 = vsel %vm10351_vm9, %v7186_v61, %v7187_v43  ;;  %vm10353_vm8 = vmmov %vm10352_vm7  ;;  %v10357_v48 = vld [vmem:[#allocation4_spill] sm:$0xff]  ;;  %v10358_v54 = vld [vmem:[#allocation5_spill] sm:$0xff] }
 0x533   :  { %6129 = vmatprep.subr.bf16.mxu0 %v6128_v8  ;;  %v7205_v11 = vpop.permute.xlu1 %7204  ;;  %v7200_v40 = vpop.permute.xlu0 %7199  ;;  %v6172_v14 = vpack.c.bf16 %v3195_v59, %v3142_v39  ;;  %v6134_v10 = vpack.c.bf16 %v3193_v20, %v3140_v45  ;;  %v3248_v47 = vsel %vm1210_vm13, %v7197_v34, %v9200_v55  ;;  %v6132_v16 = vpack.c.bf16 %v3194_v56, %v3141_v28  ;;  %vm10354_vm6 = vmmov %vm10352_vm7  ;;  %v10360_v39 = vld [vmem:[#allocation7_spill] sm:$0xff] }
 0x534   :  { %6131 = vmatpush1.bf16.msra.mxu0 %v6130_v13  ;;  %v7202_v2 = vunpack.i.h.bf16 %v7200_v40  ;;  %v7201_v12 = vunpack.i.l.bf16 %v7200_v40  ;;  %v7207_v24 = vunpack.i.h.bf16 %v7205_v11  ;;  %v3247_v46 = vsel %vm1210_vm13, %v7196_v57, %v7197_v34  ;;  %v10359_v13 = vld [vmem:[#allocation6_spill] sm:$0xff]  ;;  %vm10371_vm11 = vmmov %vm10370_vm10 }
 0x535   :  { %6173 = vmatpush1.bf16.msra.mxu1 %v6172_v14  ;;  %v7206_v33 = vunpack.i.l.bf16 %v7205_v11  ;;  %v3246_v1 = vsel %vm1210_vm13, %v9088_v51, %v7196_v57  ;;  %6133 = vmatprep.subr.bf16.mxu0 %v6132_v16  ;;  %v10355_v51 = vld [vmem:[#allocation11_spill] sm:$0xff]  ;;  %vm10372_vm9 = vmmov %vm10370_vm10 }
 0x536   :  { %v3301_v5 = vsel %vm10352_vm7, %v7202_v2, %v9202_v37  ;;  %v3299_v44 = vsel %vm10353_vm8, %v9093_v62, %v7201_v12  ;;  %6174 = vmatprep.subr.bf16.mxu1 %v10303_v60  ;;  %v3300_v31 = vsel %vm10354_vm6, %v7201_v12, %v7202_v2  ;;  %v10361_v12 = vld [vmem:[#allocation8_spill] sm:$0xff]  ;;  %vm10373_vm7 = vmmov %vm10372_vm9  ;;  %vm10375_vm6 = vcmask 171008  }
 0x537   :  { %v3347_v55 = vpop.permute.xlu1 %3346  ;;  %v7210_v3 = vpop.permute.xlu0 %7209  ;;  %v6136_v41 = vpack.c.bf16 %v3300_v31, %v3247_v46  ;;  %v6175_v27 = vpack.c.bf16 %v3301_v5, %v3248_v47  ;;  %v6138_v22 = vpack.c.bf16 %v3299_v44, %v3246_v1  ;;  %v3353_v37 = vsel %vm1318_vm12, %v7206_v33, %v7207_v24  ;;  %v10362_v47 = vld [vmem:[#allocation9_spill] sm:$0xff]  ;;  %v10363_v46 = vld [vmem:[#allocation10_spill] sm:$0xff]  ;;  %vm10374_vm8 = vmmov %vm10373_vm7 }
 0x538   :  { %6135 = vmatpush1.bf16.msra.mxu0 %v6134_v10  ;;  %v7212_v58 = vunpack.i.h.bf16 %v7210_v3  ;;  %v7211_v15 = vunpack.i.l.bf16 %v7210_v3  ;;  %v3352_v38 = vsel %vm1318_vm12, %v10355_v51, %v7206_v33  ;;  %v3354_v35 = vsel %vm1318_vm12, %v7207_v24, %v3347_v55 }
 0x539   :  { %6137 = vmatprep.subr.bf16.mxu0 %v6136_v41  ;;  %6176 = vmatpush1.bf16.msra.mxu1 %v6175_v27 }
 0x53a   :  { %v3405_v62 = vsel %vm1372_vm15, %v9107_v42, %v7211_v15  ;;  %v3406_v30 = vsel %vm1372_vm15, %v7211_v15, %v7212_v58  ;;  %6177 = vmatprep.subr.bf16.mxu1 %v10303_v60 }
 0x53b   :  { %v3449_v6 = vpop.permute.xlu1 %3448  ;;  %v3400_v32 = vpop.permute.xlu0 %3399  ;;  %v6140_v0 = vpack.c.bf16 %v3406_v30, %v3353_v37  ;;  %v6142_v17 = vpack.c.bf16 %v3405_v62, %v3352_v38 }
 0x53c   :  { %6139 = vmatpush1.bf16.msra.mxu0 %v6138_v22  ;;  %v3407_v53 = vsel %vm1372_vm15, %v7212_v58, %v3400_v32  ;;  %v3458_v43 = vsel %vm1426_vm14, %v9140_v18, %v3449_v6 }
 0x53d   :  { %v6178_v36 = vpack.c.bf16 %v3407_v53, %v3354_v35  ;;  %6141 = vmatprep.subr.bf16.mxu0 %v6140_v0 }
 0x53f   :  { %v3453_v42 = vpop.permute.xlu1 %3452  ;;  %v3451_v4 = vpop.permute.xlu0 %3450  ;;  %6179 = vmatpush1.bf16.msra.mxu1 %v6178_v36 }
 0x540   :  { %6143 = vmatpush1.bf16.msra.mxu0 %v6142_v17  ;;  %v3459_v63 = vsel %vm1426_vm14, %v3449_v6, %v3451_v4  ;;  %3922 = vmatprep.subr.mxu1 %v10356_v7  ;;  %v3460_v23 = vsel %vm1426_vm14, %v3451_v4, %v3453_v42 }
 0x541   :  { %3851 = vmatprep.subr.mxu0 %v3459_v63 }
 0x543   :  { %3923 = vmatpush1.msra.mxu1 %v3460_v23 }
 0x544   :  { %3852 = vmatpush1.msra.mxu0 %v3458_v43  ;;  %3939 = vmatmul.mubr.f32.vlgmr.msra.gmra.mrb[6].mxu1 %v9122_v50 }
 0x545   :  { %3868 = vmatmul.mubr.f32.vlgmr.msra.gmra.mrb[6].mxu0 %v9122_v50 }
 0x550   :  { %v3656_v25 = vpop.permute.xlu0 %3655 }
 0x5da   :  { %v3727_v49 = vpop.f32.mrb[4].mxu0 }
 0x5db   :  { %v3729_v9 = vpop.f32.mrb[5].mxu0  ;;  %v9278_v19 = vadd.f32 %v3727_v49, %v3656_v25 }
 0x5dc   :  { %v9280_v21 = vadd.f32 %v3729_v9, %v3656_v25 }
 0x5dd   :  { %v3944_v18 = vmul.f32 %v9278_v19, %v10357_v48 }
 0x5de   :  { %v3945_v52 = vmul.f32 %v9280_v21, %v10358_v54 }
 0x5e0   :  { %v3951_v57 = vadd.f32 %v3945_v52, %v3944_v18  ;;  %v3990_v52 = vld [vmem:[%s10044_s9] sm:$0xff]  ;;  %s10368_s9 = smov 42  }
 0x5e2   :  { %v3798_v26 = vpop.f32.mrb[4].mxu1 }
 0x5e3   :  { %v3800_v61 = vpop.f32.mrb[5].mxu1  ;;  %v9282_v29 = vadd.f32 %v3798_v26, %v3656_v25 }
 0x5e4   :  { %v9290_v34 = vadd.f32 %v3800_v61, %v3656_v25 }
 0x5e5   :  { %v3946_v50 = vmul.f32 %v9282_v29, %v10359_v13 }
 0x5e6   :  { %v3947_v59 = vmul.f32 %v9290_v34, %v10360_v39 }
 0x5e7   :  { %v3952_v8 = vadd.f32 %v3951_v57, %v3946_v50 }
 0x5e9   :  { %v3953_v2 = vadd.f32 %v3952_v8, %v3947_v59  ;;  %v3994_v8 = vld [vmem:[%s10045_s10] sm:$0xff] }
 0x617   :  { %v3940_v20 = vpop.f32.mrb[6].mxu1 }
 0x618   :  { %v3869_v45 = vpop.f32.mrb[6].mxu0  ;;  %v3942_v11 = vpop.f32.mrb[7].mxu1  ;;  %v9300_v10 = vadd.f32 %v3940_v20, %v3656_v25 }
 0x619   :  { %v9294_v40 = vadd.f32 %v3869_v45, %v3656_v25  ;;  %v3871_v56 = vpop.f32.mrb[7].mxu0 }
 0x61a   :  { %v9296_v14 = vadd.f32 %v3871_v56, %v3656_v25  ;;  %v3950_v33 = vmul.f32 %v9300_v10, %v10363_v46 }
 0x61b   :  { %v3948_v28 = vmul.f32 %v9294_v40, %v10361_v12 }
 0x61c   :  { %v3949_v24 = vmul.f32 %v9296_v14, %v10362_v47 }
 0x61d   :  { %v3954_v16 = vadd.f32 %v3953_v2, %v3948_v28 }
 0x61f   :  { %v3955_v5 = vadd.f32 %v3954_v16, %v3949_v24 }
 0x621   :  { %v3956_v44 = vadd.f32 %v3955_v5, %v3950_v33 }
 0x623   :  { %3957 = vadd.xlane.f32.xlu1 %v3956_v44 }
 0x634   :  { %4722 = vrot.lane.b32.xlu1 %v10356_v7, %s10225_s15 }
 0x638   :  { %4828 = vrot.lane.b32.xlu1 %v10356_v7, %s10166_s20 }
 0x63c   :  { %4934 = vrot.lane.b32.xlu1 %v10356_v7, %s10168_s30 }
 0x640   :  { %5040 = vrot.lane.b32.xlu1 %v10356_v7, %s10170_s27 }
 0x644   :  { %5146 = vrot.lane.b32.xlu1 %v10356_v7, %s10172_s28 }
 0x6b0   :  { %v3958_v31 = vpop.xlane.xlu1 %3957 }
 0x6b1   :  { %v3959_v1 = vmul.f32 0.001953125, %v3958_v31 }
 0x6b3   :  { %v3960_v55 = vsub.f32 %v9278_v19, %v3959_v1  ;;  %v3961_v3 = vsub.f32 %v9280_v21, %v3959_v1  ;;  %v3962_v41 = vsub.f32 %v9282_v29, %v3959_v1  ;;  %v3963_v27 = vsub.f32 %v9290_v34, %v3959_v1 }
 0x6b4   :  { %v3964_v58 = vsub.f32 %v9294_v40, %v3959_v1  ;;  %v3965_v37 = vsub.f32 %v9296_v14, %v3959_v1  ;;  %v3966_v6 = vsub.f32 %v9300_v10, %v3959_v1  ;;  %v9348_v11 = vpop.permute.xlu1 %4722 }
 0x6b5   :  { %v3967_v15 = vmul.f32 %v3960_v55, %v10357_v48  ;;  %v3968_v22 = vmul.f32 %v3961_v3, %v10358_v54  ;;  %v3969_v62 = vmul.f32 %v3962_v41, %v10359_v13  ;;  %v3970_v30 = vmul.f32 %v3963_v27, %v10360_v39 }
 0x6b6   :  { %v3971_v32 = vmul.f32 %v3964_v58, %v10361_v12  ;;  %v3972_v53 = vmul.f32 %v3965_v37, %v10362_v47  ;;  %v3973_v42 = vmul.f32 %v3966_v6, %v10363_v46 }
 0x6b7   :  { %v3974_v51 = vmul.f32 %v3967_v15, %v3967_v15  ;;  %v3975_v38 = vmul.f32 %v3968_v22, %v3968_v22  ;;  %v3976_v0 = vmul.f32 %v3969_v62, %v3969_v62  ;;  %v3977_v17 = vmul.f32 %v3970_v30, %v3970_v30 }
 0x6b8   :  { %v3978_v4 = vmul.f32 %v3971_v32, %v3971_v32  ;;  %v3979_v23 = vmul.f32 %v3972_v53, %v3972_v53  ;;  %v3980_v49 = vmul.f32 %v3973_v42, %v3973_v42  ;;  %v9352_v2 = vpop.permute.xlu1 %4828 }
 0x6b9   :  { %v3981_v35 = vadd.f32 %v3975_v38, %v3974_v51 }
 0x6bb   :  { %v3982_v36 = vadd.f32 %v3981_v35, %v3976_v0 }
 0x6bc   :  { %v9356_v24 = vpop.permute.xlu1 %4934 }
 0x6bd   :  { %v3983_v63 = vadd.f32 %v3982_v36, %v3977_v17 }
 0x6bf   :  { %v3984_v43 = vadd.f32 %v3983_v63, %v3978_v4 }
 0x6c0   :  { %v9360_v33 = vpop.permute.xlu1 %5040 }
 0x6c1   :  { %v3985_v9 = vadd.f32 %v3984_v43, %v3979_v23 }
 0x6c3   :  { %v3986_v26 = vadd.f32 %v3985_v9, %v3980_v49 }
 0x6c4   :  { %v9364_v44 = vpop.permute.xlu1 %5146 }
 0x6c5   :  { %3987 = vadd.xlane.f32.xlu0 %v3986_v26  ;;  %10367 = vst [vmem:[#allocation5_spill] sm:$0xff] %v9364_v44 }
 0x6db   :  { %4775 = vrot.lane.b32.xlu0 %v10356_v7, %s10165_s26 }
 0x6df   :  { %4881 = vrot.lane.b32.xlu0 %v10356_v7, %s10167_s18 }
 0x6e3   :  { %4987 = vrot.lane.b32.xlu0 %v10356_v7, %s10169_s14 }
 0x6e7   :  { %5093 = vrot.lane.b32.xlu0 %v10356_v7, %s10171_s22 }
 0x6eb   :  { %5199 = vrot.lane.b32.xlu0 %v10356_v7, %s10364_s3 }
 0x752   :  { %v3988_v61 = vpop.xlane.xlu0 %3987 }
 0x753   :  { %v3989_v25 = vmul.f32 0.001953125, %v3988_v61 }
 0x755   :  { %v3991_v18 = vadd.f32 1e-05, %v3989_v25 }
 0x756   :  { %v9346_v45 = vpop.permute.xlu0 %4775 }
 0x757   :  { %7617 = vrsqrt.f32 %v3991_v18 }
 0x75a   :  { %v9350_v56 = vpop.permute.xlu0 %4881 }
 0x75e   :  { %v9354_v28 = vpop.permute.xlu0 %4987 }
 0x761   :  { %v7618_v50 = vpop.eup %7617 }
 0x762   :  { %v3993_v57 = vmul.f32 %v7618_v50, %v3990_v52  ;;  %v9358_v16 = vpop.permute.xlu0 %5093 }
 0x763   :  { %10365 = vst [vmem:[#allocation11_spill] sm:$0xff] %v9358_v16 }
 0x764   :  { %3999 = vperm.xlu0 %6799, %v3993_v57   ;;  %v3995_v59 = vmul.f32 %v3993_v57, %v3959_v1 }
 0x766   :  { %v3996_v20 = vsub.f32 %v3994_v8, %v3995_v59  ;;  %v9362_v5 = vpop.permute.xlu0 %5199 }
 0x767   :  { %10366 = vst [vmem:[#allocation4_spill] sm:$0xff] %v9362_v5 }
 0x768   :  { %4011 = vperm.xlu1 %6802, %v3996_v20  }
 0x7e3   :  { %v9366_v31 = vpop.permute.xlu0 %3999 }
 0x7e4   :  { %v4002_v1 = vmul.f32 %v9366_v31, %v9278_v19  ;;  %v4003_v55 = vmul.f32 %v9366_v31, %v9280_v21  ;;  %v4004_v3 = vmul.f32 %v9366_v31, %v9282_v29  ;;  %v4005_v41 = vmul.f32 %v9366_v31, %v9290_v34 }
 0x7e5   :  { %v4006_v27 = vmul.f32 %v9366_v31, %v9294_v40  ;;  %v4007_v36 = vmul.f32 %v9366_v31, %v9296_v14  ;;  %v4008_v23 = vmul.f32 %v9366_v31, %v9300_v10 }
 0x7e7   :  { %v9378_v58 = vpop.permute.xlu1 %4011 }
 0x7e8   :  { %v4014_v15 = vadd.f32 %v9378_v58, %v4002_v1  ;;  %v4015_v22 = vadd.f32 %v9378_v58, %v4003_v55  ;;  %v4016_v19 = vadd.f32 %v9378_v58, %v4004_v3  ;;  %v4017_v62 = vadd.f32 %v9378_v58, %v4005_v41 }
 0x7e9   :  { %v4018_v21 = vadd.f32 %v9378_v58, %v4006_v27  ;;  %v4019_v42 = vadd.f32 %v9378_v58, %v4007_v36  ;;  %v4020_v14 = vadd.f32 %v9378_v58, %v4008_v23 }
 0x7ea   :  { %v4021_v37 = vmax.f32 %v4014_v15, 0.0  ;;  %v4022_v29 = vmax.f32 %v4015_v22, 0.0  ;;  %v4023_v30 = vmax.f32 %v4016_v19, 0.0  ;;  %v4024_v51 = vmax.f32 %v4017_v62, 0.0 }
 0x7eb   :  { %v4025_v34 = vmax.f32 %v4018_v21, 0.0  ;;  %v4026_v10 = vmax.f32 %v4019_v42, 0.0  ;;  %v4027_v27 = vmax.f32 %v4020_v14, 0.0 }
 0x7ec   :  { %v9386_v38 = vmul.f32 %v4021_v37, %v10357_v48  ;;  %v9389_v40 = vmul.f32 %v4022_v29, %v10358_v54  ;;  %v9392_v6 = vmul.f32 %v4023_v30, %v10359_v13  ;;  %v9395_v32 = vmul.f32 %v4024_v51, %v10360_v39 }
 0x7ed   :  { %v9398_v0 = vmul.f32 %v4025_v34, %v10361_v12 }
 0x7ee   :  { %v9402_v35 = vpack.i.bf16 %v9392_v6, %v9389_v40  ;;  %v7213_v48 = vpack.i.bf16 %v9386_v38, %v10356_v7  ;;  %v7228_v54 = vpack.i.bf16 %v9389_v40, %v9386_v38  ;;  %v7233_v39 = vpack.i.bf16 %v9392_v6, %v10356_v7 }
 0x7ef   :  { %v7223_v13 = vpack.i.bf16 %v9398_v0, %v9395_v32  ;;  %v9452_v12 = vpack.i.bf16 %v9395_v32, %v9386_v38 }
 0x7f0   :  { %7219 = vrot.lane.b32.xlu0 %v9402_v35, %s10368_s9  ;;  %7214 = vrot.lane.b32.xlu1 %v7213_v48, %s10368_s9 }
 0x7f4   :  { %7229 = vrot.lane.b32.xlu0 %v7228_v54, %s10227_s21  ;;  %7224 = vrot.lane.b32.xlu1 %v7223_v13, %s10368_s9 }
 0x7f8   :  { %7239 = vrot.lane.b32.xlu0 %v7223_v13, %s10227_s21  ;;  %7234 = vrot.lane.b32.xlu1 %v7233_v39, %s10227_s21 }
 0x7fc   :  { %7249 = vrot.lane.b32.xlu0 %v7228_v54, %s10231_s23  ;;  %7244 = vrot.lane.b32.xlu1 %v7228_v54, %s10216_s7 }
 0x800   :  { %7259 = vrot.lane.b32.xlu0 %v7223_v13, %s10216_s7  ;;  %7254 = vrot.lane.b32.xlu1 %v7233_v39, %s10216_s7 }
 0x804   :  { %7269 = vrot.lane.b32.xlu0 %v7223_v13, %s10231_s23  ;;  %7264 = vrot.lane.b32.xlu1 %v7233_v39, %s10231_s23 }
 0x808   :  { %7279 = vrot.lane.b32.xlu0 %v7228_v54, %s10217_s8  ;;  %7274 = vrot.lane.b32.xlu1 %v7228_v54, %s10218_s29 }
 0x80c   :  { %7289 = vrot.lane.b32.xlu0 %v7223_v13, %s10218_s29  ;;  %7284 = vrot.lane.b32.xlu1 %v7233_v39, %s10218_s29 }
 0x810   :  { %7299 = vrot.lane.b32.xlu0 %v7223_v13, %s10217_s8  ;;  %7294 = vrot.lane.b32.xlu1 %v7233_v39, %s10217_s8 }
 0x814   :  { %7309 = vrot.lane.b32.xlu0 %v7228_v54, %s10219_s0  ;;  %7304 = vrot.lane.b32.xlu1 %v7228_v54, %s10220_s24 }
 0x818   :  { %7319 = vrot.lane.b32.xlu0 %v7223_v13, %s10220_s24  ;;  %7314 = vrot.lane.b32.xlu1 %v7233_v39, %s10220_s24 }
 0x81c   :  { %7329 = vrot.lane.b32.xlu0 %v7223_v13, %s10219_s0  ;;  %7324 = vrot.lane.b32.xlu1 %v7233_v39, %s10219_s0 }
 0x820   :  { %7339 = vrot.lane.b32.xlu0 %v7228_v54, %s10221_s2  ;;  %7334 = vrot.lane.b32.xlu1 %v7228_v54, %s10222_s11 }
 0x824   :  { %7349 = vrot.lane.b32.xlu0 %v7223_v13, %s10222_s11  ;;  %7344 = vrot.lane.b32.xlu1 %v7233_v39, %s10222_s11 }
 0x828   :  { %7359 = vrot.lane.b32.xlu0 %v7223_v13, %s10221_s2  ;;  %7354 = vrot.lane.b32.xlu1 %v7233_v39, %s10221_s2 }
 0x82c   :  { %7369 = vrot.lane.b32.xlu0 %v7228_v54, %s10223_s12  ;;  %7364 = vrot.lane.b32.xlu1 %v7228_v54, %s10224_s1 }
 0x830   :  { %7379 = vrot.lane.b32.xlu0 %v7223_v13, %s10224_s1  ;;  %7374 = vrot.lane.b32.xlu1 %v7233_v39, %s10224_s1 }
 0x834   :  { %4649 = vrot.lane.b32.xlu0 %v9395_v32, %s10223_s12  ;;  %7384 = vrot.lane.b32.xlu1 %v7233_v39, %s10223_s12 }
 0x838   :  { %7394 = vrot.lane.b32.xlu0 %v9452_v12, %s10225_s15  ;;  %7389 = vrot.lane.b32.xlu1 %v9402_v35, %s10225_s15 }
 0x83c   :  { %7399 = vrot.lane.b32.xlu0 %v9402_v35, %s10165_s26  ;;  %4716 = vrot.lane.b32.xlu1 %v9398_v0, %s10225_s15 }
 0x840   :  { %7409 = vrot.lane.b32.xlu0 %v9452_v12, %s10165_s26  ;;  %7404 = vrot.lane.b32.xlu1 %v9402_v35, %s10166_s20 }
 0x844   :  { %7414 = vrot.lane.b32.xlu0 %v9452_v12, %s10166_s20  ;;  %4769 = vrot.lane.b32.xlu1 %v9398_v0, %s10165_s26 }
 0x848   :  { %7419 = vrot.lane.b32.xlu0 %v9402_v35, %s10167_s18  ;;  %4822 = vrot.lane.b32.xlu1 %v9398_v0, %s10166_s20 }
 0x84c   :  { %7429 = vrot.lane.b32.xlu0 %v9452_v12, %s10167_s18  ;;  %7424 = vrot.lane.b32.xlu1 %v9402_v35, %s10168_s30 }
 0x850   :  { %7434 = vrot.lane.b32.xlu0 %v9452_v12, %s10168_s30  ;;  %4875 = vrot.lane.b32.xlu1 %v9398_v0, %s10167_s18 }
 0x854   :  { %7439 = vrot.lane.b32.xlu0 %v9402_v35, %s10169_s14  ;;  %4928 = vrot.lane.b32.xlu1 %v9398_v0, %s10168_s30 }
 0x858   :  { %7449 = vrot.lane.b32.xlu0 %v9452_v12, %s10169_s14  ;;  %7444 = vrot.lane.b32.xlu1 %v9402_v35, %s10170_s27 }
 0x85c   :  { %7454 = vrot.lane.b32.xlu0 %v9452_v12, %s10170_s27  ;;  %4981 = vrot.lane.b32.xlu1 %v9398_v0, %s10169_s14 }
 0x860   :  { %7459 = vrot.lane.b32.xlu0 %v9402_v35, %s10171_s22  ;;  %5034 = vrot.lane.b32.xlu1 %v9398_v0, %s10170_s27 }
 0x862   :  { %v7220_v53 = vpop.permute.xlu0 %7219  ;;  %v7215_v17 = vpop.permute.xlu1 %7214 }
 0x863   :  { %v7221_v4 = vunpack.i.l.bf16 %v7220_v53  ;;  %v7217_v63 = vunpack.i.h.bf16 %v7215_v17  ;;  %v7222_v43 = vunpack.i.h.bf16 %v7220_v53  ;;  %v7216_v25 = vunpack.i.l.bf16 %v7215_v17 }
 0x864   :  { %7469 = vrot.lane.b32.xlu0 %v9452_v12, %s10171_s22  ;;  %7464 = vrot.lane.b32.xlu1 %v9402_v35, %s10172_s28 }
 0x865   :  { %v4075_v50 = vsel %vm170_vm0, %v7217_v63, %v7221_v4  ;;  %v4076_v8 = vsel %vm170_vm0, %v7221_v4, %v7222_v43  ;;  %v4074_v58 = vsel %vm170_vm0, %v7216_v25, %v7217_v63  ;;  %v9551_v4 = vmul.f32 %v4026_v10, %v10362_v47 }
 0x866   :  { %v7230_v49 = vpop.permute.xlu0 %7229  ;;  %v9507_v9 = vpop.permute.xlu1 %7224  ;;  %v9554_v63 = vmul.f32 %v4027_v27, %v10363_v46 }
 0x867   :  { %v7232_v26 = vunpack.i.h.bf16 %v7230_v49  ;;  %v7231_v61 = vunpack.i.l.bf16 %v7230_v49  ;;  %v10158_v18 = vunpack.i.h.bf16 %v9507_v9  ;;  %v7226_v52 = vunpack.i.l.bf16 %v9507_v9 }
 0x868   :  { %7474 = vrot.lane.b32.xlu0 %v9452_v12, %s10172_s28  ;;  %5087 = vrot.lane.b32.xlu1 %v9398_v0, %s10171_s22 }
 0x869   :  { %v4128_v57 = vsel %vm224_vm1, %v7231_v61, %v7232_v26  ;;  %v9527_v15 = vsel %vm170_vm0, %v7226_v52, %v10158_v18  ;;  %v4077_v22 = vsel %vm170_vm0, %v7222_v43, %v7226_v52  ;;  %v9573_v52 = vpack.i.bf16 %v9554_v63, %v9551_v4 }
 0x86a   :  { %v9519_v59 = vpop.permute.xlu0 %7239  ;;  %v7235_v20 = vpop.permute.xlu1 %7234  ;;  %v6180_v31 = vpack.c.bf16 %v4128_v57, %v4075_v50 }
 0x86b   :  { %v10161_v1 = vunpack.i.h.bf16 %v9519_v59  ;;  %v7241_v55 = vunpack.i.l.bf16 %v9519_v59  ;;  %v7237_v3 = vunpack.i.h.bf16 %v7235_v20  ;;  %v7236_v41 = vunpack.i.l.bf16 %v7235_v20 }
 0x86c   :  { %7479 = vrot.lane.b32.xlu0 %v9402_v35, %s10364_s3  ;;  %5140 = vrot.lane.b32.xlu1 %v9398_v0, %s10172_s28 }
 0x86d   :  { %v9537_v19 = vsel %vm224_vm1, %v7241_v55, %v10161_v1  ;;  %v4129_v62 = vsel %vm224_vm1, %v7232_v26, %v7237_v3  ;;  %v4127_v21 = vsel %vm224_vm1, %v7236_v41, %v7231_v61  ;;  %6181 = vmatprep.subr.bf16.mxu0 %v6180_v31  ;;  %v4130_v37 = vsel %vm224_vm1, %v7237_v3, %v7241_v55 }
 0x86e   :  { %v7250_v30 = vpop.permute.xlu0 %7249  ;;  %v7245_v51 = vpop.permute.xlu1 %7244  ;;  %v6182_v34 = vpack.c.bf16 %v4127_v21, %v4074_v58  ;;  %v6228_v48 = vpack.c.bf16 %v4130_v37, %v4077_v22  ;;  %v6230_v54 = vpack.c.bf16 %v4129_v62, %v4076_v8 }
 0x86f   :  { %v7252_v13 = vunpack.i.h.bf16 %v7250_v30  ;;  %v7251_v39 = vunpack.i.l.bf16 %v7250_v30  ;;  %v7247_v53 = vunpack.i.h.bf16 %v7245_v51  ;;  %v7246_v17 = vunpack.i.l.bf16 %v7245_v51 }
 0x870   :  { %7489 = vrot.lane.b32.xlu0 %v9452_v12, %s10364_s3  ;;  %7484 = vrot.lane.b32.xlu1 %v9402_v35, %s10226_s25 }
 0x871   :  { %6183 = vmatpush1.bf16.msra.mxu0 %v6182_v34  ;;  %6229 = vmatprep.subr.bf16.mxu1 %v6228_v48  ;;  %v4181_v36 = vsel %vm278_vm2, %v7246_v17, %v7247_v53  ;;  %v4234_v42 = vsel %vm332_vm3, %v7251_v39, %v7252_v13 }
 0x872   :  { %6231 = vmatpush1.bf16.msra.mxu1 %v6230_v54  ;;  %v9556_v23 = vpop.permute.xlu0 %7259  ;;  %v7255_v43 = vpop.permute.xlu1 %7254  ;;  %v6184_v49 = vpack.c.bf16 %v4234_v42, %v4181_v36 }
 0x873   :  { %v10157_v26 = vunpack.i.h.bf16 %v9556_v23  ;;  %v7261_v35 = vunpack.i.l.bf16 %v9556_v23  ;;  %v7257_v61 = vunpack.i.h.bf16 %v7255_v43  ;;  %v7256_v14 = vunpack.i.l.bf16 %v7255_v43 }
 0x874   :  { %7494 = vrot.lane.b32.xlu0 %v9452_v12, %s10226_s25  ;;  %5193 = vrot.lane.b32.xlu1 %v9398_v0, %s10364_s3  ;;  %v9578_v12 = vld [vmem:[%s10046_s5 + $0x8] sm:$0xff] }
 0x875   :  { %v9567_v47 = vsel %vm278_vm2, %v7261_v35, %v10157_v26  ;;  %6185 = vmatprep.subr.bf16.mxu0 %v6184_v49  ;;  %5816 = vmatprep.mubr.msk.f32.mxu0 %vm1631_vm4, %v9578_v12  ;;  %v4180_v20 = vsel %vm278_vm2, %v7256_v14, %v7246_v17  ;;  %v4182_v31 = vsel %vm278_vm2, %v7247_v53, %v7257_v61 }
 0x876   :  { %v9569_v46 = vpop.permute.xlu0 %7269  ;;  %v7265_v25 = vpop.permute.xlu1 %7264  ;;  %5817 = vmatprep.mubr.msk.f32.mxu1 %vm1631_vm4, %v9578_v12  ;;  %v4183_v55 = vsel %vm278_vm2, %v7257_v61, %v7261_v35 }
 0x877   :  { %v10156_v10 = vunpack.i.h.bf16 %v9569_v46  ;;  %v7271_v50 = vunpack.i.l.bf16 %v9569_v46  ;;  %v7267_v57 = vunpack.i.h.bf16 %v7265_v25  ;;  %v7266_v8 = vunpack.i.l.bf16 %v7265_v25 }
 0x878   :  { %7499 = vrot.lane.b32.xlu0 %v9573_v52, %s10368_s9  ;;  %5246 = vrot.lane.b32.xlu1 %v9398_v0, %s10226_s25 }
 0x879   :  { %v9596_v3 = vsel %vm332_vm3, %v7271_v50, %v10156_v10  ;;  %v4235_v41 = vsel %vm332_vm3, %v7252_v13, %v7267_v57  ;;  %v4233_v27 = vsel %vm332_vm3, %v7266_v8, %v7251_v39  ;;  %v4236_v58 = vsel %vm332_vm3, %v7267_v57, %v7271_v50 }
 0x87a   :  { %v6186_v62 = vpack.c.bf16 %v4233_v27, %v4180_v20  ;;  %v6234_v21 = vpack.c.bf16 %v4235_v41, %v4182_v31  ;;  %v7280_v37 = vpop.permute.xlu0 %7279  ;;  %v7275_v30 = vpop.permute.xlu1 %7274  ;;  %v6232_v51 = vpack.c.bf16 %v4236_v58, %v4183_v55 }
 0x87b   :  { %v7282_v34 = vunpack.i.h.bf16 %v7280_v37  ;;  %v7281_v48 = vunpack.i.l.bf16 %v7280_v37  ;;  %v7277_v54 = vunpack.i.h.bf16 %v7275_v30  ;;  %v7276_v53 = vunpack.i.l.bf16 %v7275_v30 }
 0x87c   :  { %5293 = vrot.lane.b32.xlu0 %v9389_v40, %s10369_s17  ;;  %7504 = vrot.lane.b32.xlu1 %v9573_v52, %s10227_s21 }
 0x87d   :  { %6187 = vmatpush1.bf16.msra.mxu0 %v6186_v62  ;;  %6233 = vmatprep.subr.bf16.mxu1 %v6232_v51  ;;  %v4287_v13 = vsel %vm386_vm5, %v7276_v53, %v7277_v54  ;;  %v4340_v39 = vsel %vm10370_vm10, %v7281_v48, %v7282_v34  ;;  %vm10376_vm10 = vcmask 162816  }
 0x87e   :  { %6235 = vmatpush1.bf16.msra.mxu1 %v6234_v21  ;;  %v9609_v17 = vpop.permute.xlu0 %7289  ;;  %v7285_v36 = vpop.permute.xlu1 %7284  ;;  %v6188_v42 = vpack.c.bf16 %v4340_v39, %v4287_v13 }
 0x87f   :  { %v10153_v43 = vunpack.i.h.bf16 %v9609_v17  ;;  %v7291_v49 = vunpack.i.l.bf16 %v9609_v17  ;;  %v7287_v35 = vunpack.i.h.bf16 %v7285_v36  ;;  %v7286_v61 = vunpack.i.l.bf16 %v7285_v36 }
 0x880   :  { %5291 = vrot.lane.b32.xlu0 %v9386_v38, %s10369_s17  ;;  %5295 = vrot.lane.b32.xlu1 %v9392_v6, %s10369_s17 }
 0x881   :  { %v9620_v14 = vsel %vm386_vm5, %v7291_v49, %v10153_v43  ;;  %6189 = vmatprep.subr.bf16.mxu0 %v6188_v42  ;;  %v4286_v55 = vsel %vm386_vm5, %v7286_v61, %v7276_v53  ;;  %v4288_v41 = vsel %vm386_vm5, %v7277_v54, %v7287_v35  ;;  %v4289_v27 = vsel %vm386_vm5, %v7287_v35, %v7291_v49 }
 0x882   :  { %v9622_v25 = vpop.permute.xlu0 %7299  ;;  %v7295_v50 = vpop.permute.xlu1 %7294 }
 0x883   :  { %v10152_v57 = vunpack.i.h.bf16 %v9622_v25  ;;  %v7301_v8 = vunpack.i.l.bf16 %v9622_v25  ;;  %v7297_v20 = vunpack.i.h.bf16 %v7295_v50  ;;  %v7296_v31 = vunpack.i.l.bf16 %v7295_v50 }
 0x884   :  { %5299 = vrot.lane.b32.xlu0 %v9398_v0, %s10369_s17  ;;  %5297 = vrot.lane.b32.xlu1 %v9395_v32, %s10369_s17 }
 0x885   :  { %v9636_v58 = vsel %vm10371_vm11, %v7301_v8, %v10152_v57  ;;  %v4341_v62 = vsel %vm10372_vm9, %v7282_v34, %v7297_v20  ;;  %v4339_v21 = vsel %vm10373_vm7, %v7296_v31, %v7281_v48  ;;  %v4342_v37 = vsel %vm10374_vm8, %v7297_v20, %v7301_v8  ;;  %vm10377_vm11 = vmmov %vm10375_vm6 }
 0x886   :  { %v6190_v51 = vpack.c.bf16 %v4339_v21, %v4286_v55  ;;  %v6238_v54 = vpack.c.bf16 %v4341_v62, %v4288_v41  ;;  %v7310_v53 = vpop.permute.xlu0 %7309  ;;  %v7305_v13 = vpop.permute.xlu1 %7304  ;;  %v6236_v39 = vpack.c.bf16 %v4342_v37, %v4289_v27  ;;  %vm10378_vm9 = vmmov %vm10375_vm6 }
 0x887   :  { %v7312_v36 = vunpack.i.h.bf16 %v7310_v53  ;;  %v7311_v42 = vunpack.i.l.bf16 %v7310_v53  ;;  %v7307_v49 = vunpack.i.h.bf16 %v7305_v13  ;;  %v7306_v35 = vunpack.i.l.bf16 %v7305_v13  ;;  %vm10379_vm7 = vmmov %vm10375_vm6 }
 0x888   :  { %7514 = vrot.lane.b32.xlu0 %v9573_v52, %s10231_s23  ;;  %7509 = vrot.lane.b32.xlu1 %v9573_v52, %s10216_s7  ;;  %vm10380_vm8 = vmmov %vm10375_vm6 }
 0x889   :  { %6191 = vmatpush1.bf16.msra.mxu0 %v6190_v51  ;;  %6237 = vmatprep.subr.bf16.mxu1 %v6236_v39  ;;  %v4393_v34 = vsel %vm10375_vm6, %v7306_v35, %v7307_v49  ;;  %v4446_v48 = vsel %vm10376_vm10, %v7311_v42, %v7312_v36  ;;  %vm10381_vm6 = vmmov %vm10376_vm10 }
 0x88a   :  { %6239 = vmatpush1.bf16.msra.mxu1 %v6238_v54  ;;  %v9649_v61 = vpop.permute.xlu0 %7319  ;;  %v7315_v50 = vpop.permute.xlu1 %7314  ;;  %v6192_v8 = vpack.c.bf16 %v4446_v48, %v4393_v34  ;;  %vm10382_vm10 = vmmov %vm10381_vm6 }
 0x88b   :  { %v10151_v20 = vunpack.i.h.bf16 %v9649_v61  ;;  %v7321_v31 = vunpack.i.l.bf16 %v9649_v61  ;;  %v7317_v55 = vunpack.i.h.bf16 %v7315_v50  ;;  %v7316_v41 = vunpack.i.l.bf16 %v7315_v50 }
 0x88c   :  { %7524 = vrot.lane.b32.xlu0 %v9573_v52, %s10217_s8  ;;  %7519 = vrot.lane.b32.xlu1 %v9573_v52, %s10218_s29 }
 0x88d   :  { %v9660_v27 = vsel %vm10377_vm11, %v7321_v31, %v10151_v20  ;;  %6193 = vmatprep.subr.bf16.mxu0 %v6192_v8  ;;  %v4392_v13 = vsel %vm10378_vm9, %v7316_v41, %v7306_v35  ;;  %v4394_v39 = vsel %vm10379_vm7, %v7307_v49, %v7317_v55  ;;  %v4395_v34 = vsel %vm10380_vm8, %v7317_v55, %v7321_v31  ;;  %vm10383_vm11 = vmmov %vm10381_vm6 }
 0x88e   :  { %v9662_v62 = vpop.permute.xlu0 %7329  ;;  %v7325_v21 = vpop.permute.xlu1 %7324  ;;  %vm10384_vm9 = vmmov %vm10381_vm6  ;;  %vm10385_vm7 = vcmask 154624   ;;  %vm10386_vm8 = vcmask 146432  }
 0x88f   :  { %v10155_v37 = vunpack.i.h.bf16 %v9662_v62  ;;  %v7331_v51 = vunpack.i.l.bf16 %v9662_v62  ;;  %v7327_v54 = vunpack.i.h.bf16 %v7325_v21  ;;  %v7326_v53 = vunpack.i.l.bf16 %v7325_v21 }
 0x890   :  { %7534 = vrot.lane.b32.xlu0 %v9573_v52, %s10219_s0  ;;  %7529 = vrot.lane.b32.xlu1 %v9573_v52, %s10220_s24 }
 0x891   :  { %v9676_v48 = vsel %vm10381_vm6, %v7331_v51, %v10155_v37  ;;  %v4447_v50 = vsel %vm10382_vm10, %v7312_v36, %v7327_v54  ;;  %v4445_v8 = vsel %vm10383_vm11, %v7326_v53, %v7311_v42  ;;  %v4448_v35 = vsel %vm10384_vm9, %v7327_v54, %v7331_v51  ;;  %vm10387_vm6 = vmmov %vm10385_vm7 }
 0x892   :  { %v6194_v41 = vpack.c.bf16 %v4445_v8, %v4392_v13  ;;  %v6242_v21 = vpack.c.bf16 %v4447_v50, %v4394_v39  ;;  %v7340_v30 = vpop.permute.xlu0 %7339  ;;  %v7335_v20 = vpop.permute.xlu1 %7334  ;;  %v6240_v57 = vpack.c.bf16 %v4448_v35, %v4395_v34  ;;  %vm10388_vm10 = vmmov %vm10387_vm6 }
 0x893   :  { %v7342_v31 = vunpack.i.h.bf16 %v7340_v30  ;;  %v7341_v55 = vunpack.i.l.bf16 %v7340_v30  ;;  %v7337_v43 = vunpack.i.h.bf16 %v7335_v20  ;;  %v7336_v22 = vunpack.i.l.bf16 %v7335_v20  ;;  %vm10389_vm11 = vmmov %vm10387_vm6 }
 0x894   :  { %7544 = vrot.lane.b32.xlu0 %v9573_v52, %s10221_s2  ;;  %7539 = vrot.lane.b32.xlu1 %v9573_v52, %s10222_s11  ;;  %v7553_v30 = vpack.i.bf16 %v9551_v4, %v9398_v0  ;;  %vm10390_vm9 = vmmov %vm10387_vm6 }
 0x895   :  { %6195 = vmatpush1.bf16.msra.mxu0 %v6194_v41  ;;  %6241 = vmatprep.subr.bf16.mxu1 %v6240_v57  ;;  %v4499_v36 = vsel %vm10385_vm7, %v7336_v22, %v7337_v43  ;;  %v4552_v42 = vsel %vm10386_vm8, %v7341_v55, %v7342_v31  ;;  %vm10391_vm7 = vmmov %vm10386_vm8 }
 0x896   :  { %6243 = vmatpush1.bf16.msra.mxu1 %v6242_v21  ;;  %v9689_v51 = vpop.permute.xlu0 %7349  ;;  %v7345_v54 = vpop.permute.xlu1 %7344  ;;  %v6196_v20 = vpack.c.bf16 %v4552_v42, %v4499_v36  ;;  %vm10392_vm8 = vmmov %vm10391_vm7 }
 0x897   :  { %v10154_v53 = vunpack.i.h.bf16 %v9689_v51  ;;  %v7351_v13 = vunpack.i.l.bf16 %v9689_v51  ;;  %v7347_v39 = vunpack.i.h.bf16 %v7345_v54  ;;  %v7346_v34 = vunpack.i.l.bf16 %v7345_v54 }
 0x898   :  { %7554 = vrot.lane.b32.xlu0 %v7553_v30, %s10223_s12  ;;  %7549 = vrot.lane.b32.xlu1 %v9573_v52, %s10224_s1 }
 0x899   :  { %v9701_v57 = vsel %vm10387_vm6, %v7351_v13, %v10154_v53  ;;  %6197 = vmatprep.subr.bf16.mxu0 %v6196_v20  ;;  %v4498_v42 = vsel %vm10388_vm10, %v7346_v34, %v7336_v22  ;;  %v4500_v54 = vsel %vm10389_vm11, %v7337_v43, %v7347_v39  ;;  %v4501_v30 = vsel %vm10390_vm9, %v7347_v39, %v7351_v13  ;;  %vm10393_vm6 = vmmov %vm10391_vm7 }
 0x89a   :  { %v9703_v50 = vpop.permute.xlu0 %7359  ;;  %v7355_v8 = vpop.permute.xlu1 %7354  ;;  %vm10394_vm10 = vmmov %vm10393_vm6  ;;  %vm10395_vm11 = vcmask 15360   ;;  %vm10396_vm9 = vcmask 7168  }
 0x89b   :  { %v10160_v35 = vunpack.i.h.bf16 %v9703_v50  ;;  %v7361_v41 = vunpack.i.l.bf16 %v9703_v50  ;;  %v7357_v21 = vunpack.i.h.bf16 %v7355_v8  ;;  %v7356_v36 = vunpack.i.l.bf16 %v7355_v8 }
 0x89c   :  { %7559 = vrot.lane.b32.xlu0 %v9573_v52, %s10225_s15  ;;  %4655 = vrot.lane.b32.xlu1 %v9554_v63, %s10223_s12 }
 0x89d   :  { %v9717_v20 = vsel %vm10391_vm7, %v7361_v41, %v10160_v35  ;;  %v4553_v49 = vsel %vm10392_vm8, %v7342_v31, %v7357_v21  ;;  %v4551_v8 = vsel %vm10393_vm6, %v7356_v36, %v7341_v55  ;;  %v4554_v22 = vsel %vm10394_vm10, %v7357_v21, %v7361_v41  ;;  %vm10397_vm7 = vmmov %vm10395_vm11 }
 0x89e   :  { %v6198_v34 = vpack.c.bf16 %v4551_v8, %v4498_v42  ;;  %v6246_v53 = vpack.c.bf16 %v4553_v49, %v4500_v54  ;;  %v7370_v37 = vpop.permute.xlu0 %7369  ;;  %v7365_v10 = vpop.permute.xlu1 %7364  ;;  %v6244_v26 = vpack.c.bf16 %v4554_v22, %v4501_v30  ;;  %vm10398_vm8 = vmmov %vm10397_vm7 }
 0x89f   :  { %v7372_v13 = vunpack.i.h.bf16 %v7370_v37  ;;  %v7371_v39 = vunpack.i.l.bf16 %v7370_v37  ;;  %v7367_v29 = vunpack.i.h.bf16 %v7365_v10  ;;  %v7366_v18 = vunpack.i.l.bf16 %v7365_v10  ;;  %vm10399_vm6 = vmmov %vm10397_vm7 }
 0x8a0   :  { %7564 = vrot.lane.b32.xlu0 %v9573_v52, %s10165_s26  ;;  %7569 = vrot.lane.b32.xlu1 %v9573_v52, %s10166_s20  ;;  %vm10400_vm10 = vmmov %vm10396_vm9 }
 0x8a1   :  { %6199 = vmatpush1.bf16.msra.mxu0 %v6198_v34  ;;  %6245 = vmatprep.subr.bf16.mxu1 %v6244_v26  ;;  %v4605_v31 = vsel %vm10395_vm11, %v7366_v18, %v7367_v29  ;;  %v4658_v55 = vsel %vm10396_vm9, %v7371_v39, %v7372_v13  ;;  %vm10401_vm11 = vmmov %vm10396_vm9 }
 0x8a2   :  { %6247 = vmatpush1.bf16.msra.mxu1 %v6246_v53  ;;  %v9730_v49 = vpop.permute.xlu0 %7379  ;;  %v7375_v41 = vpop.permute.xlu1 %7374  ;;  %v6200_v21 = vpack.c.bf16 %v4658_v55, %v4605_v31  ;;  %vm10402_vm9 = vmmov %vm10399_vm6 }
 0x8a3   :  { %v10159_v37 = vunpack.i.h.bf16 %v9730_v49  ;;  %v7381_v10 = vunpack.i.l.bf16 %v9730_v49  ;;  %v7377_v36 = vunpack.i.h.bf16 %v7375_v41  ;;  %v7376_v42 = vunpack.i.l.bf16 %v7375_v41 }
 0x8a4   :  { %7574 = vrot.lane.b32.xlu0 %v9573_v52, %s10167_s18  ;;  %7579 = vrot.lane.b32.xlu1 %v9573_v52, %s10168_s30 }
 0x8a5   :  { %v9741_v26 = vsel %vm10397_vm7, %v7381_v10, %v10159_v37  ;;  %6201 = vmatprep.subr.bf16.mxu0 %v6200_v21  ;;  %v4604_v22 = vsel %vm10398_vm8, %v7376_v42, %v7366_v18  ;;  %v4606_v34 = vsel %vm10399_vm6, %v7367_v29, %v7377_v36  ;;  %v4607_v41 = vsel %vm10402_vm9, %v7377_v36, %v7381_v10  ;;  %vm10403_vm7 = vmmov %vm10400_vm10 }
 0x8a6   :  { %v9743_v53 = vpop.permute.xlu0 %4649  ;;  %v7385_v54 = vpop.permute.xlu1 %7384  ;;  %vm10404_vm8 = vcmask 1039360   ;;  %vm10408_vm9 = vcmask 1031168  }
 0x8a7   :  { %v7387_v30 = vunpack.i.h.bf16 %v7385_v54  ;;  %v7386_v8 = vunpack.i.l.bf16 %v7385_v54  ;;  %vm10405_vm6 = vmmov %vm10404_vm8 }
 0x8a8   :  { %7584 = vrot.lane.b32.xlu0 %v9573_v52, %s10169_s14  ;;  %7589 = vrot.lane.b32.xlu1 %v9573_v52, %s10170_s27 }
 0x8a9   :  { %v4659_v31 = vsel %vm10400_vm10, %v7372_v13, %v7387_v30  ;;  %v4657_v55 = vsel %vm10401_vm11, %v7386_v8, %v7371_v39  ;;  %v4660_v21 = vsel %vm10403_vm7, %v7387_v30, %v9743_v53  ;;  %vm10406_vm10 = vmmov %vm10405_vm6  ;;  %vm10409_vm7 = vcmask 900096  }
 0x8aa   :  { %v6202_v54 = vpack.c.bf16 %v4657_v55, %v4604_v22  ;;  %v6250_v43 = vpack.c.bf16 %v4659_v31, %v4606_v34  ;;  %v7395_v18 = vpop.permute.xlu0 %7394  ;;  %v7390_v42 = vpop.permute.xlu1 %7389  ;;  %v6248_v29 = vpack.c.bf16 %v4660_v21, %v4607_v41  ;;  %vm10407_vm11 = vmmov %vm10405_vm6 }
 0x8ab   :  { %v7397_v37 = vunpack.i.h.bf16 %v7395_v18  ;;  %v7396_v35 = vunpack.i.l.bf16 %v7395_v18  ;;  %v7392_v1 = vunpack.i.h.bf16 %v7390_v42  ;;  %v7391_v5 = vunpack.i.l.bf16 %v7390_v42 }
 0x8ac   :  { %7594 = vrot.lane.b32.xlu0 %v9573_v52, %s10171_s22  ;;  %7599 = vrot.lane.b32.xlu1 %v9573_v52, %s10172_s28 }
 0x8ad   :  { %v4724_v13 = vsel %vm10404_vm8, %v7396_v35, %v7391_v5  ;;  %6203 = vmatpush1.bf16.msra.mxu0 %v6202_v54  ;;  %6249 = vmatprep.subr.bf16.mxu1 %v6248_v29  ;;  %v4725_v39 = vsel %vm10405_vm6, %v7391_v5, %v7392_v1  ;;  %v4726_v10 = vsel %vm10406_vm10, %v7392_v1, %v7397_v37  ;;  %vm10410_vm8 = vmmov %vm10408_vm9 }
 0x8ae   :  { %v6206_v36 = vpack.c.bf16 %v4724_v13, %v9386_v38  ;;  %6251 = vmatpush1.bf16.msra.mxu1 %v6250_v43  ;;  %v7400_v30 = vpop.permute.xlu0 %7399  ;;  %v9764_v8 = vpop.permute.xlu1 %4716  ;;  %v6204_v22 = vpack.c.bf16 %v4725_v39, %v9389_v40  ;;  %v6254_v5 = vpack.c.bf16 %v4726_v10, %v9392_v6  ;;  %vm10411_vm6 = vmmov %vm10409_vm7  ;;  %v5505_v39 = vld [vmem:[%s10047_s6] sm:$0xff] }
 0x8af   :  { %v4727_v34 = vsel %vm10407_vm11, %v7397_v37, %v9764_v8  ;;  %v7402_v38 = vunpack.i.h.bf16 %v7400_v30  ;;  %v7401_v1 = vunpack.i.l.bf16 %v7400_v30  ;;  %vm10412_vm10 = vmmov %vm10411_vm6 }
 0x8b0   :  { %v6252_v31 = vpack.c.bf16 %v4727_v34, %v9395_v32  ;;  %7604 = vrot.lane.b32.xlu0 %v9573_v52, %s10364_s3  ;;  %7609 = vrot.lane.b32.xlu1 %v9573_v52, %s10226_s25  ;;  %vm10413_vm11 = vmmov %vm10410_vm8 }
 0x8b1   :  { %6205 = vmatprep.subr.bf16.mxu0 %v6204_v22  ;;  %v4778_v52 = vsel %vm10408_vm9, %v7401_v1, %v7402_v38  ;;  %vm10414_vm9 = vmmov %vm10411_vm6 }
 0x8b2   :  { %6207 = vmatpush1.bf16.msra.mxu0 %v6206_v36  ;;  %v7410_v35 = vpop.permute.xlu0 %7409  ;;  %v7405_v43 = vpop.permute.xlu1 %7404  ;;  %6253 = vmatprep.subr.bf16.mxu1 %v6252_v31 }
 0x8b3   :  { %v7407_v40 = vunpack.i.h.bf16 %v7405_v43  ;;  %v7406_v55 = vunpack.i.l.bf16 %v7405_v43  ;;  %6255 = vmatpush1.bf16.msra.mxu1 %v6254_v5  ;;  %v7411_v32 = vunpack.i.l.bf16 %v7410_v35  ;;  %v7412_v42 = vunpack.i.h.bf16 %v7410_v35 }
 0x8b4   :  { %5301 = vrot.lane.b32.xlu0 %v9551_v4, %s10369_s17  ;;  %5252 = vrot.lane.b32.xlu1 %v10356_v7, %s10226_s25 }
 0x8b5   :  { %v4831_v6 = vsel %vm10409_vm7, %v7406_v55, %v7407_v40  ;;  %v4777_v29 = vsel %vm10410_vm8, %v7411_v32, %v7401_v1  ;;  %vm10415_vm7 = vmmov %vm10410_vm8  ;;  %vm10416_vm8 = vcmask 891904  }
 0x8b6   :  { %v7415_v37 = vpop.permute.xlu0 %7414  ;;  %v9781_v41 = vpop.permute.xlu1 %4769  ;;  %v6208_v21 = vpack.c.bf16 %v4831_v6, %v4778_v52  ;;  %v4779_v5 = vsel %vm10415_vm7, %v7402_v38, %v7412_v42  ;;  %vm10421_vm7 = vmmov %vm10416_vm8 }
 0x8b7   :  { %v7417_v54 = vunpack.i.h.bf16 %v7415_v37  ;;  %v7416_v18 = vunpack.i.l.bf16 %v7415_v37  ;;  %v4780_v34 = vsel %vm10413_vm11, %v7412_v42, %v9781_v41 }
 0x8b8   :  { %5305 = vrot.lane.b32.xlu0 %v10356_v7, %s10369_s17  ;;  %5303 = vrot.lane.b32.xlu1 %v9554_v63, %s10369_s17 }
 0x8b9   :  { %v4830_v13 = vsel %vm10411_vm6, %v7416_v18, %v7406_v55  ;;  %6209 = vmatprep.subr.bf16.mxu0 %v6208_v21  ;;  %v4832_v10 = vsel %vm10412_vm10, %v7407_v40, %v7417_v54  ;;  %vm10417_vm6 = vcmask 883712   ;;  %vm10418_vm10 = vmmov %vm10416_vm8 }
 0x8ba   :  { %v6210_v36 = vpack.c.bf16 %v4830_v13, %v4777_v29  ;;  %v7420_v30 = vpop.permute.xlu0 %7419  ;;  %v9793_v22 = vpop.permute.xlu1 %4822  ;;  %v6258_v35 = vpack.c.bf16 %v4832_v10, %v4779_v5  ;;  %vm10419_vm11 = vmmov %vm10417_vm6 }
 0x8bb   :  { %v4833_v31 = vsel %vm10414_vm9, %v7417_v54, %v9793_v22  ;;  %v7422_v43 = vunpack.i.h.bf16 %v7420_v30  ;;  %v7421_v55 = vunpack.i.l.bf16 %v7420_v30  ;;  %vm10420_vm9 = vmmov %vm10417_vm6 }
 0x8bc   :  { %v6256_v1 = vpack.c.bf16 %v4833_v31, %v4780_v34  ;;  %5508 = vperm.xlu1 %6802, %v5505_v39   ;;  %6211 = vmatpush1.bf16.msra.mxu0 %v6210_v36 }
 0x8bd   :  { %v4884_v21 = vsel %vm10416_vm8, %v7421_v55, %v7422_v43  ;;  %vm10422_vm8 = vmmov %vm10417_vm6 }
 0x8be   :  { %v7430_v32 = vpop.permute.xlu0 %7429  ;;  %v7425_v40 = vpop.permute.xlu1 %7424  ;;  %6257 = vmatprep.subr.bf16.mxu1 %v6256_v1 }
 0x8bf   :  { %v7427_v52 = vunpack.i.h.bf16 %v7425_v40  ;;  %v7426_v6 = vunpack.i.l.bf16 %v7425_v40  ;;  %6259 = vmatpush1.bf16.msra.mxu1 %v6258_v35  ;;  %v7431_v37 = vunpack.i.l.bf16 %v7430_v32  ;;  %v7432_v39 = vunpack.i.h.bf16 %v7430_v32 }
 0x8c1   :  { %v4937_v18 = vsel %vm10417_vm6, %v7426_v6, %v7427_v52  ;;  %v4883_v10 = vsel %vm10418_vm10, %v7431_v37, %v7421_v55  ;;  %vm10423_vm6 = vmmov %vm10421_vm7  ;;  %vm10424_vm10 = vcmask 875520  }
 0x8c2   :  { %v7435_v54 = vpop.permute.xlu0 %7434  ;;  %v9802_v29 = vpop.permute.xlu1 %4875  ;;  %v6212_v38 = vpack.c.bf16 %v4937_v18, %v4884_v21  ;;  %v4885_v40 = vsel %vm10423_vm6, %v7422_v43, %v7432_v39 }
 0x8c3   :  { %v7437_v42 = vunpack.i.h.bf16 %v7435_v54  ;;  %v7436_v13 = vunpack.i.l.bf16 %v7435_v54  ;;  %v4886_v1 = vsel %vm10421_vm7, %v7432_v39, %v9802_v29 }
 0x8c4   :  { %6213 = vmatprep.subr.bf16.mxu0 %v6212_v38 }
 0x8c5   :  { %v4936_v36 = vsel %vm10419_vm11, %v7436_v13, %v7426_v6  ;;  %v4938_v30 = vsel %vm10420_vm9, %v7427_v52, %v7437_v42  ;;  %vm10425_vm11 = vcmask 867328   ;;  %vm10426_vm9 = vmmov %vm10424_vm10 }
 0x8c6   :  { %v6214_v34 = vpack.c.bf16 %v4936_v36, %v4883_v10  ;;  %v7440_v31 = vpop.permute.xlu0 %7439  ;;  %v9807_v5 = vpop.permute.xlu1 %4928  ;;  %v6262_v21 = vpack.c.bf16 %v4938_v30, %v4885_v40  ;;  %vm10427_vm7 = vmmov %vm10425_vm11 }
 0x8c7   :  { %v4939_v35 = vsel %vm10422_vm8, %v7437_v42, %v9807_v5  ;;  %v7442_v55 = vunpack.i.h.bf16 %v7440_v31  ;;  %v7441_v37 = vunpack.i.l.bf16 %v7440_v31  ;;  %vm10428_vm8 = vmmov %vm10427_vm7 }
 0x8c8   :  { %v6260_v32 = vpack.c.bf16 %v4939_v35, %v4886_v1  ;;  %6215 = vmatpush1.bf16.msra.mxu0 %v6214_v34  ;;  %vm10429_vm6 = vmmov %vm10426_vm9 }
 0x8c9   :  { %v4990_v13 = vsel %vm10424_vm10, %v7441_v37, %v7442_v55  ;;  %vm10430_vm10 = vmmov %vm10427_vm7 }
 0x8ca   :  { %v7450_v6 = vpop.permute.xlu0 %7449  ;;  %v7445_v18 = vpop.permute.xlu1 %7444  ;;  %6261 = vmatprep.subr.bf16.mxu1 %v6260_v32 }
 0x8cb   :  { %v7447_v52 = vunpack.i.h.bf16 %v7445_v18  ;;  %v7446_v54 = vunpack.i.l.bf16 %v7445_v18  ;;  %6263 = vmatpush1.bf16.msra.mxu1 %v6262_v21  ;;  %v7451_v38 = vunpack.i.l.bf16 %v7450_v6  ;;  %v7452_v30 = vunpack.i.h.bf16 %v7450_v6 }
 0x8cd   :  { %v5043_v10 = vsel %vm10425_vm11, %v7446_v54, %v7447_v52  ;;  %v4989_v31 = vsel %vm10426_vm9, %v7451_v38, %v7441_v37  ;;  %vm10431_vm11 = vmmov %vm10429_vm6  ;;  %vm10432_vm9 = vcmask 728064  }
 0x8ce   :  { %v7455_v36 = vpop.permute.xlu0 %7454  ;;  %v9816_v42 = vpop.permute.xlu1 %4981  ;;  %v6216_v43 = vpack.c.bf16 %v5043_v10, %v4990_v13  ;;  %v4991_v10 = vsel %vm10431_vm11, %v7442_v55, %v7452_v30  ;;  %vm10456_vm11 = vcmask 154624  }
 0x8cf   :  { %v7457_v39 = vunpack.i.h.bf16 %v7455_v36  ;;  %v7456_v34 = vunpack.i.l.bf16 %v7455_v36  ;;  %v4992_v18 = vsel %vm10429_vm6, %v7452_v30, %v9816_v42 }
 0x8d0   :  { %6217 = vmatprep.subr.bf16.mxu0 %v6216_v43 }
 0x8d1   :  { %v5042_v1 = vsel %vm10427_vm7, %v7456_v34, %v7446_v54  ;;  %v5044_v35 = vsel %vm10428_vm8, %v7447_v52, %v7457_v39  ;;  %vm10434_vm7 = vmmov %vm10432_vm9 }
 0x8d2   :  { %v6218_v40 = vpack.c.bf16 %v5042_v1, %v4989_v31  ;;  %v7460_v32 = vpop.permute.xlu0 %7459  ;;  %v9821_v21 = vpop.permute.xlu1 %5034  ;;  %v6266_v36 = vpack.c.bf16 %v5044_v35, %v4991_v10  ;;  %vm10435_vm8 = vmmov %vm10434_vm7 }
 0x8d3   :  { %v5045_v13 = vsel %vm10430_vm10, %v7457_v39, %v9821_v21  ;;  %v7462_v37 = vunpack.i.h.bf16 %v7460_v32  ;;  %v7461_v38 = vunpack.i.l.bf16 %v7460_v32  ;;  %vm10436_vm6 = vmmov %vm10434_vm7  ;;  %vm10455_vm10 = vcmask 146432  }
 0x8d4   :  { %v6264_v6 = vpack.c.bf16 %v5045_v13, %v4992_v18  ;;  %6219 = vmatpush1.bf16.msra.mxu0 %v6218_v40 }
 0x8d5   :  { %v5096_v1 = vsel %vm1210_vm13, %v7461_v38, %v7462_v37 }
 0x8d6   :  { %v7470_v54 = vpop.permute.xlu0 %7469  ;;  %v7465_v43 = vpop.permute.xlu1 %7464  ;;  %6265 = vmatprep.subr.bf16.mxu1 %v6264_v6 }
 0x8d7   :  { %v7467_v52 = vunpack.i.h.bf16 %v7465_v43  ;;  %v7466_v34 = vunpack.i.l.bf16 %v7465_v43  ;;  %6267 = vmatpush1.bf16.msra.mxu1 %v6266_v36  ;;  %v7471_v31 = vunpack.i.l.bf16 %v7470_v54  ;;  %v7472_v35 = vunpack.i.h.bf16 %v7470_v54 }
 0x8d9   :  { %v5149_v7 = vsel %vm10432_vm9, %v7466_v34, %v7467_v52  ;;  %v5095_v32 = vsel %vm1210_vm13, %v7471_v31, %v7461_v38  ;;  %vm10458_vm9 = vmmov %vm10456_vm11 }
 0x8da   :  { %v7475_v44 = vpop.permute.xlu0 %7474  ;;  %v9830_v39 = vpop.permute.xlu1 %5087  ;;  %v6220_v55 = vpack.c.bf16 %v5149_v7, %v5096_v1 }
 0x8db   :  { %10433 = vst [vmem:[#allocation6_spill] sm:$0xff] %v9830_v39  ;;  %v7477_v30 = vunpack.i.h.bf16 %v7475_v44  ;;  %v7476_v40 = vunpack.i.l.bf16 %v7475_v44  ;;  %v5098_v43 = vsel %vm1210_vm13, %v7472_v35, %v9830_v39  ;;  %v5097_v44 = vsel %vm1210_vm13, %v7462_v37, %v7472_v35 }
 0x8dc   :  { %6221 = vmatprep.subr.bf16.mxu0 %v6220_v55 }
 0x8dd   :  { %v5148_v18 = vsel %vm10434_vm7, %v7476_v40, %v7466_v34  ;;  %v5150_v13 = vsel %vm10435_vm8, %v7467_v52, %v7477_v30  ;;  %vm10460_vm7 = vmmov %vm10455_vm10  ;;  %vm10462_vm8 = vcmask 7168  }
 0x8de   :  { %v6222_v10 = vpack.c.bf16 %v5148_v18, %v5095_v32  ;;  %v7480_v6 = vpop.permute.xlu0 %7479  ;;  %v9835_v36 = vpop.permute.xlu1 %5140  ;;  %v6270_v1 = vpack.c.bf16 %v5150_v13, %v5097_v44 }
 0x8df   :  { %v5151_v7 = vsel %vm10436_vm6, %v7477_v30, %v9835_v36  ;;  %v7482_v38 = vunpack.i.h.bf16 %v7480_v6  ;;  %v7481_v31 = vunpack.i.l.bf16 %v7480_v6  ;;  %vm10464_vm6 = vcmask 15360  }
 0x8e0   :  { %v6268_v54 = vpack.c.bf16 %v5151_v7, %v5098_v43  ;;  %6223 = vmatpush1.bf16.msra.mxu0 %v6222_v10 }
 0x8e1   :  { %v5202_v18 = vsel %vm1318_vm12, %v7481_v31, %v7482_v38 }
 0x8e2   :  { %v7490_v34 = vpop.permute.xlu0 %7489  ;;  %v7485_v55 = vpop.permute.xlu1 %7484  ;;  %6269 = vmatprep.subr.bf16.mxu1 %v6268_v54 }
 0x8e3   :  { %v7487_v52 = vunpack.i.h.bf16 %v7485_v55  ;;  %v7486_v40 = vunpack.i.l.bf16 %v7485_v55  ;;  %6271 = vmatpush1.bf16.msra.mxu1 %v6270_v1  ;;  %v7491_v32 = vunpack.i.l.bf16 %v7490_v34  ;;  %v7492_v13 = vunpack.i.h.bf16 %v7490_v34 }
 0x8e5   :  { %v5255_v39 = vsel %vm1372_vm15, %v7486_v40, %v7487_v52  ;;  %v5201_v6 = vsel %vm1318_vm12, %v7491_v32, %v7481_v31 }
 0x8e6   :  { %v7495_v16 = vpop.permute.xlu0 %7494  ;;  %v9844_v30 = vpop.permute.xlu1 %5193  ;;  %v6224_v37 = vpack.c.bf16 %v5255_v39, %v5202_v18 }
 0x8e7   :  { %10437 = vst [vmem:[#allocation7_spill] sm:$0xff] %v9844_v30  ;;  %v7497_v35 = vunpack.i.h.bf16 %v7495_v16  ;;  %v7496_v10 = vunpack.i.l.bf16 %v7495_v16  ;;  %v5204_v55 = vsel %vm1318_vm12, %v7492_v13, %v9844_v30  ;;  %v5203_v16 = vsel %vm1318_vm12, %v7482_v38, %v7492_v13  ;;  %v9864_v13 = vld [vmem:[%s10046_s5] sm:$0xff] }
 0x8e8   :  { %6225 = vmatprep.subr.bf16.mxu0 %v6224_v37  ;;  %v10438_v37 = vunpack.i.h.bf16 %v9519_v59 }
 0x8e9   :  { %v5254_v43 = vsel %vm1372_vm15, %v7496_v10, %v7486_v40  ;;  %v5256_v7 = vsel %vm1372_vm15, %v7487_v52, %v7497_v35 }
 0x8ea   :  { %v6226_v44 = vpack.c.bf16 %v5254_v43, %v5201_v6  ;;  %v7500_v54 = vpop.permute.xlu0 %7499  ;;  %v9849_v1 = vpop.permute.xlu1 %5246  ;;  %v6274_v18 = vpack.c.bf16 %v5256_v7, %v5203_v16  ;;  %v10439_v7 = vunpack.i.h.bf16 %v9507_v9 }
 0x8eb   :  { %v5257_v39 = vsel %vm1372_vm15, %v7497_v35, %v9849_v1  ;;  %v7501_v40 = vunpack.i.l.bf16 %v7500_v54 }
 0x8ec   :  { %v6272_v34 = vpack.c.bf16 %v5257_v39, %v5204_v55  ;;  %6227 = vmatpush1.bf16.msra.mxu0 %v6226_v44  ;;  %v7502_v55 = vunpack.i.h.bf16 %v7500_v54 }
 0x8ed   :  { %v4079_v44 = vsel %vm170_vm0, %v10439_v7, %v7501_v40 }
 0x8ee   :  { %v5294_v31 = vpop.permute.xlu0 %5293  ;;  %v7505_v32 = vpop.permute.xlu1 %7504  ;;  %6273 = vmatprep.subr.bf16.mxu1 %v6272_v34  ;;  %v4080_v54 = vsel %vm170_vm0, %v7501_v40, %v7502_v55  ;;  %vm10443_vm0 = vcmask 179200  }
 0x8ef   :  { %v7506_v52 = vunpack.i.l.bf16 %v7505_v32  ;;  %6275 = vmatpush1.bf16.msra.mxu1 %v6274_v18  ;;  %v7507_v6 = vunpack.i.h.bf16 %v7505_v32 }
 0x8f1   :  { %v4132_v10 = vsel %vm224_vm1, %v10438_v37, %v7506_v52  ;;  %v4133_v39 = vsel %vm224_vm1, %v7506_v52, %v7507_v6  ;;  %vm10447_vm1 = vmmov %vm10443_vm0 }
 0x8f2   :  { %v5292_v43 = vpop.permute.xlu0 %5291  ;;  %v5296_v30 = vpop.permute.xlu1 %5295  ;;  %v6276_v59 = vpack.c.bf16 %v4132_v10, %v4079_v44  ;;  %v6325_v32 = vpack.c.bf16 %v4133_v39, %v4080_v54  ;;  %v10444_v54 = vpack.c.bf16 %v9596_v3, %v9567_v47 }
 0x8f3   :  { %v5307_v35 = vsel %vm1426_vm14, %v5292_v43, %v5294_v31  ;;  %v5308_v38 = vsel %vm1426_vm14, %v5294_v31, %v5296_v30  ;;  %v10440_v31 = vpack.c.bf16 %v9537_v19, %v9527_v15  ;;  %v10441_v43 = vunpack.i.h.bf16 %v9556_v23 }
 0x8f4   :  { %5562 = vmatprep.subr.mxu0 %v5308_v38  ;;  %v10442_v38 = vunpack.i.h.bf16 %v9569_v46  ;;  %v10445_v46 = vunpack.i.h.bf16 %v9609_v17  ;;  %v10450_v17 = vunpack.i.h.bf16 %v9649_v61 }
 0x8f5   :  { %5563 = vmatpush1.msra.mxu0 %v5307_v35 }
 0x8f6   :  { %v9870_v16 = vpop.permute.xlu0 %5299  ;;  %v5298_v34 = vpop.permute.xlu1 %5297  ;;  %5579 = vmatmul.mubr.f32.vlgmr.msra.gmra.mrb[8].mxu0 %v9864_v13  ;;  %6277 = vmatprep.subr.bf16.mxu0 %v6276_v59 }
 0x8f7   :  { %v5309_v18 = vsel %vm1426_vm14, %v5296_v30, %v5298_v34  ;;  %6279 = vmatpush1.bf16.msra.mxu0 %v10440_v31  ;;  %v5310_v9 = vsel %vm1426_vm14, %v5298_v34, %v9870_v16  ;;  %5818 = vmatprep.mubr.msk.f32.mxu0 %vm1631_vm4, %v9578_v12 }
 0x8f8   :  { %5633 = vmatprep.subr.mxu1 %v5310_v9 }
 0x8f9   :  { %5634 = vmatpush1.msra.mxu1 %v5309_v18 }
 0x8fa   :  { %v7515_v52 = vpop.permute.xlu0 %7514  ;;  %v7510_v37 = vpop.permute.xlu1 %7509  ;;  %5650 = vmatmul.mubr.f32.vlgmr.msra.gmra.mrb[8].mxu1 %v9864_v13  ;;  %6324 = vmatprep.subr.bf16.mxu1 %v10303_v60 }
 0x8fb   :  { %v7517_v30 = vunpack.i.h.bf16 %v7515_v52  ;;  %v7516_v15 = vunpack.i.l.bf16 %v7515_v52  ;;  %v7512_v19 = vunpack.i.h.bf16 %v7510_v37  ;;  %v7511_v10 = vunpack.i.l.bf16 %v7510_v37  ;;  %6326 = vmatpush1.bf16.msra.mxu1 %v6325_v32  ;;  %5819 = vmatprep.mubr.msk.f32.mxu1 %vm1631_vm4, %v9578_v12 }
 0x8fc   :  { %6327 = vmatprep.subr.bf16.mxu1 %v10303_v60 }
 0x8fd   :  { %v4239_v40 = vsel %vm332_vm3, %v7516_v15, %v7517_v30  ;;  %v4186_v6 = vsel %vm278_vm2, %v7511_v10, %v7512_v19  ;;  %v4185_v35 = vsel %vm278_vm2, %v10441_v43, %v7511_v10  ;;  %v4238_v7 = vsel %vm332_vm3, %v10442_v38, %v7516_v15 }
 0x8fe   :  { %v6328_v44 = vpack.c.bf16 %v4239_v40, %v4186_v6  ;;  %v7525_v55 = vpop.permute.xlu0 %7524  ;;  %v7520_v59 = vpop.permute.xlu1 %7519  ;;  %v6280_v39 = vpack.c.bf16 %v4238_v7, %v4185_v35  ;;  %v10446_v15 = vunpack.i.h.bf16 %v9622_v25  ;;  %vm10448_vm2 = vcmask 162816  }
 0x8ff   :  { %v7527_v34 = vunpack.i.h.bf16 %v7525_v55  ;;  %v7526_v12 = vunpack.i.l.bf16 %v7525_v55  ;;  %v7522_v18 = vunpack.i.h.bf16 %v7520_v59  ;;  %v7521_v31 = vunpack.i.l.bf16 %v7520_v59 }
 0x900   :  { %6281 = vmatprep.subr.bf16.mxu0 %v6280_v39  ;;  %6329 = vmatpush1.bf16.msra.mxu1 %v6328_v44  ;;  %vm10449_vm3 = vcmask 171008   ;;  %v10452_v25 = vunpack.i.h.bf16 %v9662_v62 }
 0x901   :  { %v4345_v9 = vsel %vm10443_vm0, %v7526_v12, %v7527_v34  ;;  %v4292_v23 = vsel %vm386_vm5, %v7521_v31, %v7522_v18  ;;  %6283 = vmatpush1.bf16.msra.mxu0 %v10444_v54  ;;  %6330 = vmatprep.subr.bf16.mxu1 %v10303_v60  ;;  %v4291_v32 = vsel %vm386_vm5, %v10445_v46, %v7521_v31  ;;  %vm10451_vm4 = vmmov %vm10449_vm3  ;;  %v10459_v46 = vunpack.i.h.bf16 %v9703_v50 }
 0x902   :  { %v6331_v52 = vpack.c.bf16 %v4345_v9, %v4292_v23  ;;  %v7535_v37 = vpop.permute.xlu0 %7534  ;;  %v7530_v30 = vpop.permute.xlu1 %7529  ;;  %v4344_v19 = vsel %vm10447_vm1, %v10446_v15, %v7526_v12  ;;  %vm10453_vm5 = vmmov %vm10448_vm2  ;;  %v10454_v34 = vpack.c.bf16 %v9636_v58, %v9620_v14  ;;  %v10457_v23 = vunpack.i.h.bf16 %v9689_v51 }
 0x903   :  { %v7537_v10 = vunpack.i.h.bf16 %v7535_v37  ;;  %v7536_v40 = vunpack.i.l.bf16 %v7535_v37  ;;  %v7532_v6 = vunpack.i.h.bf16 %v7530_v30  ;;  %v7531_v43 = vunpack.i.l.bf16 %v7530_v30  ;;  %vm10465_vm0 = vmmov %vm10462_vm8 }
 0x904   :  { %v6284_v35 = vpack.c.bf16 %v4344_v19, %v4291_v32  ;;  %6332 = vmatpush1.bf16.msra.mxu1 %v6331_v52  ;;  %v10461_v30 = vpack.c.bf16 %v9676_v48, %v9660_v27  ;;  %v10463_v50 = vunpack.i.h.bf16 %v9730_v49  ;;  %vm10466_vm1 = vmmov %vm10464_vm6 }
 0x905   :  { %v4451_v47 = vsel %vm10448_vm2, %v7536_v40, %v7537_v10  ;;  %v4398_v3 = vsel %vm10449_vm3, %v7531_v43, %v7532_v6  ;;  %6333 = vmatprep.subr.bf16.mxu1 %v10303_v60  ;;  %v4397_v38 = vsel %vm10451_vm4, %v10450_v17, %v7531_v43  ;;  %v4450_v7 = vsel %vm10453_vm5, %v10452_v25, %v7536_v40  ;;  %vm10468_vm2 = vmmov %vm10465_vm0 }
 0x906   :  { %v6334_v44 = vpack.c.bf16 %v4451_v47, %v4398_v3  ;;  %6285 = vmatprep.subr.bf16.mxu0 %v6284_v35  ;;  %v7545_v55 = vpop.permute.xlu0 %7544  ;;  %v7540_v59 = vpop.permute.xlu1 %7539  ;;  %v6288_v39 = vpack.c.bf16 %v4450_v7, %v4397_v38  ;;  %v10467_v17 = vpack.c.bf16 %v9717_v20, %v9701_v57  ;;  %vm10469_vm3 = vcmask 1039360  }
 0x907   :  { %6287 = vmatpush1.bf16.msra.mxu0 %v10454_v34  ;;  %v7547_v12 = vunpack.i.h.bf16 %v7545_v55  ;;  %v7546_v18 = vunpack.i.l.bf16 %v7545_v55  ;;  %v7542_v31 = vunpack.i.h.bf16 %v7540_v59  ;;  %v7541_v9 = vunpack.i.l.bf16 %v7540_v59  ;;  %vm10470_vm4 = vmmov %vm10469_vm3 }
 0x908   :  { %6289 = vmatprep.subr.bf16.mxu0 %v6288_v39  ;;  %6335 = vmatpush1.bf16.msra.mxu1 %v6334_v44  ;;  %vm10471_vm5 = vmmov %vm10469_vm3 }
 0x909   :  { %v4557_v61 = vsel %vm10455_vm10, %v7546_v18, %v7547_v12  ;;  %v4504_v62 = vsel %vm10456_vm11, %v7541_v9, %v7542_v31  ;;  %6336 = vmatprep.subr.bf16.mxu1 %v10303_v60  ;;  %v4503_v54 = vsel %vm10458_vm9, %v10457_v23, %v7541_v9  ;;  %v4556_v14 = vsel %vm10460_vm7, %v10459_v46, %v7546_v18 }
 0x90a   :  { %v6337_v58 = vpack.c.bf16 %v4557_v61, %v4504_v62  ;;  %v7555_v32 = vpop.permute.xlu0 %7554  ;;  %v7550_v52 = vpop.permute.xlu1 %7549  ;;  %v6292_v37 = vpack.c.bf16 %v4556_v14, %v4503_v54  ;;  %vm10472_vm10 = vcmask 1031168   ;;  %vm10474_vm9 = vcmask 900096  }
 0x90b   :  { %6291 = vmatpush1.bf16.msra.mxu0 %v10461_v30  ;;  %v7557_v15 = vunpack.i.h.bf16 %v7555_v32  ;;  %v7556_v19 = vunpack.i.l.bf16 %v7555_v32  ;;  %v7552_v10 = vunpack.i.h.bf16 %v7550_v52  ;;  %v7551_v40 = vunpack.i.l.bf16 %v7550_v52  ;;  %vm10473_vm11 = vmmov %vm10472_vm10 }
 0x90c   :  { %6293 = vmatprep.subr.bf16.mxu0 %v6292_v37  ;;  %6338 = vmatpush1.bf16.msra.mxu1 %v6337_v58  ;;  %vm10475_vm7 = vmmov %vm10474_vm9 }
 0x90d   :  { %v4661_v51 = vsel %vm10462_vm8, %v9743_v53, %v7556_v19  ;;  %v4609_v6 = vsel %vm10464_vm6, %v10463_v50, %v7551_v40  ;;  %v4662_v43 = vsel %vm10465_vm0, %v7556_v19, %v7557_v15  ;;  %6339 = vmatprep.subr.bf16.mxu1 %v10303_v60  ;;  %v4610_v48 = vsel %vm10466_vm1, %v7551_v40, %v7552_v10  ;;  %vm10476_vm8 = vmmov %vm10472_vm10 }
 0x90e   :  { %v7560_v35 = vpop.permute.xlu0 %7559  ;;  %v4656_v27 = vpop.permute.xlu1 %4655  ;;  %v6296_v47 = vpack.c.bf16 %v4662_v43, %v4609_v6  ;;  %v6298_v3 = vpack.c.bf16 %v4661_v51, %v9741_v26  ;;  %vm10477_vm6 = vmmov %vm10475_vm7  ;;  %vm10478_vm0 = vcmask 891904   ;;  %vm10479_vm1 = vcmask 883712  }
 0x90f   :  { %6295 = vmatpush1.bf16.msra.mxu0 %v10467_v17  ;;  %v7562_v53 = vunpack.i.h.bf16 %v7560_v35  ;;  %v7561_v38 = vunpack.i.l.bf16 %v7560_v35  ;;  %v4663_v49 = vsel %vm10468_vm2, %v7557_v15, %v4656_v27  ;;  %vm10480_vm2 = vmmov %vm10478_vm0 }
 0x910   :  { %v6340_v25 = vpack.c.bf16 %v4663_v49, %v4610_v48  ;;  %6297 = vmatprep.subr.bf16.mxu0 %v6296_v47  ;;  %v10490_v49 = vld [vmem:[#allocation11_spill] sm:$0xff] }
 0x911   :  { %v4730_v7 = vsel %vm10469_vm3, %v7562_v53, %v9348_v11  ;;  %v4728_v44 = vsel %vm10470_vm4, %v9764_v8, %v7561_v38  ;;  %v4729_v55 = vsel %vm10471_vm5, %v7561_v38, %v7562_v53  ;;  %vm10481_vm3 = vmmov %vm10479_vm1 }
 0x912   :  { %v6302_v26 = vpack.c.bf16 %v4728_v44, %v9398_v0  ;;  %v7565_v59 = vpop.permute.xlu0 %7564  ;;  %v7570_v39 = vpop.permute.xlu1 %7569  ;;  %6341 = vmatpush1.bf16.msra.mxu1 %v6340_v25  ;;  %v6300_v57 = vpack.c.bf16 %v4729_v55, %v9551_v4  ;;  %v6343_v11 = vpack.c.bf16 %v4730_v7, %v9554_v63  ;;  %vm10482_vm4 = vmmov %vm10478_vm0  ;;  %v10491_v25 = vld [vmem:[#allocation5_spill] sm:$0xff]  ;;  %v10493_v44 = vld [vmem:[#allocation6_spill] sm:$0xff] }
 0x913   :  { %6299 = vmatpush1.bf16.msra.mxu0 %v6298_v3  ;;  %v7567_v20 = vunpack.i.h.bf16 %v7565_v59  ;;  %v7566_v34 = vunpack.i.l.bf16 %v7565_v59  ;;  %v7572_v12 = vunpack.i.h.bf16 %v7570_v39  ;;  %v7571_v18 = vunpack.i.l.bf16 %v7570_v39  ;;  %6342 = vmatprep.subr.bf16.mxu1 %v10303_v60  ;;  %vm10483_vm5 = vmmov %vm10479_vm1 }
 0x914   :  { %6301 = vmatprep.subr.bf16.mxu0 %v6300_v57 }
 0x915   :  { %v4783_v8 = vsel %vm10472_vm10, %v7567_v20, %v9346_v45  ;;  %v4781_v0 = vsel %vm10473_vm11, %v9781_v41, %v7566_v34  ;;  %v4836_v31 = vsel %vm10474_vm9, %v7572_v12, %v9352_v2  ;;  %v4834_v4 = vsel %vm10475_vm7, %v9793_v22, %v7571_v18 }
 0x916   :  { %v6306_v9 = vpack.c.bf16 %v4834_v4, %v4781_v0  ;;  %v7575_v61 = vpop.permute.xlu0 %7574  ;;  %v7580_v62 = vpop.permute.xlu1 %7579  ;;  %6344 = vmatpush1.bf16.msra.mxu1 %v6343_v11  ;;  %v4782_v23 = vsel %vm10476_vm8, %v7566_v34, %v7567_v20  ;;  %v4835_v63 = vsel %vm10477_vm6, %v7571_v18, %v7572_v12  ;;  %v6346_v41 = vpack.c.bf16 %v4836_v31, %v4783_v8 }
 0x917   :  { %6303 = vmatpush1.bf16.msra.mxu0 %v6302_v26  ;;  %v7577_v54 = vunpack.i.h.bf16 %v7575_v61  ;;  %v7576_v45 = vunpack.i.l.bf16 %v7575_v61  ;;  %v7582_v46 = vunpack.i.h.bf16 %v7580_v62  ;;  %v7581_v14 = vunpack.i.l.bf16 %v7580_v62  ;;  %6345 = vmatprep.subr.bf16.mxu1 %v10303_v60 }
 0x918   :  { %v6304_v2 = vpack.c.bf16 %v4835_v63, %v4782_v23  ;;  %vm10484_vm10 = vcmask 875520   ;;  %vm10485_vm11 = vcmask 867328  }
 0x919   :  { %v4889_v22 = vsel %vm10478_vm0, %v7577_v54, %v9350_v56  ;;  %v4942_v58 = vsel %vm10479_vm1, %v7582_v46, %v9356_v24  ;;  %v4887_v32 = vsel %vm10480_vm2, %v9802_v29, %v7576_v45  ;;  %v4940_v52 = vsel %vm10481_vm3, %v9807_v5, %v7581_v14  ;;  %vm10486_vm9 = vmmov %vm10484_vm10 }
 0x91a   :  { %6305 = vmatprep.subr.bf16.mxu0 %v6304_v2  ;;  %v7585_v37 = vpop.permute.xlu0 %7584  ;;  %v7590_v30 = vpop.permute.xlu1 %7589  ;;  %6347 = vmatpush1.bf16.msra.mxu1 %v6346_v41  ;;  %v4888_v15 = vsel %vm10482_vm4, %v7576_v45, %v7577_v54  ;;  %v6349_v24 = vpack.c.bf16 %v4942_v58, %v4889_v22  ;;  %v4941_v51 = vsel %vm10483_vm5, %v7581_v14, %v7582_v46  ;;  %vm10487_vm7 = vmmov %vm10485_vm11  ;;  %vm10492_vm0 = vcmask 728064   ;;  %v10497_v45 = vld [vmem:[#allocation4_spill] sm:$0xff] }
 0x91b   :  { %6307 = vmatpush1.bf16.msra.mxu0 %v6306_v9  ;;  %v7587_v19 = vunpack.i.h.bf16 %v7585_v37  ;;  %v7586_v10 = vunpack.i.l.bf16 %v7585_v37  ;;  %v7592_v40 = vunpack.i.h.bf16 %v7590_v30  ;;  %v7591_v56 = vunpack.i.l.bf16 %v7590_v30  ;;  %6348 = vmatprep.subr.bf16.mxu1 %v10303_v60  ;;  %vm10488_vm8 = vmmov %vm10486_vm9 }
 0x91c   :  { %v6310_v29 = vpack.c.bf16 %v4940_v52, %v4887_v32  ;;  %v6308_v35 = vpack.c.bf16 %v4941_v51, %v4888_v15  ;;  %vm10489_vm6 = vmmov %vm10487_vm7  ;;  %v10498_v52 = vmov 0.0  }
 0x91d   :  { %v4995_v5 = vsel %vm10484_vm10, %v7587_v19, %v9354_v28  ;;  %v5048_v50 = vsel %vm10485_vm11, %v7592_v40, %v9360_v33  ;;  %v4993_v6 = vsel %vm10486_vm9, %v9816_v42, %v7586_v10  ;;  %v5046_v43 = vsel %vm10487_vm7, %v9821_v21, %v7591_v56  ;;  %vm10494_vm1 = vmmov %vm10492_vm0 }
 0x91e   :  { %v7595_v27 = vpop.permute.xlu0 %7594  ;;  %v7600_v48 = vpop.permute.xlu1 %7599  ;;  %6350 = vmatpush1.bf16.msra.mxu1 %v6349_v24  ;;  %v4994_v47 = vsel %vm10488_vm8, %v7586_v10, %v7587_v19  ;;  %v6352_v28 = vpack.c.bf16 %v5048_v50, %v4995_v5  ;;  %6309 = vmatprep.subr.bf16.mxu0 %v6308_v35  ;;  %v5047_v33 = vsel %vm10489_vm6, %v7591_v56, %v7592_v40  ;;  %vm10495_vm2 = vmmov %vm10492_vm0 }
 0x91f   :  { %v7597_v3 = vunpack.i.h.bf16 %v7595_v27  ;;  %v7596_v17 = vunpack.i.l.bf16 %v7595_v27  ;;  %v7602_v53 = vunpack.i.h.bf16 %v7600_v48  ;;  %v7601_v38 = vunpack.i.l.bf16 %v7600_v48  ;;  %6351 = vmatprep.subr.bf16.mxu1 %v10303_v60  ;;  %6311 = vmatpush1.bf16.msra.mxu0 %v6310_v29 }
 0x920   :  { %v6314_v42 = vpack.c.bf16 %v5046_v43, %v4993_v6  ;;  %v6312_v59 = vpack.c.bf16 %v5047_v33, %v4994_v47 }
 0x921   :  { %v5101_v21 = vsel %vm1210_vm13, %v7597_v3, %v10490_v49  ;;  %v5154_v7 = vsel %vm10492_vm0, %v7602_v53, %v10491_v25  ;;  %v5099_v55 = vsel %vm1210_vm13, %v10493_v44, %v7596_v17  ;;  %v5152_v26 = vsel %vm10494_vm1, %v9835_v36, %v7601_v38  ;;  %v10496_v36 = vld [vmem:[#allocation7_spill] sm:$0xff] }
 0x922   :  { %v7605_v39 = vpop.permute.xlu0 %7604  ;;  %v7610_v57 = vpop.permute.xlu1 %7609  ;;  %6353 = vmatpush1.bf16.msra.mxu1 %v6352_v28  ;;  %v5100_v20 = vsel %vm1210_vm13, %v7596_v17, %v7597_v3  ;;  %v6355_v8 = vpack.c.bf16 %v5154_v7, %v5101_v21  ;;  %6313 = vmatprep.subr.bf16.mxu0 %v6312_v59  ;;  %v5153_v0 = vsel %vm10495_vm2, %v7601_v38, %v7602_v53 }
 0x923   :  { %v7607_v34 = vunpack.i.h.bf16 %v7605_v39  ;;  %v7606_v12 = vunpack.i.l.bf16 %v7605_v39  ;;  %v7612_v18 = vunpack.i.h.bf16 %v7610_v57  ;;  %v7611_v11 = vunpack.i.l.bf16 %v7610_v57  ;;  %6354 = vmatprep.subr.bf16.mxu1 %v10303_v60  ;;  %6315 = vmatpush1.bf16.msra.mxu0 %v6314_v42 }
 0x924   :  { %v6318_v31 = vpack.c.bf16 %v5152_v26, %v5099_v55  ;;  %v6316_v4 = vpack.c.bf16 %v5153_v0, %v5100_v20 }
 0x925   :  { %v5205_v9 = vsel %vm1318_vm12, %v10496_v36, %v7606_v12  ;;  %v5258_v61 = vsel %vm1372_vm15, %v9849_v1, %v7611_v11  ;;  %v5206_v63 = vsel %vm1318_vm12, %v7606_v12, %v7607_v34  ;;  %v5259_v54 = vsel %vm1372_vm15, %v7611_v11, %v7612_v18 }
 0x926   :  { %v5302_v62 = vpop.permute.xlu0 %5301  ;;  %v5253_v23 = vpop.permute.xlu1 %5252  ;;  %6356 = vmatpush1.bf16.msra.mxu1 %v6355_v8  ;;  %6317 = vmatprep.subr.bf16.mxu0 %v6316_v4  ;;  %v5207_v46 = vsel %vm1318_vm12, %v7607_v34, %v10497_v45  ;;  %v6320_v41 = vpack.c.bf16 %v5259_v54, %v5206_v63  ;;  %v6322_v22 = vpack.c.bf16 %v5258_v61, %v5205_v9 }
 0x927   :  { %v5260_v14 = vsel %vm1372_vm15, %v7612_v18, %v5253_v23  ;;  %6357 = vmatprep.subr.bf16.mxu1 %v10303_v60  ;;  %6319 = vmatpush1.bf16.msra.mxu0 %v6318_v31  ;;  %v5311_v60 = vsel %vm1426_vm14, %v9870_v16, %v5302_v62 }
 0x928   :  { %v6358_v2 = vpack.c.bf16 %v5260_v14, %v5207_v46  ;;  %6321 = vmatprep.subr.bf16.mxu0 %v6320_v41 }
 0x92a   :  { %v5306_v1 = vpop.permute.xlu0 %5305  ;;  %v5304_v58 = vpop.permute.xlu1 %5303  ;;  %6359 = vmatpush1.bf16.msra.mxu1 %v6358_v2 }
 0x92b   :  { %v5312_v32 = vsel %vm1426_vm14, %v5302_v62, %v5304_v58  ;;  %5775 = vmatprep.subr.mxu1 %v10498_v52  ;;  %6323 = vmatpush1.bf16.msra.mxu0 %v6322_v22  ;;  %v5313_v37 = vsel %vm1426_vm14, %v5304_v58, %v5306_v1 }
 0x92c   :  { %5704 = vmatprep.subr.mxu0 %v5312_v32 }
 0x92e   :  { %5776 = vmatpush1.msra.mxu1 %v5313_v37 }
 0x92f   :  { %5792 = vmatmul.mubr.f32.vlgmr.msra.gmra.mrb[10].mxu1 %v9864_v13  ;;  %5705 = vmatpush1.msra.mxu0 %v5311_v60 }
 0x930   :  { %5721 = vmatmul.mubr.f32.vlgmr.msra.gmra.mrb[10].mxu0 %v9864_v13 }
 0x93b   :  { %v5509_v30 = vpop.permute.xlu1 %5508 }
 0x9c9   :  { %v5580_v15 = vpop.f32.mrb[8].mxu0 }
 0x9ca   :  { %v5581_v19 = vadd.f32 %v5580_v15, %v5509_v30  ;;  %v5582_v10 = vpop.f32.mrb[9].mxu0 }
 0x9cb   :  { %v5583_v40 = vadd.f32 %v5582_v10, %v5509_v30 }
 0x9cc   :  { %5797 = vst [vmem:[%s10048_s13] sm:$0xff] %v5581_v19 }
 0x9cd   :  { %5798 = vst [vmem:[%s10048_s13 + $0x8] sm:$0xff] %v5583_v40  ;;  %v5651_v56 = vpop.f32.mrb[8].mxu1 }
 0x9ce   :  { %v5652_v24 = vadd.f32 %v5651_v56, %v5509_v30  ;;  %v5653_v51 = vpop.f32.mrb[9].mxu1 }
 0x9cf   :  { %v5654_v16 = vadd.f32 %v5653_v51, %v5509_v30 }
 0x9d0   :  { %5799 = vst [vmem:[%s10048_s13 + $0x10] sm:$0xff] %v5652_v24 }
 0x9d1   :  { %5800 = vst [vmem:[%s10048_s13 + $0x18] sm:$0xff] %v5654_v16 }
 0xa02   :  { %v5793_v13 = vpop.f32.mrb[10].mxu1 }
 0xa03   :  { %v5794_v29 = vadd.f32 %v5793_v13, %v5509_v30  ;;  %v5795_v5 = vpop.f32.mrb[11].mxu1  ;;  %v5722_v50 = vpop.f32.mrb[10].mxu0 }
 0xa04   :  { %v5723_v6 = vadd.f32 %v5722_v50, %v5509_v30  ;;  %v5724_v43 = vpop.f32.mrb[11].mxu0 }
 0xa05   :  { %5803 = vst [vmem:[%s10048_s13 + $0x30] sm:$0xff] %v5794_v29  ;;  %v5725_v35 = vadd.f32 %v5724_v43, %v5509_v30 }
 0xa06   :  { %5801 = vst [vmem:[%s10048_s13 + $0x20] sm:$0xff] %v5723_v6 }
 0xa07   :  { %5802 = vst [vmem:[%s10048_s13 + $0x28] sm:$0xff] %v5725_v35 }

</bundles_post_ra>
